<compile_context>
chip_gen: v5e
topology: v5e:2x2
jax: 0.10.0
libtpu: 0.0.40
codegen_flags: <defaults>
</compile_context>

<pallas_src>
import math

import jax
import jax.numpy as jnp
from jax.experimental import pallas as pl
from jax.experimental.pallas import tpu as pltpu


# ----------------------------- Fused forward kernel -----------------------------
def make_fused_kernel(TJ, TE, K, EV_PAD):
    G = 4 * K
    T = TJ + TE

    def kernel(jl_ref, el_ref, jemb_ref, eemb_ref,
               wih0_ref, whh0_ref, b0_ref,
               wih1_ref, whh1_ref, b1_ref,
               ww_ref, wb_ref, out_ref,
               x_scr, xw_scr, h2_scr):
        b = pl.program_id(0)   # batch row handled by this grid step

        # ---- Prologue 1: gather all TJ+TE embedding rows for this batch row
        # into VMEM scratch (off the recurrence critical path, no concats). ----
        for t in range(TJ):
            x_scr[pl.ds(t, 1), :] = jemb_ref[pl.ds(jl_ref[b, t], 1), :]
        for t in range(TE):
            x_scr[pl.ds(TJ + t, 1), :] = eemb_ref[pl.ds(el_ref[b, t], 1), :]

        # ---- Prologue 2: layer-0 input projection for ALL timesteps as one
        # batched MXU matmul; bias b0 (= b_ih0 + b_hh0) folded in here. ----
        xw_scr[...] = (jnp.dot(x_scr[...], wih0_ref[...],
                               preferred_element_type=jnp.float32)
                       + b0_ref[...])

        # Recurrent weights / constants hoisted out of the time loop.
        whh0 = whh0_ref[...]                               # (K, 4K)
        wih1 = wih1_ref[...]                               # (K, 4K)
        whh1 = whh1_ref[...]                               # (K, 4K)
        b1 = b1_ref[...]                                   # (1, 4K)
        lane = jax.lax.broadcasted_iota(jnp.int32, (1, G), 1)
        gmask = (lane >= 2 * K) & (lane < 3 * K)           # tanh (g) gate lanes

        def gate_act(gates, c):
            # K=32: full-width sigmoid+tanh + one select is cheapest (sub-vreg
            # slices otherwise).
            # TODO(synk): for K a multiple of 128, switch to three contiguous
            # slice passes sigmoid([:, :2K]) / tanh([:, 2K:3K]) / sigmoid([:, 3K:])
            # and drop gmask — halves EUP work at real sizes.
            sg = jax.nn.sigmoid(gates)
            tg = jnp.tanh(gates)
            a = jnp.where(gmask, tg, sg)
            i_g = a[:, 0 * K:1 * K]
            f_g = a[:, 1 * K:2 * K]
            g_g = a[:, 2 * K:3 * K]
            o_g = a[:, 3 * K:4 * K]
            c_new = f_g * c + i_g * g_g
            h_new = o_g * jnp.tanh(c_new)
            return h_new, c_new

        z = jnp.zeros((1, K), jnp.float32)
        h1, c1, h2, c2 = z, z, z, z

        # ---- Recurrence: encoder over jline then decoder over eline with the
        # SAME weights (self.lstm1) and carried (h, c). Layer 0 per step is only
        # h @ W_hh0 + precomputed row; layer 1 is two dots (no lane concat). ----
        # TODO(synk): switch to lax.fori_loop(..., unroll=...) carrying
        # (h1,c1,h2,c2) once TJ/TE grow beyond ~16 (code size / live ranges).
        for t in range(T):
            g0 = xw_scr[pl.ds(t, 1), :] + jnp.dot(
                h1, whh0, preferred_element_type=jnp.float32)
            h1, c1 = gate_act(g0, c1)
            g1 = (jnp.dot(h1, wih1, preferred_element_type=jnp.float32)
                  + jnp.dot(h2, whh1, preferred_element_type=jnp.float32)
                  + b1)
            h2, c2 = gate_act(g1, c2)
            if t >= TJ:
                # Decoder step: bank layer-2 output (cheap store-slot write).
                h2_scr[pl.ds(t - TJ, 1), :] = h2

        # ---- Epilogue: one lane-dense (EV padded to 128) projection + single
        # unmasked bulk store, rows already in (t) order for this batch row. ----
        out_ref[...] = (jnp.dot(h2_scr[...], ww_ref[...],
                                preferred_element_type=jnp.float32)
                        + wb_ref[...])

    return kernel


# ------------------------------- MyNMT forward --------------------------------
def mynmt_forward(params, jline, eline):
    jemb, eemb = params["jemb"], params["eemb"]
    (wih0, whh0, b0), (wih1, whh1, b1) = params["lstm1"]

    B, TJ = jline.shape
    _, TE = eline.shape
    K = jemb.shape[1]
    EV = params["W_w"].shape[1]
    EV_PAD = ((EV + 127) // 128) * 128      # lane-dense output -> unmasked vst
    T = TJ + TE
    G = 4 * K

    # Zero-pad the output projection to a 128-lane multiple (at real vocab sizes
    # pre-pad the weights offline / keep EV a multiple of 128).
    ww = jnp.zeros((K, EV_PAD), jnp.float32).at[:, :EV].set(params["W_w"])
    wb = jnp.zeros((1, EV_PAD), jnp.float32).at[:, :EV].set(params["W_b"])

    kernel = make_fused_kernel(TJ, TE, K, EV_PAD)
    smem = pl.BlockSpec(memory_space=pltpu.MemorySpace.SMEM)
    vmem = pl.BlockSpec(memory_space=pltpu.MemorySpace.VMEM)

    out = pl.pallas_call(
        kernel,
        out_shape=jax.ShapeDtypeStruct((B, TE, EV_PAD), jnp.float32),
        grid=(B,),                                   # batch rows are independent
        in_specs=[smem, smem,                        # jline, eline token ids
                  vmem, vmem,                        # jemb, eemb tables
                  vmem, vmem, vmem,                  # layer-0 W_ih, W_hh, bias
                  vmem, vmem, vmem,                  # layer-1 W_ih, W_hh, bias
                  vmem, vmem],                       # padded W_w, W_b
        out_specs=pl.BlockSpec((None, TE, EV_PAD), lambda b: (b, 0, 0)),
        scratch_shapes=[pltpu.VMEM((T, K), jnp.float32),    # gathered emb rows
                        pltpu.VMEM((T, G), jnp.float32),    # precomputed x@Wih0+b0
                        pltpu.VMEM((TE, K), jnp.float32)],  # decoder layer-2 h
        compiler_params=pltpu.CompilerParams(
            dimension_semantics=("parallel",)),      # shard batch across TCs (v7x)
    )(jline.astype(jnp.int32), eline.astype(jnp.int32),
      jemb, eemb, wih0, whh0, b0, wih1, whh1, b1, ww, wb)

    # Kernel already emits (b, t, :) order; just drop the lane padding.
    return out[:, :, :EV]
    # TODO(synk): at real NMT sizes (K>=512, vocab ~30k) the tables / projection
    # cannot stay VMEM-resident (v7x: 64 MiB): keep them in HBM
    # (memory_space=pl.ANY), DMA-gather embedding rows, tile the projection over
    # EV in 256/512-lane N-tiles (pl.Buffered), store weights in bf16 (f32
    # accumulate), and raise vmem_limit_bytes above the 16/32 MiB scoped default.


# --------------------------- Pure-JAX reference check --------------------------
def ref_forward(params, jline, eline):
    def cell(x, h, c, w_ih, w_hh, b):
        gates = x @ w_ih + h @ w_hh + b
        i, f, g, o = jnp.split(gates, 4, axis=-1)
        c = jax.nn.sigmoid(f) * c + jax.nn.sigmoid(i) * jnp.tanh(g)
        h = jax.nn.sigmoid(o) * jnp.tanh(c)
        return h, c

    def stack(x_btk, layers, h0, c0):
        B, T, K = x_btk.shape
        hs, cs, x = [], [], x_btk
        for l, (w_ih, w_hh, b) in enumerate(layers):
            h, c = h0[l], c0[l]
            outs = []
            for t in range(T):
                h, c = cell(x[:, t], h, c, w_ih, w_hh, b)
                outs.append(h)
            x = jnp.stack(outs, axis=1)
            hs.append(h)
            cs.append(c)
        return x, jnp.stack(hs), jnp.stack(cs)

    B = jline.shape[0]
    K = params["jemb"].shape[1]
    z0 = jnp.zeros((2, B, K), jnp.float32)
    x = jnp.take(params["jemb"], jline, axis=0)
    ox, hnx, cnx = stack(x, params["lstm1"], z0, z0)
    y = jnp.take(params["eemb"], eline, axis=0)
    oy, _, _ = stack(y, params["lstm1"], hnx, cnx)
    return oy @ params["W_w"] + params["W_b"]


if __name__ == "__main__":
    K, JV, EV = 32, 11, 13        # hidden size, jv vocab, ev vocab
    B, TJ, TE = 2, 8, 8           # batch, source len, target len

    key = jax.random.PRNGKey(0)
    ks = jax.random.split(key, 12)
    s = 1.0 / math.sqrt(K)

    params = {
        "jemb": jax.random.normal(ks[0], (JV, K), jnp.float32) * 0.1,
        "eemb": jax.random.normal(ks[1], (EV, K), jnp.float32) * 0.1,
        # 2 layers: (W_ih^T (K,4K), W_hh^T (K,4K), combined bias b_ih+b_hh (1,4K))
        "lstm1": tuple(
            (jax.random.uniform(ks[2 + 3 * l], (K, 4 * K), jnp.float32, -s, s),
             jax.random.uniform(ks[3 + 3 * l], (K, 4 * K), jnp.float32, -s, s),
             jax.random.uniform(ks[4 + 3 * l], (1, 4 * K), jnp.float32, -s, s))
            for l in range(2)),
        "W_w": jax.random.uniform(ks[8], (K, EV), jnp.float32, -s, s),
        "W_b": jax.random.uniform(ks[9], (1, EV), jnp.float32, -s, s),
    }
    # TODO(synk): self.lstm2 is declared in __init__ but never used in forward(); omitted.

    jline = jax.random.randint(ks[10], (B, TJ), 0, JV)
    eline = jax.random.randint(ks[11], (B, TE), 0, EV)

    out = jax.block_until_ready(mynmt_forward(params, jline, eline))
    ref = ref_forward(params, jline, eline)
    assert out.shape == (B, TE, EV), out.shape
    assert jnp.allclose(out, ref, atol=1e-4, rtol=1e-4), \
        float(jnp.max(jnp.abs(out - ref)))

    print("KERNEL_OK")
</pallas_src>

<mosaic_0001>
module attributes {stable_mosaic.version = 11 : i64} {
  func.func @kernel(%arg0: i32, %arg1: memref<2x8xi32, #tpu.memory_space<smem>>, %arg2: memref<2x8xi32, #tpu.memory_space<smem>>, %arg3: memref<11x32xf32, #tpu.memory_space<vmem>>, %arg4: memref<13x32xf32, #tpu.memory_space<vmem>>, %arg5: memref<32x128xf32, #tpu.memory_space<vmem>>, %arg6: memref<32x128xf32, #tpu.memory_space<vmem>>, %arg7: memref<1x128xf32, #tpu.memory_space<vmem>>, %arg8: memref<32x128xf32, #tpu.memory_space<vmem>>, %arg9: memref<32x128xf32, #tpu.memory_space<vmem>>, %arg10: memref<1x128xf32, #tpu.memory_space<vmem>>, %arg11: memref<32x128xf32, #tpu.memory_space<vmem>>, %arg12: memref<1x128xf32, #tpu.memory_space<vmem>>, %arg13: memref<1x8x128xf32, #tpu.memory_space<vmem>>, %arg14: memref<16x32xf32, #tpu.memory_space<vmem>>, %arg15: memref<16x128xf32, #tpu.memory_space<vmem>>, %arg16: memref<8x32xf32, #tpu.memory_space<vmem>>) attributes {dimension_semantics = [#tpu.dimension_semantics<parallel>], iteration_bounds = array<i64: 2>, scalar_prefetch = 0 : i64, scratch_operands = 3 : i64, tpu.core_type = #tpu.core_type<tc>, window_params = [{transform_indices = @transform_0, window_bounds = array<i64: 2, 8>}, {transform_indices = @transform_1, window_bounds = array<i64: 2, 8>}, {pipeline_mode = #tpu.pipeline_mode<synchronous>, transform_indices = @transform_2, window_bounds = array<i64: 11, 32>}, {pipeline_mode = #tpu.pipeline_mode<synchronous>, transform_indices = @transform_3, window_bounds = array<i64: 13, 32>}, {pipeline_mode = #tpu.pipeline_mode<synchronous>, transform_indices = @transform_4, window_bounds = array<i64: 32, 128>}, {pipeline_mode = #tpu.pipeline_mode<synchronous>, transform_indices = @transform_5, window_bounds = array<i64: 32, 128>}, {pipeline_mode = #tpu.pipeline_mode<synchronous>, transform_indices = @transform_6, window_bounds = array<i64: 1, 128>}, {pipeline_mode = #tpu.pipeline_mode<synchronous>, transform_indices = @transform_7, window_bounds = array<i64: 32, 128>}, {pipeline_mode = #tpu.pipeline_mode<synchronous>, transform_indices = @transform_8, window_bounds = array<i64: 32, 128>}, {pipeline_mode = #tpu.pipeline_mode<synchronous>, transform_indices = @transform_9, window_bounds = array<i64: 1, 128>}, {pipeline_mode = #tpu.pipeline_mode<synchronous>, transform_indices = @transform_10, window_bounds = array<i64: 32, 128>}, {pipeline_mode = #tpu.pipeline_mode<synchronous>, transform_indices = @transform_11, window_bounds = array<i64: 1, 128>}, {transform_indices = @transform_12, window_bounds = array<i64: 1, 8, 128>}]} {
    %0 = arith.index_cast %arg0 : i32 to index
    %c0 = arith.constant 0 : index
    %1 = memref.load %arg1[%0, %c0] : memref<2x8xi32, #tpu.memory_space<smem>>
    %2 = arith.index_cast %1 : i32 to index
    %c0_0 = arith.constant 0 : index
    %3 = vector.load %arg3[%2, %c0_0] : memref<11x32xf32, #tpu.memory_space<vmem>>, vector<1x32xf32>
    %c0_1 = arith.constant 0 : index
    %c0_2 = arith.constant 0 : index
    %4 = vector.load %arg14[%c0_1, %c0_2] : memref<16x32xf32, #tpu.memory_space<vmem>>, vector<1x32xf32>
    tpu.vector_store %arg14[%c0_1, %c0_2], %3 {strides = array<i32>} : memref<16x32xf32, #tpu.memory_space<vmem>>, vector<1x32xf32>,
    %5 = arith.index_cast %arg0 : i32 to index
    %c1 = arith.constant 1 : index
    %6 = memref.load %arg1[%5, %c1] : memref<2x8xi32, #tpu.memory_space<smem>>
    %7 = arith.index_cast %6 : i32 to index
    %c0_3 = arith.constant 0 : index
    %8 = vector.load %arg3[%7, %c0_3] : memref<11x32xf32, #tpu.memory_space<vmem>>, vector<1x32xf32>
    %c1_4 = arith.constant 1 : index
    %c0_5 = arith.constant 0 : index
    %9 = vector.load %arg14[%c1_4, %c0_5] : memref<16x32xf32, #tpu.memory_space<vmem>>, vector<1x32xf32>
    tpu.vector_store %arg14[%c1_4, %c0_5], %8 {strides = array<i32>} : memref<16x32xf32, #tpu.memory_space<vmem>>, vector<1x32xf32>,
    %10 = arith.index_cast %arg0 : i32 to index
    %c2 = arith.constant 2 : index
    %11 = memref.load %arg1[%10, %c2] : memref<2x8xi32, #tpu.memory_space<smem>>
    %12 = arith.index_cast %11 : i32 to index
    %c0_6 = arith.constant 0 : index
    %13 = vector.load %arg3[%12, %c0_6] : memref<11x32xf32, #tpu.memory_space<vmem>>, vector<1x32xf32>
    %c2_7 = arith.constant 2 : index
    %c0_8 = arith.constant 0 : index
    %14 = vector.load %arg14[%c2_7, %c0_8] : memref<16x32xf32, #tpu.memory_space<vmem>>, vector<1x32xf32>
    tpu.vector_store %arg14[%c2_7, %c0_8], %13 {strides = array<i32>} : memref<16x32xf32, #tpu.memory_space<vmem>>, vector<1x32xf32>,
    %15 = arith.index_cast %arg0 : i32 to index
    %c3 = arith.constant 3 : index
    %16 = memref.load %arg1[%15, %c3] : memref<2x8xi32, #tpu.memory_space<smem>>
    %17 = arith.index_cast %16 : i32 to index
    %c0_9 = arith.constant 0 : index
    %18 = vector.load %arg3[%17, %c0_9] : memref<11x32xf32, #tpu.memory_space<vmem>>, vector<1x32xf32>
    %c3_10 = arith.constant 3 : index
    %c0_11 = arith.constant 0 : index
    %19 = vector.load %arg14[%c3_10, %c0_11] : memref<16x32xf32, #tpu.memory_space<vmem>>, vector<1x32xf32>
    tpu.vector_store %arg14[%c3_10, %c0_11], %18 {strides = array<i32>} : memref<16x32xf32, #tpu.memory_space<vmem>>, vector<1x32xf32>,
    %20 = arith.index_cast %arg0 : i32 to index
    %c4 = arith.constant 4 : index
    %21 = memref.load %arg1[%20, %c4] : memref<2x8xi32, #tpu.memory_space<smem>>
    %22 = arith.index_cast %21 : i32 to index
    %c0_12 = arith.constant 0 : index
    %23 = vector.load %arg3[%22, %c0_12] : memref<11x32xf32, #tpu.memory_space<vmem>>, vector<1x32xf32>
    %c4_13 = arith.constant 4 : index
    %c0_14 = arith.constant 0 : index
    %24 = vector.load %arg14[%c4_13, %c0_14] : memref<16x32xf32, #tpu.memory_space<vmem>>, vector<1x32xf32>
    tpu.vector_store %arg14[%c4_13, %c0_14], %23 {strides = array<i32>} : memref<16x32xf32, #tpu.memory_space<vmem>>, vector<1x32xf32>,
    %25 = arith.index_cast %arg0 : i32 to index
    %c5 = arith.constant 5 : index
    %26 = memref.load %arg1[%25, %c5] : memref<2x8xi32, #tpu.memory_space<smem>>
    %27 = arith.index_cast %26 : i32 to index
    %c0_15 = arith.constant 0 : index
    %28 = vector.load %arg3[%27, %c0_15] : memref<11x32xf32, #tpu.memory_space<vmem>>, vector<1x32xf32>
    %c5_16 = arith.constant 5 : index
    %c0_17 = arith.constant 0 : index
    %29 = vector.load %arg14[%c5_16, %c0_17] : memref<16x32xf32, #tpu.memory_space<vmem>>, vector<1x32xf32>
    tpu.vector_store %arg14[%c5_16, %c0_17], %28 {strides = array<i32>} : memref<16x32xf32, #tpu.memory_space<vmem>>, vector<1x32xf32>,
    %30 = arith.index_cast %arg0 : i32 to index
    %c6 = arith.constant 6 : index
    %31 = memref.load %arg1[%30, %c6] : memref<2x8xi32, #tpu.memory_space<smem>>
    %32 = arith.index_cast %31 : i32 to index
    %c0_18 = arith.constant 0 : index
    %33 = vector.load %arg3[%32, %c0_18] : memref<11x32xf32, #tpu.memory_space<vmem>>, vector<1x32xf32>
    %c6_19 = arith.constant 6 : index
    %c0_20 = arith.constant 0 : index
    %34 = vector.load %arg14[%c6_19, %c0_20] : memref<16x32xf32, #tpu.memory_space<vmem>>, vector<1x32xf32>
    tpu.vector_store %arg14[%c6_19, %c0_20], %33 {strides = array<i32>} : memref<16x32xf32, #tpu.memory_space<vmem>>, vector<1x32xf32>,
    %35 = arith.index_cast %arg0 : i32 to index
    %c7 = arith.constant 7 : index
    %36 = memref.load %arg1[%35, %c7] : memref<2x8xi32, #tpu.memory_space<smem>>
    %37 = arith.index_cast %36 : i32 to index
    %c0_21 = arith.constant 0 : index
    %38 = vector.load %arg3[%37, %c0_21] : memref<11x32xf32, #tpu.memory_space<vmem>>, vector<1x32xf32>
    %c7_22 = arith.constant 7 : index
    %c0_23 = arith.constant 0 : index
    %39 = vector.load %arg14[%c7_22, %c0_23] : memref<16x32xf32, #tpu.memory_space<vmem>>, vector<1x32xf32>
    tpu.vector_store %arg14[%c7_22, %c0_23], %38 {strides = array<i32>} : memref<16x32xf32, #tpu.memory_space<vmem>>, vector<1x32xf32>,
    %40 = arith.index_cast %arg0 : i32 to index
    %c0_24 = arith.constant 0 : index
    %41 = memref.load %arg2[%40, %c0_24] : memref<2x8xi32, #tpu.memory_space<smem>>
    %42 = arith.index_cast %41 : i32 to index
    %c0_25 = arith.constant 0 : index
    %43 = vector.load %arg4[%42, %c0_25] : memref<13x32xf32, #tpu.memory_space<vmem>>, vector<1x32xf32>
    %c8 = arith.constant 8 : index
    %c0_26 = arith.constant 0 : index
    %44 = vector.load %arg14[%c8, %c0_26] : memref<16x32xf32, #tpu.memory_space<vmem>>, vector<1x32xf32>
    tpu.vector_store %arg14[%c8, %c0_26], %43 {strides = array<i32>} : memref<16x32xf32, #tpu.memory_space<vmem>>, vector<1x32xf32>,
    %45 = arith.index_cast %arg0 : i32 to index
    %c1_27 = arith.constant 1 : index
    %46 = memref.load %arg2[%45, %c1_27] : memref<2x8xi32, #tpu.memory_space<smem>>
    %47 = arith.index_cast %46 : i32 to index
    %c0_28 = arith.constant 0 : index
    %48 = vector.load %arg4[%47, %c0_28] : memref<13x32xf32, #tpu.memory_space<vmem>>, vector<1x32xf32>
    %c9 = arith.constant 9 : index
    %c0_29 = arith.constant 0 : index
    %49 = vector.load %arg14[%c9, %c0_29] : memref<16x32xf32, #tpu.memory_space<vmem>>, vector<1x32xf32>
    tpu.vector_store %arg14[%c9, %c0_29], %48 {strides = array<i32>} : memref<16x32xf32, #tpu.memory_space<vmem>>, vector<1x32xf32>,
    %50 = arith.index_cast %arg0 : i32 to index
    %c2_30 = arith.constant 2 : index
    %51 = memref.load %arg2[%50, %c2_30] : memref<2x8xi32, #tpu.memory_space<smem>>
    %52 = arith.index_cast %51 : i32 to index
    %c0_31 = arith.constant 0 : index
    %53 = vector.load %arg4[%52, %c0_31] : memref<13x32xf32, #tpu.memory_space<vmem>>, vector<1x32xf32>
    %c10 = arith.constant 10 : index
    %c0_32 = arith.constant 0 : index
    %54 = vector.load %arg14[%c10, %c0_32] : memref<16x32xf32, #tpu.memory_space<vmem>>, vector<1x32xf32>
    tpu.vector_store %arg14[%c10, %c0_32], %53 {strides = array<i32>} : memref<16x32xf32, #tpu.memory_space<vmem>>, vector<1x32xf32>,
    %55 = arith.index_cast %arg0 : i32 to index
    %c3_33 = arith.constant 3 : index
    %56 = memref.load %arg2[%55, %c3_33] : memref<2x8xi32, #tpu.memory_space<smem>>
    %57 = arith.index_cast %56 : i32 to index
    %c0_34 = arith.constant 0 : index
    %58 = vector.load %arg4[%57, %c0_34] : memref<13x32xf32, #tpu.memory_space<vmem>>, vector<1x32xf32>
    %c11 = arith.constant 11 : index
    %c0_35 = arith.constant 0 : index
    %59 = vector.load %arg14[%c11, %c0_35] : memref<16x32xf32, #tpu.memory_space<vmem>>, vector<1x32xf32>
    tpu.vector_store %arg14[%c11, %c0_35], %58 {strides = array<i32>} : memref<16x32xf32, #tpu.memory_space<vmem>>, vector<1x32xf32>,
    %60 = arith.index_cast %arg0 : i32 to index
    %c4_36 = arith.constant 4 : index
    %61 = memref.load %arg2[%60, %c4_36] : memref<2x8xi32, #tpu.memory_space<smem>>
    %62 = arith.index_cast %61 : i32 to index
    %c0_37 = arith.constant 0 : index
    %63 = vector.load %arg4[%62, %c0_37] : memref<13x32xf32, #tpu.memory_space<vmem>>, vector<1x32xf32>
    %c12 = arith.constant 12 : index
    %c0_38 = arith.constant 0 : index
    %64 = vector.load %arg14[%c12, %c0_38] : memref<16x32xf32, #tpu.memory_space<vmem>>, vector<1x32xf32>
    tpu.vector_store %arg14[%c12, %c0_38], %63 {strides = array<i32>} : memref<16x32xf32, #tpu.memory_space<vmem>>, vector<1x32xf32>,
    %65 = arith.index_cast %arg0 : i32 to index
    %c5_39 = arith.constant 5 : index
    %66 = memref.load %arg2[%65, %c5_39] : memref<2x8xi32, #tpu.memory_space<smem>>
    %67 = arith.index_cast %66 : i32 to index
    %c0_40 = arith.constant 0 : index
    %68 = vector.load %arg4[%67, %c0_40] : memref<13x32xf32, #tpu.memory_space<vmem>>, vector<1x32xf32>
    %c13 = arith.constant 13 : index
    %c0_41 = arith.constant 0 : index
    %69 = vector.load %arg14[%c13, %c0_41] : memref<16x32xf32, #tpu.memory_space<vmem>>, vector<1x32xf32>
    tpu.vector_store %arg14[%c13, %c0_41], %68 {strides = array<i32>} : memref<16x32xf32, #tpu.memory_space<vmem>>, vector<1x32xf32>,
    %70 = arith.index_cast %arg0 : i32 to index
    %c6_42 = arith.constant 6 : index
    %71 = memref.load %arg2[%70, %c6_42] : memref<2x8xi32, #tpu.memory_space<smem>>
    %72 = arith.index_cast %71 : i32 to index
    %c0_43 = arith.constant 0 : index
    %73 = vector.load %arg4[%72, %c0_43] : memref<13x32xf32, #tpu.memory_space<vmem>>, vector<1x32xf32>
    %c14 = arith.constant 14 : index
    %c0_44 = arith.constant 0 : index
    %74 = vector.load %arg14[%c14, %c0_44] : memref<16x32xf32, #tpu.memory_space<vmem>>, vector<1x32xf32>
    tpu.vector_store %arg14[%c14, %c0_44], %73 {strides = array<i32>} : memref<16x32xf32, #tpu.memory_space<vmem>>, vector<1x32xf32>,
    %75 = arith.index_cast %arg0 : i32 to index
    %c7_45 = arith.constant 7 : index
    %76 = memref.load %arg2[%75, %c7_45] : memref<2x8xi32, #tpu.memory_space<smem>>
    %77 = arith.index_cast %76 : i32 to index
    %c0_46 = arith.constant 0 : index
    %78 = vector.load %arg4[%77, %c0_46] : memref<13x32xf32, #tpu.memory_space<vmem>>, vector<1x32xf32>
    %c15 = arith.constant 15 : index
    %c0_47 = arith.constant 0 : index
    %79 = vector.load %arg14[%c15, %c0_47] : memref<16x32xf32, #tpu.memory_space<vmem>>, vector<1x32xf32>
    tpu.vector_store %arg14[%c15, %c0_47], %78 {strides = array<i32>} : memref<16x32xf32, #tpu.memory_space<vmem>>, vector<1x32xf32>,
    %c0_48 = arith.constant 0 : index
    %c0_49 = arith.constant 0 : index
    %80 = vector.load %arg14[%c0_48, %c0_49] : memref<16x32xf32, #tpu.memory_space<vmem>>, vector<16x32xf32>
    %c0_50 = arith.constant 0 : index
    %c0_51 = arith.constant 0 : index
    %81 = vector.load %arg5[%c0_50, %c0_51] : memref<32x128xf32, #tpu.memory_space<vmem>>, vector<32x128xf32>
    %cst = arith.constant dense<0.000000e+00> : vector<16x128xf32>
    %82 = tpu.matmul %80, %81, %cst {dimension_numbers = #tpu.dot_dimension_numbers<[1], [0], [0], [1], [0, 0, 1, 1], [], []>} : vector<16x32xf32>, vector<32x128xf32>, vector<16x128xf32> -> vector<16x128xf32>
    %c0_52 = arith.constant 0 : index
    %c0_53 = arith.constant 0 : index
    %83 = vector.load %arg7[%c0_52, %c0_53] : memref<1x128xf32, #tpu.memory_space<vmem>>, vector<1x128xf32>
    %84 = vector.broadcast %83 : vector<1x128xf32> to vector<16x128xf32>
    %85 = arith.addf %82, %84 : vector<16x128xf32>
    %c0_54 = arith.constant 0 : index
    %c0_55 = arith.constant 0 : index
    %86 = vector.load %arg15[%c0_54, %c0_55] : memref<16x128xf32, #tpu.memory_space<vmem>>, vector<16x128xf32>
    tpu.vector_store %arg15[%c0_54, %c0_55], %85 {strides = array<i32>} : memref<16x128xf32, #tpu.memory_space<vmem>>, vector<16x128xf32>,
    %c0_56 = arith.constant 0 : index
    %c0_57 = arith.constant 0 : index
    %87 = vector.load %arg6[%c0_56, %c0_57] : memref<32x128xf32, #tpu.memory_space<vmem>>, vector<32x128xf32>
    %c0_58 = arith.constant 0 : index
    %c0_59 = arith.constant 0 : index
    %88 = vector.load %arg8[%c0_58, %c0_59] : memref<32x128xf32, #tpu.memory_space<vmem>>, vector<32x128xf32>
    %c0_60 = arith.constant 0 : index
    %c0_61 = arith.constant 0 : index
    %89 = vector.load %arg9[%c0_60, %c0_61] : memref<32x128xf32, #tpu.memory_space<vmem>>, vector<32x128xf32>
    %c0_62 = arith.constant 0 : index
    %c0_63 = arith.constant 0 : index
    %90 = vector.load %arg10[%c0_62, %c0_63] : memref<1x128xf32, #tpu.memory_space<vmem>>, vector<1x128xf32>
    %91 = tpu.iota {dimensions = array<i32: 1>} : vector<1x128xi32>
    %c64_i32 = arith.constant 64 : i32
    %92 = vector.broadcast %c64_i32 : i32 to vector<1x128xi32>
    %93 = arith.cmpi sge, %91, %92 : vector<1x128xi32>
    %c96_i32 = arith.constant 96 : i32
    %94 = vector.broadcast %c96_i32 : i32 to vector<1x128xi32>
    %95 = arith.cmpi slt, %91, %94 : vector<1x128xi32>
    %96 = arith.andi %93, %95 : vector<1x128xi1>
    %cst_64 = arith.constant 0.000000e+00 : f32
    %97 = vector.broadcast %cst_64 : f32 to vector<1x32xf32>
    %c0_65 = arith.constant 0 : index
    %c0_66 = arith.constant 0 : index
    %98 = vector.load %arg15[%c0_65, %c0_66] : memref<16x128xf32, #tpu.memory_space<vmem>>, vector<1x128xf32>
    %cst_67 = arith.constant dense<0.000000e+00> : vector<1x128xf32>
    %99 = tpu.matmul %97, %87, %cst_67 {dimension_numbers = #tpu.dot_dimension_numbers<[1], [0], [0], [1], [0, 0, 1, 1], [], []>} : vector<1x32xf32>, vector<32x128xf32>, vector<1x128xf32> -> vector<1x128xf32>
    %100 = arith.addf %98, %99 : vector<1x128xf32>
    %101 = arith.negf %100 : vector<1x128xf32>
    %102 = math.exp %101 : vector<1x128xf32>
    %cst_68 = arith.constant 1.000000e+00 : f32
    %103 = vector.broadcast %cst_68 : f32 to vector<1x128xf32>
    %104 = arith.addf %103, %102 : vector<1x128xf32>
    %105 = arith.divf %103, %104 : vector<1x128xf32>
    %106 = math.tanh %100 : vector<1x128xf32>
    %107 = arith.select %96, %106, %105 : vector<1x128xi1>, vector<1x128xf32>
    %108 = vector.extract_strided_slice %107 {offsets = [0, 0], sizes = [1, 32], strides = [1, 1]} : vector<1x128xf32> to vector<1x32xf32>
    %109 = vector.extract_strided_slice %107 {offsets = [0, 32], sizes = [1, 32], strides = [1, 1]} : vector<1x128xf32> to vector<1x32xf32>
    %110 = vector.extract_strided_slice %107 {offsets = [0, 64], sizes = [1, 32], strides = [1, 1]} : vector<1x128xf32> to vector<1x32xf32>
    %111 = vector.extract_strided_slice %107 {offsets = [0, 96], sizes = [1, 32], strides = [1, 1]} : vector<1x128xf32> to vector<1x32xf32>
    %112 = arith.mulf %109, %97 : vector<1x32xf32>
    %113 = arith.mulf %108, %110 : vector<1x32xf32>
    %114 = arith.addf %112, %113 : vector<1x32xf32>
    %115 = math.tanh %114 : vector<1x32xf32>
    %116 = arith.mulf %111, %115 : vector<1x32xf32>
    %cst_69 = arith.constant dense<0.000000e+00> : vector<1x128xf32>
    %117 = tpu.matmul %116, %88, %cst_69 {dimension_numbers = #tpu.dot_dimension_numbers<[1], [0], [0], [1], [0, 0, 1, 1], [], []>} : vector<1x32xf32>, vector<32x128xf32>, vector<1x128xf32> -> vector<1x128xf32>
    %cst_70 = arith.constant dense<0.000000e+00> : vector<1x128xf32>
    %118 = tpu.matmul %97, %89, %cst_70 {dimension_numbers = #tpu.dot_dimension_numbers<[1], [0], [0], [1], [0, 0, 1, 1], [], []>} : vector<1x32xf32>, vector<32x128xf32>, vector<1x128xf32> -> vector<1x128xf32>
    %119 = arith.addf %117, %118 : vector<1x128xf32>
    %120 = arith.addf %119, %90 : vector<1x128xf32>
    %121 = arith.negf %120 : vector<1x128xf32>
    %122 = math.exp %121 : vector<1x128xf32>
    %cst_71 = arith.constant 1.000000e+00 : f32
    %123 = vector.broadcast %cst_71 : f32 to vector<1x128xf32>
    %124 = arith.addf %123, %122 : vector<1x128xf32>
    %125 = arith.divf %123, %124 : vector<1x128xf32>
    %126 = math.tanh %120 : vector<1x128xf32>
    %127 = arith.select %96, %126, %125 : vector<1x128xi1>, vector<1x128xf32>
    %128 = vector.extract_strided_slice %127 {offsets = [0, 0], sizes = [1, 32], strides = [1, 1]} : vector<1x128xf32> to vector<1x32xf32>
    %129 = vector.extract_strided_slice %127 {offsets = [0, 32], sizes = [1, 32], strides = [1, 1]} : vector<1x128xf32> to vector<1x32xf32>
    %130 = vector.extract_strided_slice %127 {offsets = [0, 64], sizes = [1, 32], strides = [1, 1]} : vector<1x128xf32> to vector<1x32xf32>
    %131 = vector.extract_strided_slice %127 {offsets = [0, 96], sizes = [1, 32], strides = [1, 1]} : vector<1x128xf32> to vector<1x32xf32>
    %132 = arith.mulf %129, %97 : vector<1x32xf32>
    %133 = arith.mulf %128, %130 : vector<1x32xf32>
    %134 = arith.addf %132, %133 : vector<1x32xf32>
    %135 = math.tanh %134 : vector<1x32xf32>
    %136 = arith.mulf %131, %135 : vector<1x32xf32>
    %c1_72 = arith.constant 1 : index
    %c0_73 = arith.constant 0 : index
    %137 = vector.load %arg15[%c1_72, %c0_73] : memref<16x128xf32, #tpu.memory_space<vmem>>, vector<1x128xf32>
    %cst_74 = arith.constant dense<0.000000e+00> : vector<1x128xf32>
    %138 = tpu.matmul %116, %87, %cst_74 {dimension_numbers = #tpu.dot_dimension_numbers<[1], [0], [0], [1], [0, 0, 1, 1], [], []>} : vector<1x32xf32>, vector<32x128xf32>, vector<1x128xf32> -> vector<1x128xf32>
    %139 = arith.addf %137, %138 : vector<1x128xf32>
    %140 = arith.negf %139 : vector<1x128xf32>
    %141 = math.exp %140 : vector<1x128xf32>
    %cst_75 = arith.constant 1.000000e+00 : f32
    %142 = vector.broadcast %cst_75 : f32 to vector<1x128xf32>
    %143 = arith.addf %142, %141 : vector<1x128xf32>
    %144 = arith.divf %142, %143 : vector<1x128xf32>
    %145 = math.tanh %139 : vector<1x128xf32>
    %146 = arith.select %96, %145, %144 : vector<1x128xi1>, vector<1x128xf32>
    %147 = vector.extract_strided_slice %146 {offsets = [0, 0], sizes = [1, 32], strides = [1, 1]} : vector<1x128xf32> to vector<1x32xf32>
    %148 = vector.extract_strided_slice %146 {offsets = [0, 32], sizes = [1, 32], strides = [1, 1]} : vector<1x128xf32> to vector<1x32xf32>
    %149 = vector.extract_strided_slice %146 {offsets = [0, 64], sizes = [1, 32], strides = [1, 1]} : vector<1x128xf32> to vector<1x32xf32>
    %150 = vector.extract_strided_slice %146 {offsets = [0, 96], sizes = [1, 32], strides = [1, 1]} : vector<1x128xf32> to vector<1x32xf32>
    %151 = arith.mulf %148, %114 : vector<1x32xf32>
    %152 = arith.mulf %147, %149 : vector<1x32xf32>
    %153 = arith.addf %151, %152 : vector<1x32xf32>
    %154 = math.tanh %153 : vector<1x32xf32>
    %155 = arith.mulf %150, %154 : vector<1x32xf32>
    %cst_76 = arith.constant dense<0.000000e+00> : vector<1x128xf32>
    %156 = tpu.matmul %155, %88, %cst_76 {dimension_numbers = #tpu.dot_dimension_numbers<[1], [0], [0], [1], [0, 0, 1, 1], [], []>} : vector<1x32xf32>, vector<32x128xf32>, vector<1x128xf32> -> vector<1x128xf32>
    %cst_77 = arith.constant dense<0.000000e+00> : vector<1x128xf32>
    %157 = tpu.matmul %136, %89, %cst_77 {dimension_numbers = #tpu.dot_dimension_numbers<[1], [0], [0], [1], [0, 0, 1, 1], [], []>} : vector<1x32xf32>, vector<32x128xf32>, vector<1x128xf32> -> vector<1x128xf32>
    %158 = arith.addf %156, %157 : vector<1x128xf32>
    %159 = arith.addf %158, %90 : vector<1x128xf32>
    %160 = arith.negf %159 : vector<1x128xf32>
    %161 = math.exp %160 : vector<1x128xf32>
    %cst_78 = arith.constant 1.000000e+00 : f32
    %162 = vector.broadcast %cst_78 : f32 to vector<1x128xf32>
    %163 = arith.addf %162, %161 : vector<1x128xf32>
    %164 = arith.divf %162, %163 : vector<1x128xf32>
    %165 = math.tanh %159 : vector<1x128xf32>
    %166 = arith.select %96, %165, %164 : vector<1x128xi1>, vector<1x128xf32>
    %167 = vector.extract_strided_slice %166 {offsets = [0, 0], sizes = [1, 32], strides = [1, 1]} : vector<1x128xf32> to vector<1x32xf32>
    %168 = vector.extract_strided_slice %166 {offsets = [0, 32], sizes = [1, 32], strides = [1, 1]} : vector<1x128xf32> to vector<1x32xf32>
    %169 = vector.extract_strided_slice %166 {offsets = [0, 64], sizes = [1, 32], strides = [1, 1]} : vector<1x128xf32> to vector<1x32xf32>
    %170 = vector.extract_strided_slice %166 {offsets = [0, 96], sizes = [1, 32], strides = [1, 1]} : vector<1x128xf32> to vector<1x32xf32>
    %171 = arith.mulf %168, %134 : vector<1x32xf32>
    %172 = arith.mulf %167, %169 : vector<1x32xf32>
    %173 = arith.addf %171, %172 : vector<1x32xf32>
    %174 = math.tanh %173 : vector<1x32xf32>
    %175 = arith.mulf %170, %174 : vector<1x32xf32>
    %c2_79 = arith.constant 2 : index
    %c0_80 = arith.constant 0 : index
    %176 = vector.load %arg15[%c2_79, %c0_80] : memref<16x128xf32, #tpu.memory_space<vmem>>, vector<1x128xf32>
    %cst_81 = arith.constant dense<0.000000e+00> : vector<1x128xf32>
    %177 = tpu.matmul %155, %87, %cst_81 {dimension_numbers = #tpu.dot_dimension_numbers<[1], [0], [0], [1], [0, 0, 1, 1], [], []>} : vector<1x32xf32>, vector<32x128xf32>, vector<1x128xf32> -> vector<1x128xf32>
    %178 = arith.addf %176, %177 : vector<1x128xf32>
    %179 = arith.negf %178 : vector<1x128xf32>
    %180 = math.exp %179 : vector<1x128xf32>
    %cst_82 = arith.constant 1.000000e+00 : f32
    %181 = vector.broadcast %cst_82 : f32 to vector<1x128xf32>
    %182 = arith.addf %181, %180 : vector<1x128xf32>
    %183 = arith.divf %181, %182 : vector<1x128xf32>
    %184 = math.tanh %178 : vector<1x128xf32>
    %185 = arith.select %96, %184, %183 : vector<1x128xi1>, vector<1x128xf32>
    %186 = vector.extract_strided_slice %185 {offsets = [0, 0], sizes = [1, 32], strides = [1, 1]} : vector<1x128xf32> to vector<1x32xf32>
    %187 = vector.extract_strided_slice %185 {offsets = [0, 32], sizes = [1, 32], strides = [1, 1]} : vector<1x128xf32> to vector<1x32xf32>
    %188 = vector.extract_strided_slice %185 {offsets = [0, 64], sizes = [1, 32], strides = [1, 1]} : vector<1x128xf32> to vector<1x32xf32>
    %189 = vector.extract_strided_slice %185 {offsets = [0, 96], sizes = [1, 32], strides = [1, 1]} : vector<1x128xf32> to vector<1x32xf32>
    %190 = arith.mulf %187, %153 : vector<1x32xf32>
    %191 = arith.mulf %186, %188 : vector<1x32xf32>
    %192 = arith.addf %190, %191 : vector<1x32xf32>
    %193 = math.tanh %192 : vector<1x32xf32>
    %194 = arith.mulf %189, %193 : vector<1x32xf32>
    %cst_83 = arith.constant dense<0.000000e+00> : vector<1x128xf32>
    %195 = tpu.matmul %194, %88, %cst_83 {dimension_numbers = #tpu.dot_dimension_numbers<[1], [0], [0], [1], [0, 0, 1, 1], [], []>} : vector<1x32xf32>, vector<32x128xf32>, vector<1x128xf32> -> vector<1x128xf32>
    %cst_84 = arith.constant dense<0.000000e+00> : vector<1x128xf32>
    %196 = tpu.matmul %175, %89, %cst_84 {dimension_numbers = #tpu.dot_dimension_numbers<[1], [0], [0], [1], [0, 0, 1, 1], [], []>} : vector<1x32xf32>, vector<32x128xf32>, vector<1x128xf32> -> vector<1x128xf32>
    %197 = arith.addf %195, %196 : vector<1x128xf32>
    %198 = arith.addf %197, %90 : vector<1x128xf32>
    %199 = arith.negf %198 : vector<1x128xf32>
    %200 = math.exp %199 : vector<1x128xf32>
    %cst_85 = arith.constant 1.000000e+00 : f32
    %201 = vector.broadcast %cst_85 : f32 to vector<1x128xf32>
    %202 = arith.addf %201, %200 : vector<1x128xf32>
    %203 = arith.divf %201, %202 : vector<1x128xf32>
    %204 = math.tanh %198 : vector<1x128xf32>
    %205 = arith.select %96, %204, %203 : vector<1x128xi1>, vector<1x128xf32>
    %206 = vector.extract_strided_slice %205 {offsets = [0, 0], sizes = [1, 32], strides = [1, 1]} : vector<1x128xf32> to vector<1x32xf32>
    %207 = vector.extract_strided_slice %205 {offsets = [0, 32], sizes = [1, 32], strides = [1, 1]} : vector<1x128xf32> to vector<1x32xf32>
    %208 = vector.extract_strided_slice %205 {offsets = [0, 64], sizes = [1, 32], strides = [1, 1]} : vector<1x128xf32> to vector<1x32xf32>
    %209 = vector.extract_strided_slice %205 {offsets = [0, 96], sizes = [1, 32], strides = [1, 1]} : vector<1x128xf32> to vector<1x32xf32>
    %210 = arith.mulf %207, %173 : vector<1x32xf32>
    %211 = arith.mulf %206, %208 : vector<1x32xf32>
    %212 = arith.addf %210, %211 : vector<1x32xf32>
    %213 = math.tanh %212 : vector<1x32xf32>
    %214 = arith.mulf %209, %213 : vector<1x32xf32>
    %c3_86 = arith.constant 3 : index
    %c0_87 = arith.constant 0 : index
    %215 = vector.load %arg15[%c3_86, %c0_87] : memref<16x128xf32, #tpu.memory_space<vmem>>, vector<1x128xf32>
    %cst_88 = arith.constant dense<0.000000e+00> : vector<1x128xf32>
    %216 = tpu.matmul %194, %87, %cst_88 {dimension_numbers = #tpu.dot_dimension_numbers<[1], [0], [0], [1], [0, 0, 1, 1], [], []>} : vector<1x32xf32>, vector<32x128xf32>, vector<1x128xf32> -> vector<1x128xf32>
    %217 = arith.addf %215, %216 : vector<1x128xf32>
    %218 = arith.negf %217 : vector<1x128xf32>
    %219 = math.exp %218 : vector<1x128xf32>
    %cst_89 = arith.constant 1.000000e+00 : f32
    %220 = vector.broadcast %cst_89 : f32 to vector<1x128xf32>
    %221 = arith.addf %220, %219 : vector<1x128xf32>
    %222 = arith.divf %220, %221 : vector<1x128xf32>
    %223 = math.tanh %217 : vector<1x128xf32>
    %224 = arith.select %96, %223, %222 : vector<1x128xi1>, vector<1x128xf32>
    %225 = vector.extract_strided_slice %224 {offsets = [0, 0], sizes = [1, 32], strides = [1, 1]} : vector<1x128xf32> to vector<1x32xf32>
    %226 = vector.extract_strided_slice %224 {offsets = [0, 32], sizes = [1, 32], strides = [1, 1]} : vector<1x128xf32> to vector<1x32xf32>
    %227 = vector.extract_strided_slice %224 {offsets = [0, 64], sizes = [1, 32], strides = [1, 1]} : vector<1x128xf32> to vector<1x32xf32>
    %228 = vector.extract_strided_slice %224 {offsets = [0, 96], sizes = [1, 32], strides = [1, 1]} : vector<1x128xf32> to vector<1x32xf32>
    %229 = arith.mulf %226, %192 : vector<1x32xf32>
    %230 = arith.mulf %225, %227 : vector<1x32xf32>
    %231 = arith.addf %229, %230 : vector<1x32xf32>
    %232 = math.tanh %231 : vector<1x32xf32>
    %233 = arith.mulf %228, %232 : vector<1x32xf32>
    %cst_90 = arith.constant dense<0.000000e+00> : vector<1x128xf32>
    %234 = tpu.matmul %233, %88, %cst_90 {dimension_numbers = #tpu.dot_dimension_numbers<[1], [0], [0], [1], [0, 0, 1, 1], [], []>} : vector<1x32xf32>, vector<32x128xf32>, vector<1x128xf32> -> vector<1x128xf32>
    %cst_91 = arith.constant dense<0.000000e+00> : vector<1x128xf32>
    %235 = tpu.matmul %214, %89, %cst_91 {dimension_numbers = #tpu.dot_dimension_numbers<[1], [0], [0], [1], [0, 0, 1, 1], [], []>} : vector<1x32xf32>, vector<32x128xf32>, vector<1x128xf32> -> vector<1x128xf32>
    %236 = arith.addf %234, %235 : vector<1x128xf32>
    %237 = arith.addf %236, %90 : vector<1x128xf32>
    %238 = arith.negf %237 : vector<1x128xf32>
    %239 = math.exp %238 : vector<1x128xf32>
    %cst_92 = arith.constant 1.000000e+00 : f32
    %240 = vector.broadcast %cst_92 : f32 to vector<1x128xf32>
    %241 = arith.addf %240, %239 : vector<1x128xf32>
    %242 = arith.divf %240, %241 : vector<1x128xf32>
    %243 = math.tanh %237 : vector<1x128xf32>
    %244 = arith.select %96, %243, %242 : vector<1x128xi1>, vector<1x128xf32>
    %245 = vector.extract_strided_slice %244 {offsets = [0, 0], sizes = [1, 32], strides = [1, 1]} : vector<1x128xf32> to vector<1x32xf32>
    %246 = vector.extract_strided_slice %244 {offsets = [0, 32], sizes = [1, 32], strides = [1, 1]} : vector<1x128xf32> to vector<1x32xf32>
    %247 = vector.extract_strided_slice %244 {offsets = [0, 64], sizes = [1, 32], strides = [1, 1]} : vector<1x128xf32> to vector<1x32xf32>
    %248 = vector.extract_strided_slice %244 {offsets = [0, 96], sizes = [1, 32], strides = [1, 1]} : vector<1x128xf32> to vector<1x32xf32>
    %249 = arith.mulf %246, %212 : vector<1x32xf32>
    %250 = arith.mulf %245, %247 : vector<1x32xf32>
    %251 = arith.addf %249, %250 : vector<1x32xf32>
    %252 = math.tanh %251 : vector<1x32xf32>
    %253 = arith.mulf %248, %252 : vector<1x32xf32>
    %c4_93 = arith.constant 4 : index
    %c0_94 = arith.constant 0 : index
    %254 = vector.load %arg15[%c4_93, %c0_94] : memref<16x128xf32, #tpu.memory_space<vmem>>, vector<1x128xf32>
    %cst_95 = arith.constant dense<0.000000e+00> : vector<1x128xf32>
    %255 = tpu.matmul %233, %87, %cst_95 {dimension_numbers = #tpu.dot_dimension_numbers<[1], [0], [0], [1], [0, 0, 1, 1], [], []>} : vector<1x32xf32>, vector<32x128xf32>, vector<1x128xf32> -> vector<1x128xf32>
    %256 = arith.addf %254, %255 : vector<1x128xf32>
    %257 = arith.negf %256 : vector<1x128xf32>
    %258 = math.exp %257 : vector<1x128xf32>
    %cst_96 = arith.constant 1.000000e+00 : f32
    %259 = vector.broadcast %cst_96 : f32 to vector<1x128xf32>
    %260 = arith.addf %259, %258 : vector<1x128xf32>
    %261 = arith.divf %259, %260 : vector<1x128xf32>
    %262 = math.tanh %256 : vector<1x128xf32>
    %263 = arith.select %96, %262, %261 : vector<1x128xi1>, vector<1x128xf32>
    %264 = vector.extract_strided_slice %263 {offsets = [0, 0], sizes = [1, 32], strides = [1, 1]} : vector<1x128xf32> to vector<1x32xf32>
    %265 = vector.extract_strided_slice %263 {offsets = [0, 32], sizes = [1, 32], strides = [1, 1]} : vector<1x128xf32> to vector<1x32xf32>
    %266 = vector.extract_strided_slice %263 {offsets = [0, 64], sizes = [1, 32], strides = [1, 1]} : vector<1x128xf32> to vector<1x32xf32>
    %267 = vector.extract_strided_slice %263 {offsets = [0, 96], sizes = [1, 32], strides = [1, 1]} : vector<1x128xf32> to vector<1x32xf32>
    %268 = arith.mulf %265, %231 : vector<1x32xf32>
    %269 = arith.mulf %264, %266 : vector<1x32xf32>
    %270 = arith.addf %268, %269 : vector<1x32xf32>
    %271 = math.tanh %270 : vector<1x32xf32>
    %272 = arith.mulf %267, %271 : vector<1x32xf32>
    %cst_97 = arith.constant dense<0.000000e+00> : vector<1x128xf32>
    %273 = tpu.matmul %272, %88, %cst_97 {dimension_numbers = #tpu.dot_dimension_numbers<[1], [0], [0], [1], [0, 0, 1, 1], [], []>} : vector<1x32xf32>, vector<32x128xf32>, vector<1x128xf32> -> vector<1x128xf32>
    %cst_98 = arith.constant dense<0.000000e+00> : vector<1x128xf32>
    %274 = tpu.matmul %253, %89, %cst_98 {dimension_numbers = #tpu.dot_dimension_numbers<[1], [0], [0], [1], [0, 0, 1, 1], [], []>} : vector<1x32xf32>, vector<32x128xf32>, vector<1x128xf32> -> vector<1x128xf32>
    %275 = arith.addf %273, %274 : vector<1x128xf32>
    %276 = arith.addf %275, %90 : vector<1x128xf32>
    %277 = arith.negf %276 : vector<1x128xf32>
    %278 = math.exp %277 : vector<1x128xf32>
    %cst_99 = arith.constant 1.000000e+00 : f32
    %279 = vector.broadcast %cst_99 : f32 to vector<1x128xf32>
    %280 = arith.addf %279, %278 : vector<1x128xf32>
    %281 = arith.divf %279, %280 : vector<1x128xf32>
    %282 = math.tanh %276 : vector<1x128xf32>
    %283 = arith.select %96, %282, %281 : vector<1x128xi1>, vector<1x128xf32>
    %284 = vector.extract_strided_slice %283 {offsets = [0, 0], sizes = [1, 32], strides = [1, 1]} : vector<1x128xf32> to vector<1x32xf32>
    %285 = vector.extract_strided_slice %283 {offsets = [0, 32], sizes = [1, 32], strides = [1, 1]} : vector<1x128xf32> to vector<1x32xf32>
    %286 = vector.extract_strided_slice %283 {offsets = [0, 64], sizes = [1, 32], strides = [1, 1]} : vector<1x128xf32> to vector<1x32xf32>
    %287 = vector.extract_strided_slice %283 {offsets = [0, 96], sizes = [1, 32], strides = [1, 1]} : vector<1x128xf32> to vector<1x32xf32>
    %288 = arith.mulf %285, %251 : vector<1x32xf32>
    %289 = arith.mulf %284, %286 : vector<1x32xf32>
    %290 = arith.addf %288, %289 : vector<1x32xf32>
    %291 = math.tanh %290 : vector<1x32xf32>
    %292 = arith.mulf %287, %291 : vector<1x32xf32>
    %c5_100 = arith.constant 5 : index
    %c0_101 = arith.constant 0 : index
    %293 = vector.load %arg15[%c5_100, %c0_101] : memref<16x128xf32, #tpu.memory_space<vmem>>, vector<1x128xf32>
    %cst_102 = arith.constant dense<0.000000e+00> : vector<1x128xf32>
    %294 = tpu.matmul %272, %87, %cst_102 {dimension_numbers = #tpu.dot_dimension_numbers<[1], [0], [0], [1], [0, 0, 1, 1], [], []>} : vector<1x32xf32>, vector<32x128xf32>, vector<1x128xf32> -> vector<1x128xf32>
    %295 = arith.addf %293, %294 : vector<1x128xf32>
    %296 = arith.negf %295 : vector<1x128xf32>
    %297 = math.exp %296 : vector<1x128xf32>
    %cst_103 = arith.constant 1.000000e+00 : f32
    %298 = vector.broadcast %cst_103 : f32 to vector<1x128xf32>
    %299 = arith.addf %298, %297 : vector<1x128xf32>
    %300 = arith.divf %298, %299 : vector<1x128xf32>
    %301 = math.tanh %295 : vector<1x128xf32>
    %302 = arith.select %96, %301, %300 : vector<1x128xi1>, vector<1x128xf32>
    %303 = vector.extract_strided_slice %302 {offsets = [0, 0], sizes = [1, 32], strides = [1, 1]} : vector<1x128xf32> to vector<1x32xf32>
    %304 = vector.extract_strided_slice %302 {offsets = [0, 32], sizes = [1, 32], strides = [1, 1]} : vector<1x128xf32> to vector<1x32xf32>
    %305 = vector.extract_strided_slice %302 {offsets = [0, 64], sizes = [1, 32], strides = [1, 1]} : vector<1x128xf32> to vector<1x32xf32>
    %306 = vector.extract_strided_slice %302 {offsets = [0, 96], sizes = [1, 32], strides = [1, 1]} : vector<1x128xf32> to vector<1x32xf32>
    %307 = arith.mulf %304, %270 : vector<1x32xf32>
    %308 = arith.mulf %303, %305 : vector<1x32xf32>
    %309 = arith.addf %307, %308 : vector<1x32xf32>
    %310 = math.tanh %309 : vector<1x32xf32>
    %311 = arith.mulf %306, %310 : vector<1x32xf32>
    %cst_104 = arith.constant dense<0.000000e+00> : vector<1x128xf32>
    %312 = tpu.matmul %311, %88, %cst_104 {dimension_numbers = #tpu.dot_dimension_numbers<[1], [0], [0], [1], [0, 0, 1, 1], [], []>} : vector<1x32xf32>, vector<32x128xf32>, vector<1x128xf32> -> vector<1x128xf32>
    %cst_105 = arith.constant dense<0.000000e+00> : vector<1x128xf32>
    %313 = tpu.matmul %292, %89, %cst_105 {dimension_numbers = #tpu.dot_dimension_numbers<[1], [0], [0], [1], [0, 0, 1, 1], [], []>} : vector<1x32xf32>, vector<32x128xf32>, vector<1x128xf32> -> vector<1x128xf32>
    %314 = arith.addf %312, %313 : vector<1x128xf32>
    %315 = arith.addf %314, %90 : vector<1x128xf32>
    %316 = arith.negf %315 : vector<1x128xf32>
    %317 = math.exp %316 : vector<1x128xf32>
    %cst_106 = arith.constant 1.000000e+00 : f32
    %318 = vector.broadcast %cst_106 : f32 to vector<1x128xf32>
    %319 = arith.addf %318, %317 : vector<1x128xf32>
    %320 = arith.divf %318, %319 : vector<1x128xf32>
    %321 = math.tanh %315 : vector<1x128xf32>
    %322 = arith.select %96, %321, %320 : vector<1x128xi1>, vector<1x128xf32>
    %323 = vector.extract_strided_slice %322 {offsets = [0, 0], sizes = [1, 32], strides = [1, 1]} : vector<1x128xf32> to vector<1x32xf32>
    %324 = vector.extract_strided_slice %322 {offsets = [0, 32], sizes = [1, 32], strides = [1, 1]} : vector<1x128xf32> to vector<1x32xf32>
    %325 = vector.extract_strided_slice %322 {offsets = [0, 64], sizes = [1, 32], strides = [1, 1]} : vector<1x128xf32> to vector<1x32xf32>
    %326 = vector.extract_strided_slice %322 {offsets = [0, 96], sizes = [1, 32], strides = [1, 1]} : vector<1x128xf32> to vector<1x32xf32>
    %327 = arith.mulf %324, %290 : vector<1x32xf32>
    %328 = arith.mulf %323, %325 : vector<1x32xf32>
    %329 = arith.addf %327, %328 : vector<1x32xf32>
    %330 = math.tanh %329 : vector<1x32xf32>
    %331 = arith.mulf %326, %330 : vector<1x32xf32>
    %c6_107 = arith.constant 6 : index
    %c0_108 = arith.constant 0 : index
    %332 = vector.load %arg15[%c6_107, %c0_108] : memref<16x128xf32, #tpu.memory_space<vmem>>, vector<1x128xf32>
    %cst_109 = arith.constant dense<0.000000e+00> : vector<1x128xf32>
    %333 = tpu.matmul %311, %87, %cst_109 {dimension_numbers = #tpu.dot_dimension_numbers<[1], [0], [0], [1], [0, 0, 1, 1], [], []>} : vector<1x32xf32>, vector<32x128xf32>, vector<1x128xf32> -> vector<1x128xf32>
    %334 = arith.addf %332, %333 : vector<1x128xf32>
    %335 = arith.negf %334 : vector<1x128xf32>
    %336 = math.exp %335 : vector<1x128xf32>
    %cst_110 = arith.constant 1.000000e+00 : f32
    %337 = vector.broadcast %cst_110 : f32 to vector<1x128xf32>
    %338 = arith.addf %337, %336 : vector<1x128xf32>
    %339 = arith.divf %337, %338 : vector<1x128xf32>
    %340 = math.tanh %334 : vector<1x128xf32>
    %341 = arith.select %96, %340, %339 : vector<1x128xi1>, vector<1x128xf32>
    %342 = vector.extract_strided_slice %341 {offsets = [0, 0], sizes = [1, 32], strides = [1, 1]} : vector<1x128xf32> to vector<1x32xf32>
    %343 = vector.extract_strided_slice %341 {offsets = [0, 32], sizes = [1, 32], strides = [1, 1]} : vector<1x128xf32> to vector<1x32xf32>
    %344 = vector.extract_strided_slice %341 {offsets = [0, 64], sizes = [1, 32], strides = [1, 1]} : vector<1x128xf32> to vector<1x32xf32>
    %345 = vector.extract_strided_slice %341 {offsets = [0, 96], sizes = [1, 32], strides = [1, 1]} : vector<1x128xf32> to vector<1x32xf32>
    %346 = arith.mulf %343, %309 : vector<1x32xf32>
    %347 = arith.mulf %342, %344 : vector<1x32xf32>
    %348 = arith.addf %346, %347 : vector<1x32xf32>
    %349 = math.tanh %348 : vector<1x32xf32>
    %350 = arith.mulf %345, %349 : vector<1x32xf32>
    %cst_111 = arith.constant dense<0.000000e+00> : vector<1x128xf32>
    %351 = tpu.matmul %350, %88, %cst_111 {dimension_numbers = #tpu.dot_dimension_numbers<[1], [0], [0], [1], [0, 0, 1, 1], [], []>} : vector<1x32xf32>, vector<32x128xf32>, vector<1x128xf32> -> vector<1x128xf32>
    %cst_112 = arith.constant dense<0.000000e+00> : vector<1x128xf32>
    %352 = tpu.matmul %331, %89, %cst_112 {dimension_numbers = #tpu.dot_dimension_numbers<[1], [0], [0], [1], [0, 0, 1, 1], [], []>} : vector<1x32xf32>, vector<32x128xf32>, vector<1x128xf32> -> vector<1x128xf32>
    %353 = arith.addf %351, %352 : vector<1x128xf32>
    %354 = arith.addf %353, %90 : vector<1x128xf32>
    %355 = arith.negf %354 : vector<1x128xf32>
    %356 = math.exp %355 : vector<1x128xf32>
    %cst_113 = arith.constant 1.000000e+00 : f32
    %357 = vector.broadcast %cst_113 : f32 to vector<1x128xf32>
    %358 = arith.addf %357, %356 : vector<1x128xf32>
    %359 = arith.divf %357, %358 : vector<1x128xf32>
    %360 = math.tanh %354 : vector<1x128xf32>
    %361 = arith.select %96, %360, %359 : vector<1x128xi1>, vector<1x128xf32>
    %362 = vector.extract_strided_slice %361 {offsets = [0, 0], sizes = [1, 32], strides = [1, 1]} : vector<1x128xf32> to vector<1x32xf32>
    %363 = vector.extract_strided_slice %361 {offsets = [0, 32], sizes = [1, 32], strides = [1, 1]} : vector<1x128xf32> to vector<1x32xf32>
    %364 = vector.extract_strided_slice %361 {offsets = [0, 64], sizes = [1, 32], strides = [1, 1]} : vector<1x128xf32> to vector<1x32xf32>
    %365 = vector.extract_strided_slice %361 {offsets = [0, 96], sizes = [1, 32], strides = [1, 1]} : vector<1x128xf32> to vector<1x32xf32>
    %366 = arith.mulf %363, %329 : vector<1x32xf32>
    %367 = arith.mulf %362, %364 : vector<1x32xf32>
    %368 = arith.addf %366, %367 : vector<1x32xf32>
    %369 = math.tanh %368 : vector<1x32xf32>
    %370 = arith.mulf %365, %369 : vector<1x32xf32>
    %c7_114 = arith.constant 7 : index
    %c0_115 = arith.constant 0 : index
    %371 = vector.load %arg15[%c7_114, %c0_115] : memref<16x128xf32, #tpu.memory_space<vmem>>, vector<1x128xf32>
    %cst_116 = arith.constant dense<0.000000e+00> : vector<1x128xf32>
    %372 = tpu.matmul %350, %87, %cst_116 {dimension_numbers = #tpu.dot_dimension_numbers<[1], [0], [0], [1], [0, 0, 1, 1], [], []>} : vector<1x32xf32>, vector<32x128xf32>, vector<1x128xf32> -> vector<1x128xf32>
    %373 = arith.addf %371, %372 : vector<1x128xf32>
    %374 = arith.negf %373 : vector<1x128xf32>
    %375 = math.exp %374 : vector<1x128xf32>
    %cst_117 = arith.constant 1.000000e+00 : f32
    %376 = vector.broadcast %cst_117 : f32 to vector<1x128xf32>
    %377 = arith.addf %376, %375 : vector<1x128xf32>
    %378 = arith.divf %376, %377 : vector<1x128xf32>
    %379 = math.tanh %373 : vector<1x128xf32>
    %380 = arith.select %96, %379, %378 : vector<1x128xi1>, vector<1x128xf32>
    %381 = vector.extract_strided_slice %380 {offsets = [0, 0], sizes = [1, 32], strides = [1, 1]} : vector<1x128xf32> to vector<1x32xf32>
    %382 = vector.extract_strided_slice %380 {offsets = [0, 32], sizes = [1, 32], strides = [1, 1]} : vector<1x128xf32> to vector<1x32xf32>
    %383 = vector.extract_strided_slice %380 {offsets = [0, 64], sizes = [1, 32], strides = [1, 1]} : vector<1x128xf32> to vector<1x32xf32>
    %384 = vector.extract_strided_slice %380 {offsets = [0, 96], sizes = [1, 32], strides = [1, 1]} : vector<1x128xf32> to vector<1x32xf32>
    %385 = arith.mulf %382, %348 : vector<1x32xf32>
    %386 = arith.mulf %381, %383 : vector<1x32xf32>
    %387 = arith.addf %385, %386 : vector<1x32xf32>
    %388 = math.tanh %387 : vector<1x32xf32>
    %389 = arith.mulf %384, %388 : vector<1x32xf32>
    %cst_118 = arith.constant dense<0.000000e+00> : vector<1x128xf32>
    %390 = tpu.matmul %389, %88, %cst_118 {dimension_numbers = #tpu.dot_dimension_numbers<[1], [0], [0], [1], [0, 0, 1, 1], [], []>} : vector<1x32xf32>, vector<32x128xf32>, vector<1x128xf32> -> vector<1x128xf32>
    %cst_119 = arith.constant dense<0.000000e+00> : vector<1x128xf32>
    %391 = tpu.matmul %370, %89, %cst_119 {dimension_numbers = #tpu.dot_dimension_numbers<[1], [0], [0], [1], [0, 0, 1, 1], [], []>} : vector<1x32xf32>, vector<32x128xf32>, vector<1x128xf32> -> vector<1x128xf32>
    %392 = arith.addf %390, %391 : vector<1x128xf32>
    %393 = arith.addf %392, %90 : vector<1x128xf32>
    %394 = arith.negf %393 : vector<1x128xf32>
    %395 = math.exp %394 : vector<1x128xf32>
    %cst_120 = arith.constant 1.000000e+00 : f32
    %396 = vector.broadcast %cst_120 : f32 to vector<1x128xf32>
    %397 = arith.addf %396, %395 : vector<1x128xf32>
    %398 = arith.divf %396, %397 : vector<1x128xf32>
    %399 = math.tanh %393 : vector<1x128xf32>
    %400 = arith.select %96, %399, %398 : vector<1x128xi1>, vector<1x128xf32>
    %401 = vector.extract_strided_slice %400 {offsets = [0, 0], sizes = [1, 32], strides = [1, 1]} : vector<1x128xf32> to vector<1x32xf32>
    %402 = vector.extract_strided_slice %400 {offsets = [0, 32], sizes = [1, 32], strides = [1, 1]} : vector<1x128xf32> to vector<1x32xf32>
    %403 = vector.extract_strided_slice %400 {offsets = [0, 64], sizes = [1, 32], strides = [1, 1]} : vector<1x128xf32> to vector<1x32xf32>
    %404 = vector.extract_strided_slice %400 {offsets = [0, 96], sizes = [1, 32], strides = [1, 1]} : vector<1x128xf32> to vector<1x32xf32>
    %405 = arith.mulf %402, %368 : vector<1x32xf32>
    %406 = arith.mulf %401, %403 : vector<1x32xf32>
    %407 = arith.addf %405, %406 : vector<1x32xf32>
    %408 = math.tanh %407 : vector<1x32xf32>
    %409 = arith.mulf %404, %408 : vector<1x32xf32>
    %c8_121 = arith.constant 8 : index
    %c0_122 = arith.constant 0 : index
    %410 = vector.load %arg15[%c8_121, %c0_122] : memref<16x128xf32, #tpu.memory_space<vmem>>, vector<1x128xf32>
    %cst_123 = arith.constant dense<0.000000e+00> : vector<1x128xf32>
    %411 = tpu.matmul %389, %87, %cst_123 {dimension_numbers = #tpu.dot_dimension_numbers<[1], [0], [0], [1], [0, 0, 1, 1], [], []>} : vector<1x32xf32>, vector<32x128xf32>, vector<1x128xf32> -> vector<1x128xf32>
    %412 = arith.addf %410, %411 : vector<1x128xf32>
    %413 = arith.negf %412 : vector<1x128xf32>
    %414 = math.exp %413 : vector<1x128xf32>
    %cst_124 = arith.constant 1.000000e+00 : f32
    %415 = vector.broadcast %cst_124 : f32 to vector<1x128xf32>
    %416 = arith.addf %415, %414 : vector<1x128xf32>
    %417 = arith.divf %415, %416 : vector<1x128xf32>
    %418 = math.tanh %412 : vector<1x128xf32>
    %419 = arith.select %96, %418, %417 : vector<1x128xi1>, vector<1x128xf32>
    %420 = vector.extract_strided_slice %419 {offsets = [0, 0], sizes = [1, 32], strides = [1, 1]} : vector<1x128xf32> to vector<1x32xf32>
    %421 = vector.extract_strided_slice %419 {offsets = [0, 32], sizes = [1, 32], strides = [1, 1]} : vector<1x128xf32> to vector<1x32xf32>
    %422 = vector.extract_strided_slice %419 {offsets = [0, 64], sizes = [1, 32], strides = [1, 1]} : vector<1x128xf32> to vector<1x32xf32>
    %423 = vector.extract_strided_slice %419 {offsets = [0, 96], sizes = [1, 32], strides = [1, 1]} : vector<1x128xf32> to vector<1x32xf32>
    %424 = arith.mulf %421, %387 : vector<1x32xf32>
    %425 = arith.mulf %420, %422 : vector<1x32xf32>
    %426 = arith.addf %424, %425 : vector<1x32xf32>
    %427 = math.tanh %426 : vector<1x32xf32>
    %428 = arith.mulf %423, %427 : vector<1x32xf32>
    %cst_125 = arith.constant dense<0.000000e+00> : vector<1x128xf32>
    %429 = tpu.matmul %428, %88, %cst_125 {dimension_numbers = #tpu.dot_dimension_numbers<[1], [0], [0], [1], [0, 0, 1, 1], [], []>} : vector<1x32xf32>, vector<32x128xf32>, vector<1x128xf32> -> vector<1x128xf32>
    %cst_126 = arith.constant dense<0.000000e+00> : vector<1x128xf32>
    %430 = tpu.matmul %409, %89, %cst_126 {dimension_numbers = #tpu.dot_dimension_numbers<[1], [0], [0], [1], [0, 0, 1, 1], [], []>} : vector<1x32xf32>, vector<32x128xf32>, vector<1x128xf32> -> vector<1x128xf32>
    %431 = arith.addf %429, %430 : vector<1x128xf32>
    %432 = arith.addf %431, %90 : vector<1x128xf32>
    %433 = arith.negf %432 : vector<1x128xf32>
    %434 = math.exp %433 : vector<1x128xf32>
    %cst_127 = arith.constant 1.000000e+00 : f32
    %435 = vector.broadcast %cst_127 : f32 to vector<1x128xf32>
    %436 = arith.addf %435, %434 : vector<1x128xf32>
    %437 = arith.divf %435, %436 : vector<1x128xf32>
    %438 = math.tanh %432 : vector<1x128xf32>
    %439 = arith.select %96, %438, %437 : vector<1x128xi1>, vector<1x128xf32>
    %440 = vector.extract_strided_slice %439 {offsets = [0, 0], sizes = [1, 32], strides = [1, 1]} : vector<1x128xf32> to vector<1x32xf32>
    %441 = vector.extract_strided_slice %439 {offsets = [0, 32], sizes = [1, 32], strides = [1, 1]} : vector<1x128xf32> to vector<1x32xf32>
    %442 = vector.extract_strided_slice %439 {offsets = [0, 64], sizes = [1, 32], strides = [1, 1]} : vector<1x128xf32> to vector<1x32xf32>
    %443 = vector.extract_strided_slice %439 {offsets = [0, 96], sizes = [1, 32], strides = [1, 1]} : vector<1x128xf32> to vector<1x32xf32>
    %444 = arith.mulf %441, %407 : vector<1x32xf32>
    %445 = arith.mulf %440, %442 : vector<1x32xf32>
    %446 = arith.addf %444, %445 : vector<1x32xf32>
    %447 = math.tanh %446 : vector<1x32xf32>
    %448 = arith.mulf %443, %447 : vector<1x32xf32>
    %c0_128 = arith.constant 0 : index
    %c0_129 = arith.constant 0 : index
    %449 = vector.load %arg16[%c0_128, %c0_129] : memref<8x32xf32, #tpu.memory_space<vmem>>, vector<1x32xf32>
    tpu.vector_store %arg16[%c0_128, %c0_129], %448 {strides = array<i32>} : memref<8x32xf32, #tpu.memory_space<vmem>>, vector<1x32xf32>,
    %c9_130 = arith.constant 9 : index
    %c0_131 = arith.constant 0 : index
    %450 = vector.load %arg15[%c9_130, %c0_131] : memref<16x128xf32, #tpu.memory_space<vmem>>, vector<1x128xf32>
    %cst_132 = arith.constant dense<0.000000e+00> : vector<1x128xf32>
    %451 = tpu.matmul %428, %87, %cst_132 {dimension_numbers = #tpu.dot_dimension_numbers<[1], [0], [0], [1], [0, 0, 1, 1], [], []>} : vector<1x32xf32>, vector<32x128xf32>, vector<1x128xf32> -> vector<1x128xf32>
    %452 = arith.addf %450, %451 : vector<1x128xf32>
    %453 = arith.negf %452 : vector<1x128xf32>
    %454 = math.exp %453 : vector<1x128xf32>
    %cst_133 = arith.constant 1.000000e+00 : f32
    %455 = vector.broadcast %cst_133 : f32 to vector<1x128xf32>
    %456 = arith.addf %455, %454 : vector<1x128xf32>
    %457 = arith.divf %455, %456 : vector<1x128xf32>
    %458 = math.tanh %452 : vector<1x128xf32>
    %459 = arith.select %96, %458, %457 : vector<1x128xi1>, vector<1x128xf32>
    %460 = vector.extract_strided_slice %459 {offsets = [0, 0], sizes = [1, 32], strides = [1, 1]} : vector<1x128xf32> to vector<1x32xf32>
    %461 = vector.extract_strided_slice %459 {offsets = [0, 32], sizes = [1, 32], strides = [1, 1]} : vector<1x128xf32> to vector<1x32xf32>
    %462 = vector.extract_strided_slice %459 {offsets = [0, 64], sizes = [1, 32], strides = [1, 1]} : vector<1x128xf32> to vector<1x32xf32>
    %463 = vector.extract_strided_slice %459 {offsets = [0, 96], sizes = [1, 32], strides = [1, 1]} : vector<1x128xf32> to vector<1x32xf32>
    %464 = arith.mulf %461, %426 : vector<1x32xf32>
    %465 = arith.mulf %460, %462 : vector<1x32xf32>
    %466 = arith.addf %464, %465 : vector<1x32xf32>
    %467 = math.tanh %466 : vector<1x32xf32>
    %468 = arith.mulf %463, %467 : vector<1x32xf32>
    %cst_134 = arith.constant dense<0.000000e+00> : vector<1x128xf32>
    %469 = tpu.matmul %468, %88, %cst_134 {dimension_numbers = #tpu.dot_dimension_numbers<[1], [0], [0], [1], [0, 0, 1, 1], [], []>} : vector<1x32xf32>, vector<32x128xf32>, vector<1x128xf32> -> vector<1x128xf32>
    %cst_135 = arith.constant dense<0.000000e+00> : vector<1x128xf32>
    %470 = tpu.matmul %448, %89, %cst_135 {dimension_numbers = #tpu.dot_dimension_numbers<[1], [0], [0], [1], [0, 0, 1, 1], [], []>} : vector<1x32xf32>, vector<32x128xf32>, vector<1x128xf32> -> vector<1x128xf32>
    %471 = arith.addf %469, %470 : vector<1x128xf32>
    %472 = arith.addf %471, %90 : vector<1x128xf32>
    %473 = arith.negf %472 : vector<1x128xf32>
    %474 = math.exp %473 : vector<1x128xf32>
    %cst_136 = arith.constant 1.000000e+00 : f32
    %475 = vector.broadcast %cst_136 : f32 to vector<1x128xf32>
    %476 = arith.addf %475, %474 : vector<1x128xf32>
    %477 = arith.divf %475, %476 : vector<1x128xf32>
    %478 = math.tanh %472 : vector<1x128xf32>
    %479 = arith.select %96, %478, %477 : vector<1x128xi1>, vector<1x128xf32>
    %480 = vector.extract_strided_slice %479 {offsets = [0, 0], sizes = [1, 32], strides = [1, 1]} : vector<1x128xf32> to vector<1x32xf32>
    %481 = vector.extract_strided_slice %479 {offsets = [0, 32], sizes = [1, 32], strides = [1, 1]} : vector<1x128xf32> to vector<1x32xf32>
    %482 = vector.extract_strided_slice %479 {offsets = [0, 64], sizes = [1, 32], strides = [1, 1]} : vector<1x128xf32> to vector<1x32xf32>
    %483 = vector.extract_strided_slice %479 {offsets = [0, 96], sizes = [1, 32], strides = [1, 1]} : vector<1x128xf32> to vector<1x32xf32>
    %484 = arith.mulf %481, %446 : vector<1x32xf32>
    %485 = arith.mulf %480, %482 : vector<1x32xf32>
    %486 = arith.addf %484, %485 : vector<1x32xf32>
    %487 = math.tanh %486 : vector<1x32xf32>
    %488 = arith.mulf %483, %487 : vector<1x32xf32>
    %c1_137 = arith.constant 1 : index
    %c0_138 = arith.constant 0 : index
    %489 = vector.load %arg16[%c1_137, %c0_138] : memref<8x32xf32, #tpu.memory_space<vmem>>, vector<1x32xf32>
    tpu.vector_store %arg16[%c1_137, %c0_138], %488 {strides = array<i32>} : memref<8x32xf32, #tpu.memory_space<vmem>>, vector<1x32xf32>,
    %c10_139 = arith.constant 10 : index
    %c0_140 = arith.constant 0 : index
    %490 = vector.load %arg15[%c10_139, %c0_140] : memref<16x128xf32, #tpu.memory_space<vmem>>, vector<1x128xf32>
    %cst_141 = arith.constant dense<0.000000e+00> : vector<1x128xf32>
    %491 = tpu.matmul %468, %87, %cst_141 {dimension_numbers = #tpu.dot_dimension_numbers<[1], [0], [0], [1], [0, 0, 1, 1], [], []>} : vector<1x32xf32>, vector<32x128xf32>, vector<1x128xf32> -> vector<1x128xf32>
    %492 = arith.addf %490, %491 : vector<1x128xf32>
    %493 = arith.negf %492 : vector<1x128xf32>
    %494 = math.exp %493 : vector<1x128xf32>
    %cst_142 = arith.constant 1.000000e+00 : f32
    %495 = vector.broadcast %cst_142 : f32 to vector<1x128xf32>
    %496 = arith.addf %495, %494 : vector<1x128xf32>
    %497 = arith.divf %495, %496 : vector<1x128xf32>
    %498 = math.tanh %492 : vector<1x128xf32>
    %499 = arith.select %96, %498, %497 : vector<1x128xi1>, vector<1x128xf32>
    %500 = vector.extract_strided_slice %499 {offsets = [0, 0], sizes = [1, 32], strides = [1, 1]} : vector<1x128xf32> to vector<1x32xf32>
    %501 = vector.extract_strided_slice %499 {offsets = [0, 32], sizes = [1, 32], strides = [1, 1]} : vector<1x128xf32> to vector<1x32xf32>
    %502 = vector.extract_strided_slice %499 {offsets = [0, 64], sizes = [1, 32], strides = [1, 1]} : vector<1x128xf32> to vector<1x32xf32>
    %503 = vector.extract_strided_slice %499 {offsets = [0, 96], sizes = [1, 32], strides = [1, 1]} : vector<1x128xf32> to vector<1x32xf32>
    %504 = arith.mulf %501, %466 : vector<1x32xf32>
    %505 = arith.mulf %500, %502 : vector<1x32xf32>
    %506 = arith.addf %504, %505 : vector<1x32xf32>
    %507 = math.tanh %506 : vector<1x32xf32>
    %508 = arith.mulf %503, %507 : vector<1x32xf32>
    %cst_143 = arith.constant dense<0.000000e+00> : vector<1x128xf32>
    %509 = tpu.matmul %508, %88, %cst_143 {dimension_numbers = #tpu.dot_dimension_numbers<[1], [0], [0], [1], [0, 0, 1, 1], [], []>} : vector<1x32xf32>, vector<32x128xf32>, vector<1x128xf32> -> vector<1x128xf32>
    %cst_144 = arith.constant dense<0.000000e+00> : vector<1x128xf32>
    %510 = tpu.matmul %488, %89, %cst_144 {dimension_numbers = #tpu.dot_dimension_numbers<[1], [0], [0], [1], [0, 0, 1, 1], [], []>} : vector<1x32xf32>, vector<32x128xf32>, vector<1x128xf32> -> vector<1x128xf32>
    %511 = arith.addf %509, %510 : vector<1x128xf32>
    %512 = arith.addf %511, %90 : vector<1x128xf32>
    %513 = arith.negf %512 : vector<1x128xf32>
    %514 = math.exp %513 : vector<1x128xf32>
    %cst_145 = arith.constant 1.000000e+00 : f32
    %515 = vector.broadcast %cst_145 : f32 to vector<1x128xf32>
    %516 = arith.addf %515, %514 : vector<1x128xf32>
    %517 = arith.divf %515, %516 : vector<1x128xf32>
    %518 = math.tanh %512 : vector<1x128xf32>
    %519 = arith.select %96, %518, %517 : vector<1x128xi1>, vector<1x128xf32>
    %520 = vector.extract_strided_slice %519 {offsets = [0, 0], sizes = [1, 32], strides = [1, 1]} : vector<1x128xf32> to vector<1x32xf32>
    %521 = vector.extract_strided_slice %519 {offsets = [0, 32], sizes = [1, 32], strides = [1, 1]} : vector<1x128xf32> to vector<1x32xf32>
    %522 = vector.extract_strided_slice %519 {offsets = [0, 64], sizes = [1, 32], strides = [1, 1]} : vector<1x128xf32> to vector<1x32xf32>
    %523 = vector.extract_strided_slice %519 {offsets = [0, 96], sizes = [1, 32], strides = [1, 1]} : vector<1x128xf32> to vector<1x32xf32>
    %524 = arith.mulf %521, %486 : vector<1x32xf32>
    %525 = arith.mulf %520, %522 : vector<1x32xf32>
    %526 = arith.addf %524, %525 : vector<1x32xf32>
    %527 = math.tanh %526 : vector<1x32xf32>
    %528 = arith.mulf %523, %527 : vector<1x32xf32>
    %c2_146 = arith.constant 2 : index
    %c0_147 = arith.constant 0 : index
    %529 = vector.load %arg16[%c2_146, %c0_147] : memref<8x32xf32, #tpu.memory_space<vmem>>, vector<1x32xf32>
    tpu.vector_store %arg16[%c2_146, %c0_147], %528 {strides = array<i32>} : memref<8x32xf32, #tpu.memory_space<vmem>>, vector<1x32xf32>,
    %c11_148 = arith.constant 11 : index
    %c0_149 = arith.constant 0 : index
    %530 = vector.load %arg15[%c11_148, %c0_149] : memref<16x128xf32, #tpu.memory_space<vmem>>, vector<1x128xf32>
    %cst_150 = arith.constant dense<0.000000e+00> : vector<1x128xf32>
    %531 = tpu.matmul %508, %87, %cst_150 {dimension_numbers = #tpu.dot_dimension_numbers<[1], [0], [0], [1], [0, 0, 1, 1], [], []>} : vector<1x32xf32>, vector<32x128xf32>, vector<1x128xf32> -> vector<1x128xf32>
    %532 = arith.addf %530, %531 : vector<1x128xf32>
    %533 = arith.negf %532 : vector<1x128xf32>
    %534 = math.exp %533 : vector<1x128xf32>
    %cst_151 = arith.constant 1.000000e+00 : f32
    %535 = vector.broadcast %cst_151 : f32 to vector<1x128xf32>
    %536 = arith.addf %535, %534 : vector<1x128xf32>
    %537 = arith.divf %535, %536 : vector<1x128xf32>
    %538 = math.tanh %532 : vector<1x128xf32>
    %539 = arith.select %96, %538, %537 : vector<1x128xi1>, vector<1x128xf32>
    %540 = vector.extract_strided_slice %539 {offsets = [0, 0], sizes = [1, 32], strides = [1, 1]} : vector<1x128xf32> to vector<1x32xf32>
    %541 = vector.extract_strided_slice %539 {offsets = [0, 32], sizes = [1, 32], strides = [1, 1]} : vector<1x128xf32> to vector<1x32xf32>
    %542 = vector.extract_strided_slice %539 {offsets = [0, 64], sizes = [1, 32], strides = [1, 1]} : vector<1x128xf32> to vector<1x32xf32>
    %543 = vector.extract_strided_slice %539 {offsets = [0, 96], sizes = [1, 32], strides = [1, 1]} : vector<1x128xf32> to vector<1x32xf32>
    %544 = arith.mulf %541, %506 : vector<1x32xf32>
    %545 = arith.mulf %540, %542 : vector<1x32xf32>
    %546 = arith.addf %544, %545 : vector<1x32xf32>
    %547 = math.tanh %546 : vector<1x32xf32>
    %548 = arith.mulf %543, %547 : vector<1x32xf32>
    %cst_152 = arith.constant dense<0.000000e+00> : vector<1x128xf32>
    %549 = tpu.matmul %548, %88, %cst_152 {dimension_numbers = #tpu.dot_dimension_numbers<[1], [0], [0], [1], [0, 0, 1, 1], [], []>} : vector<1x32xf32>, vector<32x128xf32>, vector<1x128xf32> -> vector<1x128xf32>
    %cst_153 = arith.constant dense<0.000000e+00> : vector<1x128xf32>
    %550 = tpu.matmul %528, %89, %cst_153 {dimension_numbers = #tpu.dot_dimension_numbers<[1], [0], [0], [1], [0, 0, 1, 1], [], []>} : vector<1x32xf32>, vector<32x128xf32>, vector<1x128xf32> -> vector<1x128xf32>
    %551 = arith.addf %549, %550 : vector<1x128xf32>
    %552 = arith.addf %551, %90 : vector<1x128xf32>
    %553 = arith.negf %552 : vector<1x128xf32>
    %554 = math.exp %553 : vector<1x128xf32>
    %cst_154 = arith.constant 1.000000e+00 : f32
    %555 = vector.broadcast %cst_154 : f32 to vector<1x128xf32>
    %556 = arith.addf %555, %554 : vector<1x128xf32>
    %557 = arith.divf %555, %556 : vector<1x128xf32>
    %558 = math.tanh %552 : vector<1x128xf32>
    %559 = arith.select %96, %558, %557 : vector<1x128xi1>, vector<1x128xf32>
    %560 = vector.extract_strided_slice %559 {offsets = [0, 0], sizes = [1, 32], strides = [1, 1]} : vector<1x128xf32> to vector<1x32xf32>
    %561 = vector.extract_strided_slice %559 {offsets = [0, 32], sizes = [1, 32], strides = [1, 1]} : vector<1x128xf32> to vector<1x32xf32>
    %562 = vector.extract_strided_slice %559 {offsets = [0, 64], sizes = [1, 32], strides = [1, 1]} : vector<1x128xf32> to vector<1x32xf32>
    %563 = vector.extract_strided_slice %559 {offsets = [0, 96], sizes = [1, 32], strides = [1, 1]} : vector<1x128xf32> to vector<1x32xf32>
    %564 = arith.mulf %561, %526 : vector<1x32xf32>
    %565 = arith.mulf %560, %562 : vector<1x32xf32>
    %566 = arith.addf %564, %565 : vector<1x32xf32>
    %567 = math.tanh %566 : vector<1x32xf32>
    %568 = arith.mulf %563, %567 : vector<1x32xf32>
    %c3_155 = arith.constant 3 : index
    %c0_156 = arith.constant 0 : index
    %569 = vector.load %arg16[%c3_155, %c0_156] : memref<8x32xf32, #tpu.memory_space<vmem>>, vector<1x32xf32>
    tpu.vector_store %arg16[%c3_155, %c0_156], %568 {strides = array<i32>} : memref<8x32xf32, #tpu.memory_space<vmem>>, vector<1x32xf32>,
    %c12_157 = arith.constant 12 : index
    %c0_158 = arith.constant 0 : index
    %570 = vector.load %arg15[%c12_157, %c0_158] : memref<16x128xf32, #tpu.memory_space<vmem>>, vector<1x128xf32>
    %cst_159 = arith.constant dense<0.000000e+00> : vector<1x128xf32>
    %571 = tpu.matmul %548, %87, %cst_159 {dimension_numbers = #tpu.dot_dimension_numbers<[1], [0], [0], [1], [0, 0, 1, 1], [], []>} : vector<1x32xf32>, vector<32x128xf32>, vector<1x128xf32> -> vector<1x128xf32>
    %572 = arith.addf %570, %571 : vector<1x128xf32>
    %573 = arith.negf %572 : vector<1x128xf32>
    %574 = math.exp %573 : vector<1x128xf32>
    %cst_160 = arith.constant 1.000000e+00 : f32
    %575 = vector.broadcast %cst_160 : f32 to vector<1x128xf32>
    %576 = arith.addf %575, %574 : vector<1x128xf32>
    %577 = arith.divf %575, %576 : vector<1x128xf32>
    %578 = math.tanh %572 : vector<1x128xf32>
    %579 = arith.select %96, %578, %577 : vector<1x128xi1>, vector<1x128xf32>
    %580 = vector.extract_strided_slice %579 {offsets = [0, 0], sizes = [1, 32], strides = [1, 1]} : vector<1x128xf32> to vector<1x32xf32>
    %581 = vector.extract_strided_slice %579 {offsets = [0, 32], sizes = [1, 32], strides = [1, 1]} : vector<1x128xf32> to vector<1x32xf32>
    %582 = vector.extract_strided_slice %579 {offsets = [0, 64], sizes = [1, 32], strides = [1, 1]} : vector<1x128xf32> to vector<1x32xf32>
    %583 = vector.extract_strided_slice %579 {offsets = [0, 96], sizes = [1, 32], strides = [1, 1]} : vector<1x128xf32> to vector<1x32xf32>
    %584 = arith.mulf %581, %546 : vector<1x32xf32>
    %585 = arith.mulf %580, %582 : vector<1x32xf32>
    %586 = arith.addf %584, %585 : vector<1x32xf32>
    %587 = math.tanh %586 : vector<1x32xf32>
    %588 = arith.mulf %583, %587 : vector<1x32xf32>
    %cst_161 = arith.constant dense<0.000000e+00> : vector<1x128xf32>
    %589 = tpu.matmul %588, %88, %cst_161 {dimension_numbers = #tpu.dot_dimension_numbers<[1], [0], [0], [1], [0, 0, 1, 1], [], []>} : vector<1x32xf32>, vector<32x128xf32>, vector<1x128xf32> -> vector<1x128xf32>
    %cst_162 = arith.constant dense<0.000000e+00> : vector<1x128xf32>
    %590 = tpu.matmul %568, %89, %cst_162 {dimension_numbers = #tpu.dot_dimension_numbers<[1], [0], [0], [1], [0, 0, 1, 1], [], []>} : vector<1x32xf32>, vector<32x128xf32>, vector<1x128xf32> -> vector<1x128xf32>
    %591 = arith.addf %589, %590 : vector<1x128xf32>
    %592 = arith.addf %591, %90 : vector<1x128xf32>
    %593 = arith.negf %592 : vector<1x128xf32>
    %594 = math.exp %593 : vector<1x128xf32>
    %cst_163 = arith.constant 1.000000e+00 : f32
    %595 = vector.broadcast %cst_163 : f32 to vector<1x128xf32>
    %596 = arith.addf %595, %594 : vector<1x128xf32>
    %597 = arith.divf %595, %596 : vector<1x128xf32>
    %598 = math.tanh %592 : vector<1x128xf32>
    %599 = arith.select %96, %598, %597 : vector<1x128xi1>, vector<1x128xf32>
    %600 = vector.extract_strided_slice %599 {offsets = [0, 0], sizes = [1, 32], strides = [1, 1]} : vector<1x128xf32> to vector<1x32xf32>
    %601 = vector.extract_strided_slice %599 {offsets = [0, 32], sizes = [1, 32], strides = [1, 1]} : vector<1x128xf32> to vector<1x32xf32>
    %602 = vector.extract_strided_slice %599 {offsets = [0, 64], sizes = [1, 32], strides = [1, 1]} : vector<1x128xf32> to vector<1x32xf32>
    %603 = vector.extract_strided_slice %599 {offsets = [0, 96], sizes = [1, 32], strides = [1, 1]} : vector<1x128xf32> to vector<1x32xf32>
    %604 = arith.mulf %601, %566 : vector<1x32xf32>
    %605 = arith.mulf %600, %602 : vector<1x32xf32>
    %606 = arith.addf %604, %605 : vector<1x32xf32>
    %607 = math.tanh %606 : vector<1x32xf32>
    %608 = arith.mulf %603, %607 : vector<1x32xf32>
    %c4_164 = arith.constant 4 : index
    %c0_165 = arith.constant 0 : index
    %609 = vector.load %arg16[%c4_164, %c0_165] : memref<8x32xf32, #tpu.memory_space<vmem>>, vector<1x32xf32>
    tpu.vector_store %arg16[%c4_164, %c0_165], %608 {strides = array<i32>} : memref<8x32xf32, #tpu.memory_space<vmem>>, vector<1x32xf32>,
    %c13_166 = arith.constant 13 : index
    %c0_167 = arith.constant 0 : index
    %610 = vector.load %arg15[%c13_166, %c0_167] : memref<16x128xf32, #tpu.memory_space<vmem>>, vector<1x128xf32>
    %cst_168 = arith.constant dense<0.000000e+00> : vector<1x128xf32>
    %611 = tpu.matmul %588, %87, %cst_168 {dimension_numbers = #tpu.dot_dimension_numbers<[1], [0], [0], [1], [0, 0, 1, 1], [], []>} : vector<1x32xf32>, vector<32x128xf32>, vector<1x128xf32> -> vector<1x128xf32>
    %612 = arith.addf %610, %611 : vector<1x128xf32>
    %613 = arith.negf %612 : vector<1x128xf32>
    %614 = math.exp %613 : vector<1x128xf32>
    %cst_169 = arith.constant 1.000000e+00 : f32
    %615 = vector.broadcast %cst_169 : f32 to vector<1x128xf32>
    %616 = arith.addf %615, %614 : vector<1x128xf32>
    %617 = arith.divf %615, %616 : vector<1x128xf32>
    %618 = math.tanh %612 : vector<1x128xf32>
    %619 = arith.select %96, %618, %617 : vector<1x128xi1>, vector<1x128xf32>
    %620 = vector.extract_strided_slice %619 {offsets = [0, 0], sizes = [1, 32], strides = [1, 1]} : vector<1x128xf32> to vector<1x32xf32>
    %621 = vector.extract_strided_slice %619 {offsets = [0, 32], sizes = [1, 32], strides = [1, 1]} : vector<1x128xf32> to vector<1x32xf32>
    %622 = vector.extract_strided_slice %619 {offsets = [0, 64], sizes = [1, 32], strides = [1, 1]} : vector<1x128xf32> to vector<1x32xf32>
    %623 = vector.extract_strided_slice %619 {offsets = [0, 96], sizes = [1, 32], strides = [1, 1]} : vector<1x128xf32> to vector<1x32xf32>
    %624 = arith.mulf %621, %586 : vector<1x32xf32>
    %625 = arith.mulf %620, %622 : vector<1x32xf32>
    %626 = arith.addf %624, %625 : vector<1x32xf32>
    %627 = math.tanh %626 : vector<1x32xf32>
    %628 = arith.mulf %623, %627 : vector<1x32xf32>
    %cst_170 = arith.constant dense<0.000000e+00> : vector<1x128xf32>
    %629 = tpu.matmul %628, %88, %cst_170 {dimension_numbers = #tpu.dot_dimension_numbers<[1], [0], [0], [1], [0, 0, 1, 1], [], []>} : vector<1x32xf32>, vector<32x128xf32>, vector<1x128xf32> -> vector<1x128xf32>
    %cst_171 = arith.constant dense<0.000000e+00> : vector<1x128xf32>
    %630 = tpu.matmul %608, %89, %cst_171 {dimension_numbers = #tpu.dot_dimension_numbers<[1], [0], [0], [1], [0, 0, 1, 1], [], []>} : vector<1x32xf32>, vector<32x128xf32>, vector<1x128xf32> -> vector<1x128xf32>
    %631 = arith.addf %629, %630 : vector<1x128xf32>
    %632 = arith.addf %631, %90 : vector<1x128xf32>
    %633 = arith.negf %632 : vector<1x128xf32>
    %634 = math.exp %633 : vector<1x128xf32>
    %cst_172 = arith.constant 1.000000e+00 : f32
    %635 = vector.broadcast %cst_172 : f32 to vector<1x128xf32>
    %636 = arith.addf %635, %634 : vector<1x128xf32>
    %637 = arith.divf %635, %636 : vector<1x128xf32>
    %638 = math.tanh %632 : vector<1x128xf32>
    %639 = arith.select %96, %638, %637 : vector<1x128xi1>, vector<1x128xf32>
    %640 = vector.extract_strided_slice %639 {offsets = [0, 0], sizes = [1, 32], strides = [1, 1]} : vector<1x128xf32> to vector<1x32xf32>
    %641 = vector.extract_strided_slice %639 {offsets = [0, 32], sizes = [1, 32], strides = [1, 1]} : vector<1x128xf32> to vector<1x32xf32>
    %642 = vector.extract_strided_slice %639 {offsets = [0, 64], sizes = [1, 32], strides = [1, 1]} : vector<1x128xf32> to vector<1x32xf32>
    %643 = vector.extract_strided_slice %639 {offsets = [0, 96], sizes = [1, 32], strides = [1, 1]} : vector<1x128xf32> to vector<1x32xf32>
    %644 = arith.mulf %641, %606 : vector<1x32xf32>
    %645 = arith.mulf %640, %642 : vector<1x32xf32>
    %646 = arith.addf %644, %645 : vector<1x32xf32>
    %647 = math.tanh %646 : vector<1x32xf32>
    %648 = arith.mulf %643, %647 : vector<1x32xf32>
    %c5_173 = arith.constant 5 : index
    %c0_174 = arith.constant 0 : index
    %649 = vector.load %arg16[%c5_173, %c0_174] : memref<8x32xf32, #tpu.memory_space<vmem>>, vector<1x32xf32>
    tpu.vector_store %arg16[%c5_173, %c0_174], %648 {strides = array<i32>} : memref<8x32xf32, #tpu.memory_space<vmem>>, vector<1x32xf32>,
    %c14_175 = arith.constant 14 : index
    %c0_176 = arith.constant 0 : index
    %650 = vector.load %arg15[%c14_175, %c0_176] : memref<16x128xf32, #tpu.memory_space<vmem>>, vector<1x128xf32>
    %cst_177 = arith.constant dense<0.000000e+00> : vector<1x128xf32>
    %651 = tpu.matmul %628, %87, %cst_177 {dimension_numbers = #tpu.dot_dimension_numbers<[1], [0], [0], [1], [0, 0, 1, 1], [], []>} : vector<1x32xf32>, vector<32x128xf32>, vector<1x128xf32> -> vector<1x128xf32>
    %652 = arith.addf %650, %651 : vector<1x128xf32>
    %653 = arith.negf %652 : vector<1x128xf32>
    %654 = math.exp %653 : vector<1x128xf32>
    %cst_178 = arith.constant 1.000000e+00 : f32
    %655 = vector.broadcast %cst_178 : f32 to vector<1x128xf32>
    %656 = arith.addf %655, %654 : vector<1x128xf32>
    %657 = arith.divf %655, %656 : vector<1x128xf32>
    %658 = math.tanh %652 : vector<1x128xf32>
    %659 = arith.select %96, %658, %657 : vector<1x128xi1>, vector<1x128xf32>
    %660 = vector.extract_strided_slice %659 {offsets = [0, 0], sizes = [1, 32], strides = [1, 1]} : vector<1x128xf32> to vector<1x32xf32>
    %661 = vector.extract_strided_slice %659 {offsets = [0, 32], sizes = [1, 32], strides = [1, 1]} : vector<1x128xf32> to vector<1x32xf32>
    %662 = vector.extract_strided_slice %659 {offsets = [0, 64], sizes = [1, 32], strides = [1, 1]} : vector<1x128xf32> to vector<1x32xf32>
    %663 = vector.extract_strided_slice %659 {offsets = [0, 96], sizes = [1, 32], strides = [1, 1]} : vector<1x128xf32> to vector<1x32xf32>
    %664 = arith.mulf %661, %626 : vector<1x32xf32>
    %665 = arith.mulf %660, %662 : vector<1x32xf32>
    %666 = arith.addf %664, %665 : vector<1x32xf32>
    %667 = math.tanh %666 : vector<1x32xf32>
    %668 = arith.mulf %663, %667 : vector<1x32xf32>
    %cst_179 = arith.constant dense<0.000000e+00> : vector<1x128xf32>
    %669 = tpu.matmul %668, %88, %cst_179 {dimension_numbers = #tpu.dot_dimension_numbers<[1], [0], [0], [1], [0, 0, 1, 1], [], []>} : vector<1x32xf32>, vector<32x128xf32>, vector<1x128xf32> -> vector<1x128xf32>
    %cst_180 = arith.constant dense<0.000000e+00> : vector<1x128xf32>
    %670 = tpu.matmul %648, %89, %cst_180 {dimension_numbers = #tpu.dot_dimension_numbers<[1], [0], [0], [1], [0, 0, 1, 1], [], []>} : vector<1x32xf32>, vector<32x128xf32>, vector<1x128xf32> -> vector<1x128xf32>
    %671 = arith.addf %669, %670 : vector<1x128xf32>
    %672 = arith.addf %671, %90 : vector<1x128xf32>
    %673 = arith.negf %672 : vector<1x128xf32>
    %674 = math.exp %673 : vector<1x128xf32>
    %cst_181 = arith.constant 1.000000e+00 : f32
    %675 = vector.broadcast %cst_181 : f32 to vector<1x128xf32>
    %676 = arith.addf %675, %674 : vector<1x128xf32>
    %677 = arith.divf %675, %676 : vector<1x128xf32>
    %678 = math.tanh %672 : vector<1x128xf32>
    %679 = arith.select %96, %678, %677 : vector<1x128xi1>, vector<1x128xf32>
    %680 = vector.extract_strided_slice %679 {offsets = [0, 0], sizes = [1, 32], strides = [1, 1]} : vector<1x128xf32> to vector<1x32xf32>
    %681 = vector.extract_strided_slice %679 {offsets = [0, 32], sizes = [1, 32], strides = [1, 1]} : vector<1x128xf32> to vector<1x32xf32>
    %682 = vector.extract_strided_slice %679 {offsets = [0, 64], sizes = [1, 32], strides = [1, 1]} : vector<1x128xf32> to vector<1x32xf32>
    %683 = vector.extract_strided_slice %679 {offsets = [0, 96], sizes = [1, 32], strides = [1, 1]} : vector<1x128xf32> to vector<1x32xf32>
    %684 = arith.mulf %681, %646 : vector<1x32xf32>
    %685 = arith.mulf %680, %682 : vector<1x32xf32>
    %686 = arith.addf %684, %685 : vector<1x32xf32>
    %687 = math.tanh %686 : vector<1x32xf32>
    %688 = arith.mulf %683, %687 : vector<1x32xf32>
    %c6_182 = arith.constant 6 : index
    %c0_183 = arith.constant 0 : index
    %689 = vector.load %arg16[%c6_182, %c0_183] : memref<8x32xf32, #tpu.memory_space<vmem>>, vector<1x32xf32>
    tpu.vector_store %arg16[%c6_182, %c0_183], %688 {strides = array<i32>} : memref<8x32xf32, #tpu.memory_space<vmem>>, vector<1x32xf32>,
    %c15_184 = arith.constant 15 : index
    %c0_185 = arith.constant 0 : index
    %690 = vector.load %arg15[%c15_184, %c0_185] : memref<16x128xf32, #tpu.memory_space<vmem>>, vector<1x128xf32>
    %cst_186 = arith.constant dense<0.000000e+00> : vector<1x128xf32>
    %691 = tpu.matmul %668, %87, %cst_186 {dimension_numbers = #tpu.dot_dimension_numbers<[1], [0], [0], [1], [0, 0, 1, 1], [], []>} : vector<1x32xf32>, vector<32x128xf32>, vector<1x128xf32> -> vector<1x128xf32>
    %692 = arith.addf %690, %691 : vector<1x128xf32>
    %693 = arith.negf %692 : vector<1x128xf32>
    %694 = math.exp %693 : vector<1x128xf32>
    %cst_187 = arith.constant 1.000000e+00 : f32
    %695 = vector.broadcast %cst_187 : f32 to vector<1x128xf32>
    %696 = arith.addf %695, %694 : vector<1x128xf32>
    %697 = arith.divf %695, %696 : vector<1x128xf32>
    %698 = math.tanh %692 : vector<1x128xf32>
    %699 = arith.select %96, %698, %697 : vector<1x128xi1>, vector<1x128xf32>
    %700 = vector.extract_strided_slice %699 {offsets = [0, 0], sizes = [1, 32], strides = [1, 1]} : vector<1x128xf32> to vector<1x32xf32>
    %701 = vector.extract_strided_slice %699 {offsets = [0, 32], sizes = [1, 32], strides = [1, 1]} : vector<1x128xf32> to vector<1x32xf32>
    %702 = vector.extract_strided_slice %699 {offsets = [0, 64], sizes = [1, 32], strides = [1, 1]} : vector<1x128xf32> to vector<1x32xf32>
    %703 = vector.extract_strided_slice %699 {offsets = [0, 96], sizes = [1, 32], strides = [1, 1]} : vector<1x128xf32> to vector<1x32xf32>
    %704 = arith.mulf %701, %666 : vector<1x32xf32>
    %705 = arith.mulf %700, %702 : vector<1x32xf32>
    %706 = arith.addf %704, %705 : vector<1x32xf32>
    %707 = math.tanh %706 : vector<1x32xf32>
    %708 = arith.mulf %703, %707 : vector<1x32xf32>
    %cst_188 = arith.constant dense<0.000000e+00> : vector<1x128xf32>
    %709 = tpu.matmul %708, %88, %cst_188 {dimension_numbers = #tpu.dot_dimension_numbers<[1], [0], [0], [1], [0, 0, 1, 1], [], []>} : vector<1x32xf32>, vector<32x128xf32>, vector<1x128xf32> -> vector<1x128xf32>
    %cst_189 = arith.constant dense<0.000000e+00> : vector<1x128xf32>
    %710 = tpu.matmul %688, %89, %cst_189 {dimension_numbers = #tpu.dot_dimension_numbers<[1], [0], [0], [1], [0, 0, 1, 1], [], []>} : vector<1x32xf32>, vector<32x128xf32>, vector<1x128xf32> -> vector<1x128xf32>
    %711 = arith.addf %709, %710 : vector<1x128xf32>
    %712 = arith.addf %711, %90 : vector<1x128xf32>
    %713 = arith.negf %712 : vector<1x128xf32>
    %714 = math.exp %713 : vector<1x128xf32>
    %cst_190 = arith.constant 1.000000e+00 : f32
    %715 = vector.broadcast %cst_190 : f32 to vector<1x128xf32>
    %716 = arith.addf %715, %714 : vector<1x128xf32>
    %717 = arith.divf %715, %716 : vector<1x128xf32>
    %718 = math.tanh %712 : vector<1x128xf32>
    %719 = arith.select %96, %718, %717 : vector<1x128xi1>, vector<1x128xf32>
    %720 = vector.extract_strided_slice %719 {offsets = [0, 0], sizes = [1, 32], strides = [1, 1]} : vector<1x128xf32> to vector<1x32xf32>
    %721 = vector.extract_strided_slice %719 {offsets = [0, 32], sizes = [1, 32], strides = [1, 1]} : vector<1x128xf32> to vector<1x32xf32>
    %722 = vector.extract_strided_slice %719 {offsets = [0, 64], sizes = [1, 32], strides = [1, 1]} : vector<1x128xf32> to vector<1x32xf32>
    %723 = vector.extract_strided_slice %719 {offsets = [0, 96], sizes = [1, 32], strides = [1, 1]} : vector<1x128xf32> to vector<1x32xf32>
    %724 = arith.mulf %721, %686 : vector<1x32xf32>
    %725 = arith.mulf %720, %722 : vector<1x32xf32>
    %726 = arith.addf %724, %725 : vector<1x32xf32>
    %727 = math.tanh %726 : vector<1x32xf32>
    %728 = arith.mulf %723, %727 : vector<1x32xf32>
    %c7_191 = arith.constant 7 : index
    %c0_192 = arith.constant 0 : index
    %729 = vector.load %arg16[%c7_191, %c0_192] : memref<8x32xf32, #tpu.memory_space<vmem>>, vector<1x32xf32>
    tpu.vector_store %arg16[%c7_191, %c0_192], %728 {strides = array<i32>} : memref<8x32xf32, #tpu.memory_space<vmem>>, vector<1x32xf32>,
    %c0_193 = arith.constant 0 : index
    %c0_194 = arith.constant 0 : index
    %730 = vector.load %arg16[%c0_193, %c0_194] : memref<8x32xf32, #tpu.memory_space<vmem>>, vector<8x32xf32>
    %c0_195 = arith.constant 0 : index
    %c0_196 = arith.constant 0 : index
    %731 = vector.load %arg11[%c0_195, %c0_196] : memref<32x128xf32, #tpu.memory_space<vmem>>, vector<32x128xf32>
    %cst_197 = arith.constant dense<0.000000e+00> : vector<8x128xf32>
    %732 = tpu.matmul %730, %731, %cst_197 {dimension_numbers = #tpu.dot_dimension_numbers<[1], [0], [0], [1], [0, 0, 1, 1], [], []>} : vector<8x32xf32>, vector<32x128xf32>, vector<8x128xf32> -> vector<8x128xf32>
    %c0_198 = arith.constant 0 : index
    %c0_199 = arith.constant 0 : index
    %733 = vector.load %arg12[%c0_198, %c0_199] : memref<1x128xf32, #tpu.memory_space<vmem>>, vector<1x128xf32>
    %734 = vector.broadcast %733 : vector<1x128xf32> to vector<8x128xf32>
    %735 = arith.addf %732, %734 : vector<8x128xf32>
    %c0_200 = arith.constant 0 : index
    %c0_201 = arith.constant 0 : index
    %c0_202 = arith.constant 0 : index
    %736 = vector.load %arg13[%c0_200, %c0_201, %c0_202] : memref<1x8x128xf32, #tpu.memory_space<vmem>>, vector<1x8x128xf32>
    %737 = vector.shape_cast %736 : vector<1x8x128xf32> to vector<8x128xf32>
    %738 = vector.shape_cast %735 : vector<8x128xf32> to vector<1x8x128xf32>
    tpu.vector_store %arg13[%c0_200, %c0_201, %c0_202], %738 {strides = array<i32>} : memref<1x8x128xf32, #tpu.memory_space<vmem>>, vector<1x8x128xf32>,
    return
  }
  func.func @transform_0(%arg0: i32) -> (i32, i32) {
    %c0_i32 = arith.constant 0 : i32
    %c0_i32_0 = arith.constant 0 : i32
    %c0_i32_1 = arith.constant 0 : i32
    return %c0_i32, %c0_i32_0 : i32, i32
  }
  func.func @transform_1(%arg0: i32) -> (i32, i32) {
    %c0_i32 = arith.constant 0 : i32
    %c0_i32_0 = arith.constant 0 : i32
    %c0_i32_1 = arith.constant 0 : i32
    return %c0_i32, %c0_i32_0 : i32, i32
  }
  func.func @transform_2(%arg0: i32) -> (i32, i32) {
    %c0_i32 = arith.constant 0 : i32
    %c0_i32_0 = arith.constant 0 : i32
    %c0_i32_1 = arith.constant 0 : i32
    return %c0_i32, %c0_i32_0 : i32, i32
  }
  func.func @transform_3(%arg0: i32) -> (i32, i32) {
    %c0_i32 = arith.constant 0 : i32
    %c0_i32_0 = arith.constant 0 : i32
    %c0_i32_1 = arith.constant 0 : i32
    return %c0_i32, %c0_i32_0 : i32, i32
  }
  func.func @transform_4(%arg0: i32) -> (i32, i32) {
    %c0_i32 = arith.constant 0 : i32
    %c0_i32_0 = arith.constant 0 : i32
    %c0_i32_1 = arith.constant 0 : i32
    return %c0_i32, %c0_i32_0 : i32, i32
  }
  func.func @transform_5(%arg0: i32) -> (i32, i32) {
    %c0_i32 = arith.constant 0 : i32
    %c0_i32_0 = arith.constant 0 : i32
    %c0_i32_1 = arith.constant 0 : i32
    return %c0_i32, %c0_i32_0 : i32, i32
  }
  func.func @transform_6(%arg0: i32) -> (i32, i32) {
    %c0_i32 = arith.constant 0 : i32
    %c0_i32_0 = arith.constant 0 : i32
    %c0_i32_1 = arith.constant 0 : i32
    return %c0_i32, %c0_i32_0 : i32, i32
  }
  func.func @transform_7(%arg0: i32) -> (i32, i32) {
    %c0_i32 = arith.constant 0 : i32
    %c0_i32_0 = arith.constant 0 : i32
    %c0_i32_1 = arith.constant 0 : i32
    return %c0_i32, %c0_i32_0 : i32, i32
  }
  func.func @transform_8(%arg0: i32) -> (i32, i32) {
    %c0_i32 = arith.constant 0 : i32
    %c0_i32_0 = arith.constant 0 : i32
    %c0_i32_1 = arith.constant 0 : i32
    return %c0_i32, %c0_i32_0 : i32, i32
  }
  func.func @transform_9(%arg0: i32) -> (i32, i32) {
    %c0_i32 = arith.constant 0 : i32
    %c0_i32_0 = arith.constant 0 : i32
    %c0_i32_1 = arith.constant 0 : i32
    return %c0_i32, %c0_i32_0 : i32, i32
  }
  func.func @transform_10(%arg0: i32) -> (i32, i32) {
    %c0_i32 = arith.constant 0 : i32
    %c0_i32_0 = arith.constant 0 : i32
    %c0_i32_1 = arith.constant 0 : i32
    return %c0_i32, %c0_i32_0 : i32, i32
  }
  func.func @transform_11(%arg0: i32) -> (i32, i32) {
    %c0_i32 = arith.constant 0 : i32
    %c0_i32_0 = arith.constant 0 : i32
    %c0_i32_1 = arith.constant 0 : i32
    return %c0_i32, %c0_i32_0 : i32, i32
  }
  func.func @transform_12(%arg0: i32) -> (i32, i32, i32) {
    %c0_i32 = arith.constant 0 : i32
    %c0_i32_0 = arith.constant 0 : i32
    %c0_i32_1 = arith.constant 0 : i32
    return %arg0, %c0_i32, %c0_i32_0 : i32, i32, i32
  }
}

</mosaic_0001>

<bundles_post_ra>
// kernel: tpu_custom_call.1
= control target key start
LH: loop header
LB: loop body
LE: loop exit
PB: predicated region body
PF: predicated region fallthrough
CT: control target
= control target key end

     0   :  { %s5138_s0 = inlined_call_operand.hbm [shape: s32[2,8], index: 0, kind: input, shape index: {}]   ;;  %s5139_s1 = inlined_call_operand.hbm [shape: s32[2,8], index: 1, kind: input, shape index: {}]   ;;  %s5140_s2 = inlined_call_operand.hbm [shape: f32[11,32], index: 2, kind: input, shape index: {}]   ;;  %s5141_s3 = inlined_call_operand.hbm [shape: f32[13,32], index: 3, kind: input, shape index: {}]   ;;  %s5142_s4 = inlined_call_operand.hbm [shape: f32[32,128], index: 4, kind: input, shape index: {}]   ;;  %s5143_s5 = inlined_call_operand.hbm [shape: f32[32,128], index: 5, kind: input, shape index: {}]   ;;  %s5144_s6 = inlined_call_operand.vmem [shape: f32[1,128], index: 6, kind: input, shape index: {}]   ;;  %s5145_s7 = inlined_call_operand.hbm [shape: f32[32,128], index: 7, kind: input, shape index: {}]   ;;  %s5146_s8 = inlined_call_operand.hbm [shape: f32[32,128], index: 8, kind: input, shape index: {}]   ;;  %s5147_s9 = inlined_call_operand.vmem [shape: f32[1,128], index: 9, kind: input, shape index: {}]   ;;  %s5148_s10 = inlined_call_operand.hbm [shape: f32[32,128], index: 10, kind: input, shape index: {}]   ;;  %s5149_s11 = inlined_call_operand.vmem [shape: f32[1,128], index: 11, kind: input, shape index: {}]   ;;  %s5150_s12 = inlined_call_operand.hbm [shape: f32[2,8,128], index: 12, kind: output, shape index: {}]  }
   0x1   :  { %5164 = sst [smem:[#allocation34_spill]] %s5138_s0 }
   0x2   :  { %5165 = sst [smem:[#allocation35_spill]] %s5139_s1 }
   0x3   :  { %5166 = sst [smem:[#allocation36_spill]] %s5140_s2 }
   0x4   :  { %5167 = sst [smem:[#allocation37_spill]] %s5141_s3 }
   0x5   :  { %5168 = sst [smem:[#allocation38_spill]] %s5143_s5 }
   0x6   :  { %17 = vsyncpa [#allocation8], 0 }
   0x7   :  { %18 = vsyncpa [#allocation10], 0 }
   0x8   :  { %19 = vsyncpa [#allocation6], 0 }
   0x9   :  { %20 = vsyncpa [#allocation13], 0 }
   0xa   :  { %21 = vsyncpa [#allocation16], 0 }
   0xb   :  { %22 = vsyncpa [#allocation19], 0 }
   0xc   :  { %23 = vsyncpa [#allocation7], 0 }
   0xd   :  { %25 = vsyncpa [#allocation7 + $0x1], 0  ;;  %s4206_s21 = smov 0   ;;  %s4208_s22 = smov 0  }
   0xe   :  { %s4210_s23 = smov 0   ;;  %s4212_s24 = smov 0  }
   0xf LB: > { %5169 = sst [smem:[#allocation29_spill]] %s4113_s21  ;;  %s4227_s25 = sadd.s32 4294967295, %s4125_s24   ;;  %s4125_s24 = sphi %s4212_s24, %s5192_s24   ;;  %s4121_s23 = sphi %s4210_s23, %s5194_s23   ;;  %s4117_s22 = sphi %s4208_s22, %s5196_s22   ;;  %s4113_s21 = sphi %s4206_s21, %s5195_s21  }
  0x10   : > { %5170 = sst [smem:[#allocation30_spill]] %s4121_s23  ;;  %s3272_s26 = sadd.s32 4294967294, %s4125_s24  }
  0x11   : > { %s4231_s27 = sadd.s32 1, %s4125_s24   ;;  %s290_s28 = sadd.s32 1, %s4121_s23 }
  0x12   : > { %5171 = sst [smem:[#allocation31_spill]] %s4231_s27  ;;  %s287_s29 = ssub.s32 %s4125_s24, %s4231_s27 }
  0x13   : > { %p300_p0 = scmp.ne.s32.totalorder %s4121_s23, %s4117_s22  ;;  %p288_p1 = scmp.eq.s32.totalorder %s287_s29, 0 }
  0x14   : > { %p301_p2 = scmp.eq.s32.totalorder %s4227_s25, 1  ;;  %p306_p3 = scmp.ne.s32.totalorder %s4117_s22, %s4113_s21 }
  0x15   : > { %p307_p4 = scmp.eq.s32.totalorder %s3272_s26, 1  ;;  %p3273_p7 = scmp.ge.s32.totalorder %s4125_s24, 1 }
  0x16   : > { %s4242_s30 = scalar_select %p288_p1, %s4121_s23, %s290_s28  }
  0x17   : > { %p4244_p5 = por %p301_p2, %p300_p0  ;;  %p4248_p6 = por %p307_p4, %p306_p3 }
  0x18   : > { %5172 = sst [smem:[#allocation32_spill]] %s4242_s30  ;;  %p314_p8 = scmp.lt.s32.totalorder %s4125_s24, 3 }
  0x19   : > { %s5174_s14 = scalar_select %p4248_p6, 1, 0 }
  0x1a   : > { %p3450_p9 = scmp.eq.s32.totalorder %s4227_s25, 0  ;;  %p4255_p10 = pnand %p3273_p7, %p314_p8 }
  0x1b   : > { %5175 = sst [smem:[#allocation33_spill]] %s5174_s14  ;;  %s4127_s29 = smov [#allocation12]  }
  0x1c   : > { %s5177_s3 = sld [smem:[#allocation37_spill]]  ;;  %p3418_p11 = pneg %p4255_p10 }
  0x1d   : > { %s5178_s5 = sld [smem:[#allocation38_spill]]  ;;  %s361_s30 = sshll.u32 %s4127_s29, 4  ;;  %s362_s30 = int_to_ptr.vmem [resolvable:$true] %s361_s30 }
  0x1e   : > { %p4269_p12 = pnand %p3450_p9, %p3418_p11  ;;  %s5156_s16 = smov 128  }
  0x1f   : > { %s4129_s17 = smov 8   ;;  %s4130_s19 = smov [#allocation15]  }
  0x20   : > { %s389_s20 = sshll.u32 %s4130_s19, 4  ;;  %s418_s23 = sshll.u32 %s5146_s8, 4  ;;  %s390_s20 = int_to_ptr.vmem [resolvable:$true] %s389_s20  ;;  %s419_s23 = int_to_ptr.hbm [resolvable:$true] %s418_s23 }
  0x21   : > { %s5180_s0 = sld [smem:[#allocation34_spill]]  ;;  %s4131_s21 = smov [#allocation18]  }
  0x22   : > { %s359_s18 = sshll.u32 %s5177_s3, 4  ;;  %s4132_s3 = smov [#allocation5]   ;;  %s360_s18 = int_to_ptr.hbm [resolvable:$true] %s359_s18 }
  0x23   : > { %s387_s26 = sshll.u32 %s5178_s5, 4  ;;  %s5181_s1 = sld [smem:[#allocation35_spill]]  ;;  %s388_s26 = int_to_ptr.hbm [resolvable:$true] %s387_s26 }
  0x24   : > { %3430 = dma.hbm_to_vmem [thread:$0]  (!%p4269_p12), %s360_s18, 256, %s362_s30, [#allocation13], %s5156_s16, %s5156_s16, %s4129_s17  }
  0x25   : > { %3436 = dma.hbm_to_vmem [thread:$0]  (!%p4269_p12), %s388_s26, 512, %s390_s20, [#allocation16], %s5156_s16, %s5156_s16, %s4129_s17  }
  0x26   : > { %s420_s30 = sshll.u32 %s4131_s21, 4  ;;  %s5182_s2 = sld [smem:[#allocation36_spill]]  ;;  %s421_s30 = int_to_ptr.vmem [resolvable:$true] %s420_s30 }
  0x27   : > { %s326_s14 = sshll.u32 %s5180_s0, 4  ;;  %s4133_s20 = smov [#allocation9]   ;;  %s327_s14 = int_to_ptr.hbm [resolvable:$true] %s326_s14 }
  0x28   : > { %3442 = dma.hbm_to_vmem [thread:$0]  (!%p4269_p12), %s419_s23, 512, %s421_s30, [#allocation19], %s5156_s16, %s5156_s16, %s4129_s17  }
  0x29   : > { %3421 = dma.hbm_to_smem (!%p4269_p12), %s327_s14, 32, %s4132_s3, [#allocation8]  }
  0x2a   : > { %s336_s26 = sshll.u32 %s5181_s1, 4  ;;  %s4134_s29 = smov [#allocation11]   ;;  %s337_s26 = int_to_ptr.hbm [resolvable:$true] %s336_s26 }
  0x2b   : > { %3424 = dma.hbm_to_smem (!%p4269_p12), %s337_s26, 32, %s4133_s20, [#allocation10]  }
  0x2c   : > { %s345_s21 = sshll.u32 %s5182_s2, 4  ;;  %s347_s23 = sshll.u32 %s4134_s29, 4  ;;  %s346_s21 = int_to_ptr.hbm [resolvable:$true] %s345_s21  ;;  %s348_s23 = int_to_ptr.vmem [resolvable:$true] %s347_s23 }
  0x2d   : > { %s373_s14 = sshll.u32 %s5142_s4, 4  ;;  %s5183_s3 = smov 128   ;;  %s374_s14 = int_to_ptr.hbm [resolvable:$true] %s373_s14 }
  0x2e   : > { %3427 = dma.hbm_to_vmem [thread:$0]  (!%p4269_p12), %s346_s21, 256, %s348_s23, [#allocation6], %s5183_s3, %s5183_s3, %s4129_s17  }
  0x2f   : > { %s404_s26 = sshll.u32 %s5145_s7, 4  ;;  %s4135_s27 = smov [#allocation14]   ;;  %s405_s26 = int_to_ptr.hbm [resolvable:$true] %s404_s26 }
  0x30   : > { %s375_s19 = sshll.u32 %s4135_s27, 4  ;;  %s4136_s16 = smov [#allocation17]   ;;  %s376_s19 = int_to_ptr.vmem [resolvable:$true] %s375_s19 }
  0x31   : > { %3433 = dma.hbm_to_vmem [thread:$0]  (!%p4269_p12), %s374_s14, 512, %s376_s19, [#allocation13], %s5183_s3, %s5183_s3, %s4129_s17  }
  0x32   : > { %s406_s20 = sshll.u32 %s4136_s16, 4  ;;  %s435_s21 = sshll.u32 %s5148_s10, 4  ;;  %s407_s20 = int_to_ptr.vmem [resolvable:$true] %s406_s20  ;;  %s436_s21 = int_to_ptr.hbm [resolvable:$true] %s435_s21 }
  0x33   : > { %3439 = dma.hbm_to_vmem [thread:$0]  (!%p4269_p12), %s405_s26, 512, %s407_s20, [#allocation16], %s5183_s3, %s5183_s3, %s4129_s17  }
  0x34   : > { %s4137_s23 = smov [#allocation20]   ;;  %456 = sbr.rel (%p4255_p10) target bundleno = 10540 (0x292c), region = 68 }
  0x35   : > { %s437_s5 = sshll.u32 %s4137_s23, 4  ;;  %s438_s5 = int_to_ptr.vmem [resolvable:$true] %s437_s5 }
  0x36   : > { %3445 = dma.hbm_to_vmem [thread:$0]  (!%p4269_p12), %s436_s21, 512, %s438_s5, [#allocation19], %s5183_s3, %s5183_s3, %s4129_s17  }
  0x39   : > { %4084 = dma.done.wait (%p3450_p9), [#allocation8], 32  }
  0x3a   : > { %4086 = vsyncadd (%p3450_p9), [#allocation8], 4294967264 }
  0x3b   : > { %4088 = dma.done.wait (%p3450_p9), [#allocation10], 32  }
  0x3c   : > { %4090 = vsyncadd (%p3450_p9), [#allocation10], 4294967264 }
  0x3d   : > { %4092 = dma.done.wait (%p3450_p9), [#allocation6], 256  }
  0x3e   : > { %4094 = vsyncadd (%p3450_p9), [#allocation6], 4294967040 }
  0x3f   : > { %4096 = dma.done.wait (%p3450_p9), [#allocation13], 768  }
  0x40   : > { %4098 = vsyncadd (%p3450_p9), [#allocation13], 4294966528 }
  0x41   : > { %4100 = dma.done.wait (%p3450_p9), [#allocation16], 1024  }
  0x42   : > { %4102 = vsyncadd (%p3450_p9), [#allocation16], 4294966272 }
  0x43   : > { %4104 = dma.done.wait (%p3450_p9), [#allocation19], 1024  }
  0x44   : > { %4106 = vsyncadd (%p3450_p9), [#allocation19], 4294966272 }
  0x45   : > { %503 = sfence }
  0x46   : > { %v613_v0 = vld [vmem:[#allocation14 + $0x18] sm:$0xff]  ;;  %v612_v1 = vld [vmem:[#allocation14 + $0x10] sm:$0xff]  ;;  %s4360_s15 = sshll.u32 %s4227_s25, 7  ;;  %v611_v4 = vld [vmem:[#allocation14 + $0x8] sm:$0xff]  ;;  %vm539_vm0 = vcmask 253952   ;;  %v4138_v10 = vmov 0.0   ;;  %v663_v27 = vlaneseq }
  0x47   : > { %637 = vmatpush.msra.mxu0 %v613_v0  ;;  %s536_s28 = sld [smem:[#allocation5 + %s4360_s15]]  ;;  %s541_s17 = sadd.s32 1, %s4360_s15  ;;  %v4364_v2 = vld [vmem:[#allocation15 + $0x18] sm:$0xff]  ;;  %v4366_v3 = vld [vmem:[#allocation15 + $0x10] sm:$0xff]  ;;  %v4377_v5 = vld [vmem:[#allocation15 + $0x8] sm:$0xff]  ;;  %vm618_vm1 = vcmask 261120  }
  0x48   : > { %s542_s14 = sld [smem:[#allocation5 + %s541_s17]]  ;;  %s546_s3 = sadd.s32 2, %s4360_s15  ;;  %684 = vmatpush.msra.mxu1 %v4364_v2  ;;  %v610_v6 = vld [vmem:[#allocation14] sm:$0xff]  ;;  %v4432_v18 = vld [vmem:[%s5144_s6] ss:$0 sm:$0xff]  ;;  %v664_v29 = vand.u32 127, %v663_v27 }
  0x49   : > { %638 = vmatpush.msra.mxu0 %v612_v1  ;;  %s4374_s18 = sld [smem:[#allocation5 + %s546_s3]]  ;;  %s551_s26 = sadd.s32 3, %s4360_s15  ;;  %v4390_v7 = vld [vmem:[#allocation15] sm:$0xff]  ;;  %v4447_v48 = vld [vmem:[#allocation18 + $0x18] sm:$0xff]  ;;  %v4451_v50 = vld [vmem:[#allocation18 + $0x10] sm:$0xff] }
  0x4a   : > { %s4381_s27 = sld [smem:[#allocation5 + %s551_s26]]  ;;  %s5159_s19 = sadd.s32 4, %s4360_s15  ;;  %685 = vmatpush.msra.mxu1 %v4366_v3  ;;  %vm665_vm2 = vcmp.ge.s32.totalorder %v664_v29, 64  ;;  %vm666_vm3 = vcmp.lt.s32.totalorder %v664_v29, 96  ;;  %v4449_v49 = vld [vmem:[#allocation17 + $0x18] sm:$0xff]  ;;  %743 = vmatpush.msra.mxu2 %v4447_v48  ;;  %v4455_v51 = vld [vmem:[#allocation17 + $0x10] sm:$0xff] }
  0x4b   : > { %639 = vmatpush.msra.mxu0 %v611_v4  ;;  %s4387_s16 = sld [smem:[#allocation5 + %s5159_s19]]  ;;  %s5158_s20 = sadd.s32 5, %s4360_s15  ;;  %vm4435_vm5 = vmand %vm665_vm2, %vm666_vm3  ;;  %768 = vmatpush.msra.mxu3 %v4449_v49  ;;  %v4457_v52 = vld [vmem:[#allocation18 + $0x8] sm:$0xff]  ;;  %v4465_v54 = vld [vmem:[#allocation18] sm:$0xff] }
  0x4c   : > { %s4394_s29 = sld [smem:[#allocation5 + %s5158_s20]]  ;;  %s566_s30 = sadd.s32 6, %s4360_s15  ;;  %686 = vmatpush.msra.mxu1 %v4377_v5  ;;  %v4459_v53 = vld [vmem:[#allocation17 + $0x8] sm:$0xff]  ;;  %744 = vmatpush.msra.mxu2 %v4451_v50  ;;  %v4467_v55 = vld [vmem:[#allocation17] sm:$0xff]  ;;  %v4506_v0 = vld [vmem:[%s5147_s9] sm:$0x1] }
  0x4d   : > { %640 = vmatpush.msra.mxu0 %v610_v6  ;;  %s4400_s21 = sld [smem:[#allocation5 + %s566_s30]]  ;;  %s537_s23 = scalar_lea.vmem [#allocation11], %s536_s28  ;;  %769 = vmatpush.msra.mxu3 %v4455_v51  ;;  %v3073_v35 = vld [vmem:[#allocation20 + $0x18] sm:$0xff] }
  0x4e   : > { %v538_v8 = vld [vmem:[%s537_s23] sm:$0x1]  ;;  %s571_s5 = sadd.s32 7, %s4360_s15  ;;  %687 = vmatpush.msra.mxu1 %v4390_v7  ;;  %s543_s20 = scalar_lea.vmem [#allocation11], %s542_s14  ;;  %745 = vmatpush.msra.mxu2 %v4457_v52 }
  0x4f   : > { %977 = vmatpush.msrb.mxu0 %v4364_v2  ;;  %540 = vst.msk [vmem:[#allocation2] sm:$0x1] %vm539_vm0, %v538_v8  ;;  %v544_v9 = vld [vmem:[%s543_s20] sm:$0x1]  ;;  %s572_s19 = sld [smem:[#allocation5 + %s571_s5]]  ;;  %688 = vmatmul.f32.vlgmr.msra.gmra.mxu1 %v4138_v10  ;;  %s548_s28 = scalar_lea.vmem [#allocation11], %s4374_s18 }
  0x50   : > { %545 = vst.msk [vmem:[#allocation2 + $0x1] sm:$0x1] %vm539_vm0, %v544_v9  ;;  %v549_v11 = vld [vmem:[%s548_s28] sm:$0x1]  ;;  %828 = vmatpush.msrb.mxu1 %v4364_v2  ;;  %s553_s23 = scalar_lea.vmem [#allocation11], %s4381_s27  ;;  %770 = vmatpush.msra.mxu3 %v4459_v53  ;;  %s5187_s28 = sadd.s32 5, %s4360_s15 }
  0x51   : > { %978 = vmatpush.msrb.mxu0 %v4366_v3  ;;  %550 = vst.msk [vmem:[#allocation2 + $0x2] sm:$0x1] %vm539_vm0, %v549_v11  ;;  %v554_v12 = vld [vmem:[%s553_s23] sm:$0x1]  ;;  %s558_s14 = scalar_lea.vmem [#allocation11], %s4387_s16  ;;  %746 = vmatpush.msra.mxu2 %v4465_v54  ;;  %s5186_s16 = sadd.s32 4, %s4360_s15 }
  0x52   : > { %555 = vst.msk [vmem:[#allocation2 + $0x3] sm:$0x1] %vm539_vm0, %v554_v12  ;;  %v559_v13 = vld [vmem:[%s558_s14] sm:$0x1]  ;;  %829 = vmatpush.msrb.mxu1 %v4366_v3  ;;  %s563_s18 = scalar_lea.vmem [#allocation11], %s4394_s29  ;;  %771 = vmatpush.msra.mxu3 %v4467_v55  ;;  %s576_s14 = sld [smem:[#allocation9 + %s4360_s15]] }
  0x53   : > { %979 = vmatpush.msrb.mxu0 %v4377_v5  ;;  %560 = vst.msk [vmem:[#allocation2 + $0x4] sm:$0x1] %vm539_vm0, %v559_v13  ;;  %v564_v14 = vld [vmem:[%s563_s18] sm:$0x1]  ;;  %s568_s20 = scalar_lea.vmem [#allocation11], %s4400_s21  ;;  %s5162_s21 = smov 32   ;;  %747 = vmatmul.f32.vlgmr.msra.gmra.mxu2 %v4138_v10 }
  0x54   : > { %565 = vst.msk [vmem:[#allocation2 + $0x5] sm:$0x1] %vm539_vm0, %v564_v14  ;;  %v569_v15 = vld [vmem:[%s568_s20] sm:$0x1]  ;;  %830 = vmatpush.msrb.mxu1 %v4377_v5  ;;  %917 = vmatpush.msrb.mxu3 %v4449_v49  ;;  %s580_s18 = sld [smem:[#allocation9 + %s541_s17]] }
  0x55   : > { %980 = vmatpush.msrb.mxu0 %v4390_v7  ;;  %570 = vst.msk [vmem:[#allocation2 + $0x6] sm:$0x1] %vm539_vm0, %v569_v15  ;;  %s573_s27 = scalar_lea.vmem [#allocation11], %s572_s19  ;;  %s5160_s19 = smov 64   ;;  %892 = vmatpush.msrb.mxu2 %v4447_v48 }
  0x56   : > { %v574_v16 = vld [vmem:[%s573_s27] sm:$0x1]  ;;  %831 = vmatpush.msrb.mxu1 %v4390_v7  ;;  %918 = vmatpush.msrb.mxu3 %v4455_v51  ;;  %s584_s20 = sld [smem:[#allocation9 + %s546_s3]] }
  0x57   : > { %575 = vst.msk [vmem:[#allocation2 + $0x7] sm:$0x1] %vm539_vm0, %v574_v16  ;;  %893 = vmatpush.msrb.mxu2 %v4451_v50  ;;  %s588_s27 = sld [smem:[#allocation9 + %s551_s26]] }
  0x58   : > { %1041 = vmatpush.msra.mxu1 %v4447_v48  ;;  %919 = vmatpush.msrb.mxu3 %v4459_v53  ;;  %s592_s29 = sld [smem:[#allocation9 + %s5186_s16]]  ;;  %s577_s1 = scalar_lea.vmem [#allocation12], %s576_s14 }
  0x59   : > { %894 = vmatpush.msrb.mxu2 %v4457_v52  ;;  %s596_s23 = sld [smem:[#allocation9 + %s5187_s28]]  ;;  %s532_s14 = sand.u32 1, %s4117_s22  }
  0x5a   : > { %1042 = vmatpush.msra.mxu1 %v4451_v50  ;;  %920 = vmatpush.msrb.mxu3 %v4467_v55  ;;  %s604_s0 = sld [smem:[#allocation9 + %s571_s5]]  ;;  %s581_s2 = scalar_lea.vmem [#allocation12], %s580_s18 }
  0x5b   : > { %895 = vmatpush.msrb.mxu2 %v4465_v54  ;;  %s3293_s18 = sshll.u32 %s532_s14, 3 }
  0x5c   : > { %1043 = vmatpush.msra.mxu1 %v4457_v52 }
  0x5d   : > { %1066 = vmatpush.msra.mxu2 %v4449_v49  ;;  %s589_s17 = scalar_lea.vmem [#allocation12], %s588_s27 }
  0x5e   : > { %v608_v17 = vld [vmem:[#allocation2] sm:$0xff]  ;;  %1044 = vmatpush.msra.mxu1 %v4465_v54  ;;  %s593_s3 = scalar_lea.vmem [#allocation12], %s592_s29 }
  0x5f   : > { %3295 = vmatmul.msk.f32.vlgmr.msra.gmra.mxu0 %vm618_vm1, %v608_v17  ;;  %1067 = vmatpush.msra.mxu2 %v4455_v51  ;;  %s597_s26 = scalar_lea.vmem [#allocation12], %s596_s23 }
  0x60   : > { %1190 = vmatpush.msra.mxu0 %v4447_v48 }
  0x61   : > { %1068 = vmatpush.msra.mxu2 %v4459_v53 }
  0x62   : > { %1191 = vmatpush.msra.mxu0 %v4451_v50 }
  0x63   : > { %1069 = vmatpush.msra.mxu2 %v4467_v55 }
  0x64   : > { %1192 = vmatpush.msra.mxu0 %v4457_v52 }
  0x66   : > { %1193 = vmatpush.msra.mxu0 %v4465_v54 }
  0xcc   : > { %v689_v21 = vpop.f32.mrf.mxu1 }
  0xd6   : > { %v748_v63 = vpop.f32.mrf.mxu2 }
  0xdc   : > { %v642_v19 = vpop.f32.mrf.mxu0 }
  0xdd   : > { %v643_v20 = vadd.f32 %v4432_v18, %v642_v19 }
  0xdf   : > { %648 = vst [vmem:[#allocation3] sm:$0xff] %v643_v20 }
  0xe6   : > { %v668_v22 = vld [vmem:[#allocation3] sm:$0x1]  ;;  %v815_v59 = vld [vmem:[#allocation3 + $0x1] sm:$0x1] }
  0xe7   : > { %v692_v23 = vadd.f32 %v689_v21, %v668_v22 }
  0xe9   : > { %v3297_v24 = vmul.f32 -1.442695, %v692_v23 }
  0xeb   : > { %3517 = vpow2.f32 %v3297_v24 }
  0xf1   : > { %v3518_v25 = vpop.eup %3517 }
  0xf2   : > { %v696_v26 = vadd.f32 1.0, %v3518_v25 }
  0xf4   : > { %3519 = vrcp.f32 %v696_v26  ;;  %v708_v32 = vand.u32 2147483648, %v696_v26  ;;  %v706_v34 = vand.u32 2147483647, %v696_v26  ;;  %vm702_vm6 = vweird.f32 %v696_v26 }
  0xf5   : > { %3521 = vtanh.f32 %v692_v23 }
  0xf6   : > { %v709_v37 = vor.u32 1.1754944e-38, %v708_v32  ;;  %vm707_vm8 = vcmp.eq.f32.partialorder %v706_v34, 8.507059e+37 }
  0xfa   : > { %v3520_v28 = vpop.eup %3519 }
  0xfb   : > { %v698_v30 = vmul.f32 %v3520_v28, %v696_v26  ;;  %vm703_vm4 = vweird.f32 %v3520_v28  ;;  %v3522_v39 = vpop.eup %3521 }
  0xfc   : > { %vm704_vm7 = vmor %vm702_vm6, %vm703_vm4 }
  0xfd   : > { %v699_v31 = vsub.f32 1.0, %v698_v30 }
  0xff   : > { %v700_v33 = vmul.f32 %v3520_v28, %v699_v31 }
 0x101   : > { %v701_v36 = vadd.f32 %v3520_v28, %v700_v33 }
 0x103   : > { %v705_v38 = vsel %vm704_vm7, %v3520_v28, %v701_v36 }
 0x104   : > { %v710_v40 = vsel %vm707_vm8, %v709_v37, %v705_v38 }
 0x105   : > { %v713_v41 = vsel %vm4435_vm5, %v3522_v39, %v710_v40 }
 0x106   : > { %716 = vrot.lane.b32.xlu0 %v713_v41, %s5160_s19  ;;  %v714_v44 = vmul.f32 0.0, %v713_v41 }
 0x178   : > { %v717_v42 = vpop.permute.xlu0 %716 }
 0x179   : > { %v719_v43 = vmul.f32 %v717_v42, %v713_v41 }
 0x17b   : > { %721 = vrot.lane.b32.xlu0 %v719_v43, %s5162_s21 }
 0x1ed   : > { %v722_v45 = vpop.permute.xlu0 %721 }
 0x1ee   : > { %v4443_v46 = vadd.f32 %v722_v45, %v714_v44 }
 0x1f0   : > { %3523 = vtanh.f32 %v4443_v46 }
 0x1f6   : > { %v3524_v47 = vpop.eup %3523 }
 0x1f7   : > { %727 = vrot.lane.b32.xlu1 %v3524_v47, %s5160_s19 }
 0x269   : > { %v728_v56 = vpop.permute.xlu1 %727 }
 0x26a   : > { %v730_v57 = vmul.f32 %v728_v56, %v713_v41 }
 0x26c   : > { %752 = vrot.lane.b32.xlu1 %v730_v57, %s5162_s21 }
 0x2de   : > { %v753_v58 = vpop.permute.xlu1 %752 }
 0x2df   : > { %3298 = vmatmul.msk.f32.vlgmr.msra.gmra.mxu3 %vm618_vm1, %v753_v58  ;;  %3300 = vmatmul.msk.f32.vlgmr.msrb.gmra.mxu1 %vm618_vm1, %v753_v58 }
 0x2e0   : > { %1126 = vmatpush.msra.mxu3 %v4364_v2  ;;  %1215 = vmatpush.msrb.mxu1 %v4449_v49 }
 0x2e2   : > { %1127 = vmatpush.msra.mxu3 %v4366_v3  ;;  %1216 = vmatpush.msrb.mxu1 %v4455_v51 }
 0x2e4   : > { %1128 = vmatpush.msra.mxu3 %v4377_v5  ;;  %1217 = vmatpush.msrb.mxu1 %v4459_v53 }
 0x2e6   : > { %1129 = vmatpush.msra.mxu3 %v4390_v7  ;;  %1218 = vmatpush.msrb.mxu1 %v4467_v55 }
 0x35c   : > { %v833_v60 = vpop.f32.mrf.mxu1 }
 0x35d   : > { %v836_v61 = vadd.f32 %v833_v60, %v815_v59 }
 0x35f   : > { %v3301_v62 = vmul.f32 -1.442695, %v836_v61 }
 0x361   : > { %3525 = vpow2.f32 %v3301_v62 }
 0x362   : > { %v773_v1 = vpop.f32.mrf.mxu3 }
 0x363   : > { %v774_v4 = vadd.f32 %v773_v1, %v748_v63  ;;  %v578_v63 = vld [vmem:[%s577_s1] sm:$0x1]  ;;  %s605_s1 = scalar_lea.vmem [#allocation12], %s604_s0  ;;  %s5188_s0 = smov 64  }
 0x364   : > { %v582_v1 = vld [vmem:[%s581_s2] sm:$0x1]  ;;  %579 = vst.msk [vmem:[#allocation2 + $0x8] sm:$0x1] %vm539_vm0, %v578_v63  ;;  %s5189_s2 = smov 32  }
 0x365   : > { %v776_v6 = vadd.f32 %v774_v4, %v4506_v0  ;;  %583 = vst.msk [vmem:[#allocation2 + $0x9] sm:$0x1] %vm539_vm0, %v582_v1 }
 0x367   : > { %v3526_v8 = vpop.eup %3525  ;;  %v3299_v9 = vmul.f32 -1.442695, %v776_v6 }
 0x368   : > { %v840_v10 = vadd.f32 1.0, %v3526_v8  ;;  %v594_v8 = vld [vmem:[%s593_s3] sm:$0x1] }
 0x369   : > { %3527 = vpow2.f32 %v3299_v9  ;;  %v598_v9 = vld [vmem:[%s597_s26] sm:$0x1]  ;;  %595 = vst.msk [vmem:[#allocation2 + $0xc] sm:$0x1] %vm539_vm0, %v594_v8 }
 0x36a   : > { %3529 = vrcp.f32 %v840_v10  ;;  %v852_v30 = vand.u32 2147483648, %v840_v10  ;;  %vm846_vm14 = vweird.f32 %v840_v10  ;;  %v850_v32 = vand.u32 2147483647, %v840_v10  ;;  %599 = vst.msk [vmem:[#allocation2 + $0xd] sm:$0x1] %vm539_vm0, %v598_v9 }
 0x36c   : > { %v853_v34 = vor.u32 1.1754944e-38, %v852_v30  ;;  %vm851_vm2 = vcmp.eq.f32.partialorder %v850_v32, 8.507059e+37 }
 0x36f   : > { %v3528_v11 = vpop.eup %3527 }
 0x370   : > { %v780_v12 = vadd.f32 1.0, %v3528_v11  ;;  %v3530_v13 = vpop.eup %3529  ;;  %v606_v11 = vld [vmem:[%s605_s1] sm:$0x1] }
 0x371   : > { %v842_v14 = vmul.f32 %v3530_v13, %v840_v10  ;;  %vm847_vm13 = vweird.f32 %v3530_v13  ;;  %607 = vst.msk [vmem:[#allocation2 + $0xf] sm:$0x1] %vm539_vm0, %v606_v11 }
 0x372   : > { %3531 = vrcp.f32 %v780_v12  ;;  %v792_v20 = vand.u32 2147483648, %v780_v12  ;;  %v790_v22 = vand.u32 2147483647, %v780_v12  ;;  %vm786_vm10 = vweird.f32 %v780_v12  ;;  %vm848_vm15 = vmor %vm846_vm14, %vm847_vm13 }
 0x373   : > { %v843_v17 = vsub.f32 1.0, %v842_v14  ;;  %3533 = vtanh.f32 %v776_v6  ;;  %v590_v6 = vld [vmem:[%s589_s17] sm:$0x1]  ;;  %s534_s17 = scalar_lea.vmem [#allocation21], %s3293_s18 }
 0x374   : > { %v793_v25 = vor.u32 1.1754944e-38, %v792_v20  ;;  %vm791_vm12 = vcmp.eq.f32.partialorder %v790_v22, 8.507059e+37  ;;  %3535 = vtanh.f32 %v836_v61  ;;  %591 = vst.msk [vmem:[#allocation2 + $0xb] sm:$0x1] %vm539_vm0, %v590_v6  ;;  %s3115_s3 = sshll.u32 %s534_s17, 4  ;;  %s3116_s3 = int_to_ptr.vmem [resolvable:$true] %s3115_s3 }
 0x375   : > { %v844_v23 = vmul.f32 %v3530_v13, %v843_v17  ;;  %v964_v17 = vld [vmem:[#allocation3 + $0x2] sm:$0x1] }
 0x377   : > { %v845_v27 = vadd.f32 %v3530_v13, %v844_v23 }
 0x378   : > { %v3532_v15 = vpop.eup %3531 }
 0x379   : > { %v782_v16 = vmul.f32 %v3532_v15, %v780_v12  ;;  %vm787_vm9 = vweird.f32 %v3532_v15  ;;  %v3534_v28 = vpop.eup %3533  ;;  %v849_v33 = vsel %vm848_vm15, %v3530_v13, %v845_v27 }
 0x37a   : > { %vm788_vm11 = vmor %vm786_vm10, %vm787_vm9  ;;  %v854_v36 = vsel %vm851_vm2, %v853_v34, %v849_v33  ;;  %v3536_v37 = vpop.eup %3535 }
 0x37b   : > { %v783_v19 = vsub.f32 1.0, %v782_v16  ;;  %v857_v38 = vsel %vm4435_vm5, %v3536_v37, %v854_v36 }
 0x37c   : > { %v858_v47 = vmul.f32 %v857_v38, %v4443_v46 }
 0x37d   : > { %v784_v21 = vmul.f32 %v3532_v15, %v783_v19 }
 0x37f   : > { %v785_v24 = vadd.f32 %v3532_v15, %v784_v21 }
 0x381   : > { %v789_v26 = vsel %vm788_vm11, %v3532_v15, %v785_v24 }
 0x382   : > { %v794_v29 = vsel %vm791_vm12, %v793_v25, %v789_v26 }
 0x383   : > { %v797_v31 = vsel %vm4435_vm5, %v3534_v28, %v794_v29 }
 0x384   : > { %800 = vrot.lane.b32.xlu2 %v797_v31, %s5160_s19  ;;  %v798_v43 = vmul.f32 0.0, %v797_v31 }
 0x38c   : > { %860 = vrot.lane.b32.xlu2 %v857_v38, %s5160_s19 }
 0x3de   : > { %v801_v39 = vpop.permute.xlu2 %800 }
 0x3df   : > { %v803_v40 = vmul.f32 %v801_v39, %v797_v31 }
 0x3e1   : > { %805 = vrot.lane.b32.xlu0 %v803_v40, %s5162_s21 }
 0x3e6   : > { %v861_v41 = vpop.permute.xlu2 %860 }
 0x3e7   : > { %v863_v42 = vmul.f32 %v861_v41, %v857_v38 }
 0x3e9   : > { %865 = vrot.lane.b32.xlu1 %v863_v42, %s5162_s21 }
 0x453   : > { %v806_v44 = vpop.permute.xlu0 %805 }
 0x454   : > { %v4517_v45 = vadd.f32 %v806_v44, %v798_v43 }
 0x456   : > { %3537 = vtanh.f32 %v4517_v45 }
 0x45b   : > { %v866_v56 = vpop.permute.xlu1 %865 }
 0x45c   : > { %v3538_v57 = vpop.eup %3537  ;;  %v4521_v58 = vadd.f32 %v866_v56, %v858_v47 }
 0x45d   : > { %811 = vrot.lane.b32.xlu2 %v3538_v57, %s5160_s19 }
 0x45e   : > { %3539 = vtanh.f32 %v4521_v58 }
 0x464   : > { %v3540_v59 = vpop.eup %3539 }
 0x465   : > { %871 = vrot.lane.b32.xlu0 %v3540_v59, %s5160_s19  ;;  %s600_s19 = sld [smem:[#allocation9 + %s566_s30]]  ;;  %s4059_s30 = scalar_lea.hbm %s5150_s12, 16 }
 0x46b   : > { %s601_s15 = scalar_lea.vmem [#allocation12], %s600_s19 }
 0x46c   : > { %v602_v10 = vld [vmem:[%s601_s15] sm:$0x1]  ;;  %s3103_s15 = scalar_lea.sflag [#allocation7], %s532_s14 }
 0x46d   : > { %603 = vst.msk [vmem:[#allocation2 + $0xe] sm:$0x1] %vm539_vm0, %v602_v10 }
 0x4b7   : > { %v812_v60 = vpop.permute.xlu2 %811 }
 0x4b8   : > { %v814_v61 = vmul.f32 %v812_v60, %v797_v31 }
 0x4ba   : > { %876 = vrot.lane.b32.xlu1 %v814_v61, %s5162_s21 }
 0x4d7   : > { %v872_v46 = vpop.permute.xlu0 %871 }
 0x4d8   : > { %v874_v62 = vmul.f32 %v872_v46, %v857_v38 }
 0x4da   : > { %901 = vrot.lane.b32.xlu2 %v874_v62, %s5162_s21  ;;  %s585_s21 = scalar_lea.vmem [#allocation12], %s584_s20  ;;  %s3377_s20 = sshll.u32 %s4227_s25, 3 }
 0x4db   : > { %v586_v4 = vld [vmem:[%s585_s21] sm:$0x1]  ;;  %s3113_s29 = scalar_lea.hbm %s5150_s12, %s3377_s20 }
 0x4dc   : > { %587 = vst.msk [vmem:[#allocation2 + $0xa] sm:$0x1] %vm539_vm0, %v586_v4  ;;  %s3117_s26 = sshll.u32 %s3113_s29, 4  ;;  %s3118_s26 = int_to_ptr.hbm [resolvable:$true] %s3117_s26 }
 0x4dd   : > { %s4053_s1 = sshra.s32 %s3118_s26, 4  ;;  %s4054_s1 = int_to_ptr.hbm [resolvable:$true] %s4053_s1 }
 0x4de   : > { %s4055_s25 = scalar_lea.hbm %s4054_s1, 8  ;;  %p4060_p2 = scmp.lt.s32.totalorder %s4054_s1, %s5150_s12 }
 0x4df   : > { %p4056_p13 = scmp.ne.s32.totalorder %s4054_s1, %s4055_s25  ;;  %p4061_p3 = scmp.lt.s32.totalorder %s4059_s30, %s4055_s25 }
 0x4e1   : > { %p4057_p0 = pnand %p4056_p13, %p4244_p5  ;;  %p4062_p4 = por %p4061_p3, %p4060_p2 }
 0x4e3   : > { %v609_v12 = vld [vmem:[#allocation2 + $0x8] sm:$0xff]  ;;  %p4058_p1 = pneg %p4057_p0 }
 0x4e4   : > { %3296 = vmatmul.msk.f32.gmra.mxu0 %vm618_vm1, %v609_v12 }
 0x4e5   : > { %p4063_p7 = pnand %p4062_p4, %p4058_p1 }
 0x52c   : > { %v877_v13 = vpop.permute.xlu1 %876 }
 0x52d   : > { %3302 = vmatmul.msk.f32.vlgmr.msrb.gmra.mxu2 %vm618_vm1, %v877_v13 }
 0x52e   : > { %1275 = vmatpush.msrb.mxu2 %v4364_v2 }
 0x530   : > { %1276 = vmatpush.msrb.mxu2 %v4366_v3 }
 0x532   : > { %1277 = vmatpush.msrb.mxu2 %v4377_v5 }
 0x534   : > { %v902_v14 = vpop.permute.xlu2 %901  ;;  %1278 = vmatpush.msrb.mxu2 %v4390_v7 }
 0x535   : > { %3303 = vmatmul.msk.f32.vlgmr.msrb.gmra.mxu3 %vm618_vm1, %v902_v14  ;;  %3305 = vmatmul.msk.f32.vlgmr.msrb.gmra.mxu0 %vm618_vm1, %v902_v14 }
 0x536   : > { %1364 = vmatpush.msrb.mxu0 %v4449_v49  ;;  %1339 = vmatpush.msrb.mxu3 %v4447_v48 }
 0x538   : > { %1365 = vmatpush.msrb.mxu0 %v4455_v51  ;;  %1340 = vmatpush.msrb.mxu3 %v4451_v50 }
 0x53a   : > { %1366 = vmatpush.msrb.mxu0 %v4459_v53  ;;  %1341 = vmatpush.msrb.mxu3 %v4457_v52 }
 0x53c   : > { %1367 = vmatpush.msrb.mxu0 %v4467_v55  ;;  %1342 = vmatpush.msrb.mxu3 %v4465_v54 }
 0x561   : > { %v645_v15 = vpop.f32.mrf.mxu0 }
 0x562   : > { %v646_v16 = vadd.f32 %v4432_v18, %v645_v15 }
 0x564   : > { %649 = vst [vmem:[#allocation3 + $0x8] sm:$0xff] %v646_v16 }
 0x5b0   : > { %v897_v22 = vpop.f32.mrf.mxu2 }
 0x5b2   : > { %v982_v19 = vpop.f32.mrf.mxu0 }
 0x5b3   : > { %v985_v20 = vadd.f32 %v982_v19, %v964_v17 }
 0x5b5   : > { %v3306_v21 = vmul.f32 -1.442695, %v985_v20 }
 0x5b7   : > { %3541 = vpow2.f32 %v3306_v21 }
 0x5b8   : > { %v922_v23 = vpop.f32.mrf.mxu3 }
 0x5b9   : > { %v923_v24 = vadd.f32 %v922_v23, %v897_v22  ;;  %v1113_v23 = vld [vmem:[#allocation3 + $0x3] sm:$0x1] }
 0x5bb   : > { %v925_v25 = vadd.f32 %v923_v24, %v4506_v0 }
 0x5bd   : > { %v3542_v26 = vpop.eup %3541  ;;  %v3304_v27 = vmul.f32 -1.442695, %v925_v25 }
 0x5be   : > { %v989_v28 = vadd.f32 1.0, %v3542_v26 }
 0x5bf   : > { %3543 = vpow2.f32 %v3304_v27 }
 0x5c0   : > { %3545 = vrcp.f32 %v989_v28  ;;  %v1001_v33 = vand.u32 2147483648, %v989_v28  ;;  %v999_v36 = vand.u32 2147483647, %v989_v28  ;;  %vm995_vm4 = vweird.f32 %v989_v28 }
 0x5c2   : > { %v1002_v39 = vor.u32 1.1754944e-38, %v1001_v33  ;;  %vm1000_vm7 = vcmp.eq.f32.partialorder %v999_v36, 8.507059e+37 }
 0x5c5   : > { %v3544_v29 = vpop.eup %3543 }
 0x5c6   : > { %v3546_v30 = vpop.eup %3545  ;;  %v929_v31 = vadd.f32 1.0, %v3544_v29 }
 0x5c7   : > { %v991_v18 = vmul.f32 %v3546_v30, %v989_v28  ;;  %vm996_vm3 = vweird.f32 %v3546_v30 }
 0x5c8   : > { %3547 = vrcp.f32 %v929_v31  ;;  %vm997_vm6 = vmor %vm995_vm4, %vm996_vm3  ;;  %v941_v56 = vand.u32 2147483648, %v929_v31  ;;  %v939_v59 = vand.u32 2147483647, %v929_v31  ;;  %vm935_vm9 = vweird.f32 %v929_v31 }
 0x5c9   : > { %v992_v32 = vsub.f32 1.0, %v991_v18  ;;  %3549 = vtanh.f32 %v985_v20 }
 0x5ca   : > { %3551 = vtanh.f32 %v925_v25  ;;  %v942_v61 = vor.u32 1.1754944e-38, %v941_v56  ;;  %vm940_vm11 = vcmp.eq.f32.partialorder %v939_v59, 8.507059e+37 }
 0x5cb   : > { %v993_v34 = vmul.f32 %v3546_v30, %v992_v32 }
 0x5cd   : > { %v994_v37 = vadd.f32 %v3546_v30, %v993_v34 }
 0x5ce   : > { %v3548_v38 = vpop.eup %3547 }
 0x5cf   : > { %v998_v40 = vsel %vm997_vm6, %v3546_v30, %v994_v37  ;;  %v931_v41 = vmul.f32 %v3548_v38, %v929_v31  ;;  %v3550_v42 = vpop.eup %3549  ;;  %vm936_vm8 = vweird.f32 %v3548_v38 }
 0x5d0   : > { %v1003_v43 = vsel %vm1000_vm7, %v1002_v39, %v998_v40  ;;  %vm937_vm10 = vmor %vm935_vm9, %vm936_vm8  ;;  %v3552_v62 = vpop.eup %3551 }
 0x5d1   : > { %v1006_v44 = vsel %vm4435_vm5, %v3550_v42, %v1003_v43  ;;  %v932_v47 = vsub.f32 1.0, %v931_v41 }
 0x5d2   : > { %1009 = vrot.lane.b32.xlu0 %v1006_v44, %s5188_s0  ;;  %v1007_v10 = vmul.f32 %v1006_v44, %v4521_v58 }
 0x5d3   : > { %v933_v57 = vmul.f32 %v3548_v38, %v932_v47 }
 0x5d5   : > { %v934_v60 = vadd.f32 %v3548_v38, %v933_v57 }
 0x5d7   : > { %v938_v46 = vsel %vm937_vm10, %v3548_v38, %v934_v60 }
 0x5d8   : > { %v943_v63 = vsel %vm940_vm11, %v942_v61, %v938_v46 }
 0x5d9   : > { %v946_v1 = vsel %vm4435_vm5, %v3552_v62, %v943_v63 }
 0x5da   : > { %949 = vrot.lane.b32.xlu1 %v946_v1, %s5188_s0  ;;  %v947_v14 = vmul.f32 %v946_v1, %v4517_v45 }
 0x644   : > { %v1010_v4 = vpop.permute.xlu0 %1009 }
 0x645   : > { %v1012_v6 = vmul.f32 %v1010_v4, %v1006_v44 }
 0x647   : > { %1014 = vrot.lane.b32.xlu2 %v1012_v6, %s5189_s2 }
 0x64c   : > { %v950_v8 = vpop.permute.xlu1 %949 }
 0x64d   : > { %v952_v9 = vmul.f32 %v950_v8, %v946_v1 }
 0x64f   : > { %954 = vrot.lane.b32.xlu0 %v952_v9, %s5189_s2 }
 0x6a1   : > { %v1015_v11 = vpop.permute.xlu2 %1014 }
 0x6a2   : > { %v4578_v12 = vadd.f32 %v1015_v11, %v1007_v10 }
 0x6a4   : > { %3553 = vtanh.f32 %v4578_v12 }
 0x6aa   : > { %v3554_v13 = vpop.eup %3553 }
 0x6ab   : > { %1020 = vrot.lane.b32.xlu1 %v3554_v13, %s5188_s0 }
 0x6c1   : > { %v955_v15 = vpop.permute.xlu0 %954 }
 0x6c2   : > { %v4583_v16 = vadd.f32 %v955_v15, %v947_v14 }
 0x6c4   : > { %3555 = vtanh.f32 %v4583_v16 }
 0x6ca   : > { %v3556_v17 = vpop.eup %3555 }
 0x6cb   : > { %960 = vrot.lane.b32.xlu2 %v3556_v17, %s5188_s0 }
 0x71d   : > { %v1021_v19 = vpop.permute.xlu1 %1020 }
 0x71e   : > { %v1023_v58 = vmul.f32 %v1021_v19, %v1006_v44 }
 0x720   : > { %1050 = vrot.lane.b32.xlu0 %v1023_v58, %s5189_s2 }
 0x725   : > { %v961_v20 = vpop.permute.xlu2 %960 }
 0x726   : > { %v963_v21 = vmul.f32 %v961_v20, %v946_v1 }
 0x728   : > { %1025 = vrot.lane.b32.xlu1 %v963_v21, %s5189_s2 }
 0x792   : > { %v1051_v22 = vpop.permute.xlu0 %1050 }
 0x793   : > { %3308 = vmatmul.msk.f32.vlgmr.msra.gmra.mxu2 %vm618_vm1, %v1051_v22  ;;  %3310 = vmatmul.msk.f32.vlgmr.msra.gmra.mxu3 %vm618_vm1, %v1051_v22 }
 0x794   : > { %1513 = vmatpush.msra.mxu3 %v4449_v49  ;;  %1488 = vmatpush.msra.mxu2 %v4447_v48 }
 0x796   : > { %1514 = vmatpush.msra.mxu3 %v4455_v51  ;;  %1489 = vmatpush.msra.mxu2 %v4451_v50 }
 0x798   : > { %1515 = vmatpush.msra.mxu3 %v4459_v53  ;;  %1490 = vmatpush.msra.mxu2 %v4457_v52 }
 0x79a   : > { %v1026_v45 = vpop.permute.xlu1 %1025  ;;  %1516 = vmatpush.msra.mxu3 %v4467_v55  ;;  %1491 = vmatpush.msra.mxu2 %v4465_v54 }
 0x79b   : > { %3307 = vmatmul.msk.f32.vlgmr.msra.gmra.mxu1 %vm618_vm1, %v1026_v45 }
 0x79c   : > { %1424 = vmatpush.msra.mxu1 %v4364_v2 }
 0x79e   : > { %1425 = vmatpush.msra.mxu1 %v4366_v3 }
 0x7a0   : > { %1426 = vmatpush.msra.mxu1 %v4377_v5 }
 0x7a2   : > { %1427 = vmatpush.msra.mxu1 %v4390_v7 }
 0x816   : > { %v1131_v24 = vpop.f32.mrf.mxu3  ;;  %v1071_v26 = vpop.f32.mrf.mxu2 }
 0x817   : > { %v1134_v25 = vadd.f32 %v1131_v24, %v1113_v23 }
 0x818   : > { %v1046_v27 = vpop.f32.mrf.mxu1 }
 0x819   : > { %v3311_v28 = vmul.f32 -1.442695, %v1134_v25  ;;  %v1072_v29 = vadd.f32 %v1071_v26, %v1046_v27 }
 0x81b   : > { %3557 = vpow2.f32 %v3311_v28  ;;  %v1074_v30 = vadd.f32 %v1072_v29, %v4506_v0  ;;  %v1262_v29 = vld [vmem:[#allocation3 + $0x4] sm:$0x1] }
 0x81d   : > { %v3309_v31 = vmul.f32 -1.442695, %v1074_v30 }
 0x81f   : > { %3559 = vpow2.f32 %v3309_v31 }
 0x821   : > { %v3558_v18 = vpop.eup %3557 }
 0x822   : > { %v1138_v32 = vadd.f32 1.0, %v3558_v18 }
 0x824   : > { %3561 = vrcp.f32 %v1138_v32  ;;  %v1148_v40 = vand.u32 2147483647, %v1138_v32  ;;  %v1150_v41 = vand.u32 2147483648, %v1138_v32  ;;  %vm1144_vm13 = vweird.f32 %v1138_v32 }
 0x825   : > { %v3560_v33 = vpop.eup %3559 }
 0x826   : > { %v1078_v34 = vadd.f32 1.0, %v3560_v33  ;;  %vm1149_vm15 = vcmp.eq.f32.partialorder %v1148_v40, 8.507059e+37  ;;  %v1151_v56 = vor.u32 1.1754944e-38, %v1150_v41 }
 0x828   : > { %3563 = vrcp.f32 %v1078_v34  ;;  %v1090_v57 = vand.u32 2147483648, %v1078_v34  ;;  %v1088_v61 = vand.u32 2147483647, %v1078_v34  ;;  %vm1084_vm3 = vweird.f32 %v1078_v34 }
 0x829   : > { %3565 = vtanh.f32 %v1134_v25 }
 0x82a   : > { %v3562_v36 = vpop.eup %3561  ;;  %3567 = vtanh.f32 %v1074_v30  ;;  %v1091_v4 = vor.u32 1.1754944e-38, %v1090_v57  ;;  %vm1089_vm6 = vcmp.eq.f32.partialorder %v1088_v61, 8.507059e+37 }
 0x82b   : > { %v1140_v37 = vmul.f32 %v3562_v36, %v1138_v32  ;;  %vm1145_vm12 = vweird.f32 %v3562_v36 }
 0x82c   : > { %vm1146_vm14 = vmor %vm1144_vm13, %vm1145_vm12 }
 0x82d   : > { %v1141_v38 = vsub.f32 1.0, %v1140_v37 }
 0x82e   : > { %v3564_v39 = vpop.eup %3563 }
 0x82f   : > { %v1142_v42 = vmul.f32 %v3562_v36, %v1141_v38  ;;  %v1080_v43 = vmul.f32 %v3564_v39, %v1078_v34  ;;  %vm1085_vm2 = vweird.f32 %v3564_v39  ;;  %v3566_v46 = vpop.eup %3565 }
 0x830   : > { %vm1086_vm4 = vmor %vm1084_vm3, %vm1085_vm2  ;;  %v3568_v8 = vpop.eup %3567 }
 0x831   : > { %v1143_v44 = vadd.f32 %v3562_v36, %v1142_v42  ;;  %v1081_v47 = vsub.f32 1.0, %v1080_v43 }
 0x833   : > { %v1147_v59 = vsel %vm1146_vm14, %v3562_v36, %v1143_v44  ;;  %v1082_v60 = vmul.f32 %v3564_v39, %v1081_v47 }
 0x834   : > { %v1152_v62 = vsel %vm1149_vm15, %v1151_v56, %v1147_v59 }
 0x835   : > { %v1155_v63 = vsel %vm4435_vm5, %v3566_v46, %v1152_v62  ;;  %v1083_v1 = vadd.f32 %v3564_v39, %v1082_v60 }
 0x836   : > { %1158 = vrot.lane.b32.xlu0 %v1155_v63, %s5188_s0  ;;  %v1156_v17 = vmul.f32 %v1155_v63, %v4578_v12 }
 0x837   : > { %v1087_v6 = vsel %vm1086_vm4, %v3564_v39, %v1083_v1 }
 0x838   : > { %v1092_v9 = vsel %vm1089_vm6, %v1091_v4, %v1087_v6 }
 0x839   : > { %v1095_v10 = vsel %vm4435_vm5, %v3568_v8, %v1092_v9 }
 0x83a   : > { %1098 = vrot.lane.b32.xlu2 %v1095_v10, %s5188_s0  ;;  %v1096_v20 = vmul.f32 %v1095_v10, %v4583_v16 }
 0x894   : > { %v1099_v11 = vpop.permute.xlu2 %1098 }
 0x895   : > { %v1101_v13 = vmul.f32 %v1099_v11, %v1095_v10 }
 0x897   : > { %1103 = vrot.lane.b32.xlu1 %v1101_v13, %s5189_s2 }
 0x8a8   : > { %v1159_v14 = vpop.permute.xlu0 %1158 }
 0x8a9   : > { %v1161_v15 = vmul.f32 %v1159_v14, %v1155_v63 }
 0x8ab   : > { %1163 = vrot.lane.b32.xlu2 %v1161_v15, %s5189_s2 }
 0x905   : > { %v1164_v19 = vpop.permute.xlu2 %1163 }
 0x906   : > { %v4614_v58 = vadd.f32 %v1164_v19, %v1156_v17 }
 0x908   : > { %3569 = vtanh.f32 %v4614_v58 }
 0x909   : > { %v1104_v21 = vpop.permute.xlu1 %1103 }
 0x90a   : > { %v4618_v22 = vadd.f32 %v1104_v21, %v1096_v20 }
 0x90c   : > { %3571 = vtanh.f32 %v4618_v22 }
 0x90e   : > { %v3570_v45 = vpop.eup %3569 }
 0x90f   : > { %1169 = vrot.lane.b32.xlu1 %v3570_v45, %s5188_s0 }
 0x912   : > { %v3572_v23 = vpop.eup %3571 }
 0x913   : > { %1109 = vrot.lane.b32.xlu0 %v3572_v23, %s5188_s0 }
 0x981   : > { %v1170_v24 = vpop.permute.xlu1 %1169 }
 0x982   : > { %v1172_v12 = vmul.f32 %v1170_v24, %v1155_v63 }
 0x984   : > { %1199 = vrot.lane.b32.xlu0 %v1172_v12, %s5189_s2 }
 0x985   : > { %v1110_v25 = vpop.permute.xlu0 %1109 }
 0x986   : > { %v1112_v26 = vmul.f32 %v1110_v25, %v1095_v10 }
 0x988   : > { %1174 = vrot.lane.b32.xlu2 %v1112_v26, %s5189_s2 }
 0x9e2   : > { %v1175_v16 = vpop.permute.xlu2 %1174 }
 0x9e3   : > { %3312 = vmatmul.msk.f32.vlgmr.msra.gmra.mxu0 %vm618_vm1, %v1175_v16 }
 0x9e4   : > { %1573 = vmatpush.msra.mxu0 %v4364_v2 }
 0x9e6   : > { %1574 = vmatpush.msra.mxu0 %v4366_v3 }
 0x9e8   : > { %1575 = vmatpush.msra.mxu0 %v4377_v5 }
 0x9ea   : > { %1576 = vmatpush.msra.mxu0 %v4390_v7 }
 0x9f6   : > { %v1200_v27 = vpop.permute.xlu0 %1199 }
 0x9f7   : > { %3313 = vmatmul.msk.f32.vlgmr.msrb.gmra.mxu1 %vm618_vm1, %v1200_v27  ;;  %3315 = vmatmul.msk.f32.vlgmr.msrb.gmra.mxu2 %vm618_vm1, %v1200_v27 }
 0x9f8   : > { %1662 = vmatpush.msrb.mxu2 %v4449_v49  ;;  %1637 = vmatpush.msrb.mxu1 %v4447_v48 }
 0x9fa   : > { %1663 = vmatpush.msrb.mxu2 %v4455_v51  ;;  %1638 = vmatpush.msrb.mxu1 %v4451_v50 }
 0x9fc   : > { %1664 = vmatpush.msrb.mxu2 %v4459_v53  ;;  %1639 = vmatpush.msrb.mxu1 %v4457_v52 }
 0x9fe   : > { %1665 = vmatpush.msrb.mxu2 %v4467_v55  ;;  %1640 = vmatpush.msrb.mxu1 %v4465_v54 }
 0xa60   : > { %v1195_v2 = vpop.f32.mrf.mxu0 }
 0xa74   : > { %v1220_v3 = vpop.f32.mrf.mxu1 }
 0xa75   : > { %v1221_v5 = vadd.f32 %v1220_v3, %v1195_v2  ;;  %v4672_v3 = vld [vmem:[#allocation15 + $0x18] sm:$0xff] }
 0xa77   : > { %v1223_v7 = vadd.f32 %v1221_v5, %v4506_v0 }
 0xa79   : > { %v3314_v28 = vmul.f32 -1.442695, %v1223_v7 }
 0xa7a   : > { %v1280_v30 = vpop.f32.mrf.mxu2 }
 0xa7b   : > { %3573 = vpow2.f32 %v3314_v28  ;;  %v1283_v31 = vadd.f32 %v1280_v30, %v1262_v29 }
 0xa7d   : > { %v3316_v18 = vmul.f32 -1.442695, %v1283_v31 }
 0xa7f   : > { %3575 = vpow2.f32 %v3316_v18 }
 0xa81   : > { %v3574_v32 = vpop.eup %3573 }
 0xa82   : > { %v1227_v33 = vadd.f32 1.0, %v3574_v32 }
 0xa84   : > { %3577 = vrcp.f32 %v1227_v33  ;;  %v1237_v41 = vand.u32 2147483647, %v1227_v33  ;;  %v1239_v42 = vand.u32 2147483648, %v1227_v33  ;;  %vm1233_vm8 = vweird.f32 %v1227_v33 }
 0xa85   : > { %v3576_v34 = vpop.eup %3575 }
 0xa86   : > { %v1287_v36 = vadd.f32 1.0, %v3576_v34  ;;  %vm1238_vm10 = vcmp.eq.f32.partialorder %v1237_v41, 8.507059e+37  ;;  %v1240_v57 = vor.u32 1.1754944e-38, %v1239_v42 }
 0xa88   : > { %3579 = vrcp.f32 %v1287_v36  ;;  %v1299_v59 = vand.u32 2147483648, %v1287_v36  ;;  %v1297_v46 = vand.u32 2147483647, %v1287_v36  ;;  %vm1293_vm12 = vweird.f32 %v1287_v36 }
 0xa89   : > { %3581 = vtanh.f32 %v1223_v7 }
 0xa8a   : > { %v3578_v37 = vpop.eup %3577  ;;  %3583 = vtanh.f32 %v1283_v31  ;;  %v1300_v6 = vor.u32 1.1754944e-38, %v1299_v59  ;;  %vm1298_vm14 = vcmp.eq.f32.partialorder %v1297_v46, 8.507059e+37 }
 0xa8b   : > { %v1229_v38 = vmul.f32 %v3578_v37, %v1227_v33  ;;  %vm1234_vm7 = vweird.f32 %v3578_v37 }
 0xa8c   : > { %vm1235_vm9 = vmor %vm1233_vm8, %vm1234_vm7 }
 0xa8d   : > { %v1230_v39 = vsub.f32 1.0, %v1229_v38 }
 0xa8e   : > { %v3580_v40 = vpop.eup %3579 }
 0xa8f   : > { %v1231_v43 = vmul.f32 %v3578_v37, %v1230_v39  ;;  %v1289_v44 = vmul.f32 %v3580_v40, %v1287_v36  ;;  %vm1294_vm11 = vweird.f32 %v3580_v40  ;;  %v3582_v62 = vpop.eup %3581 }
 0xa90   : > { %vm1295_vm13 = vmor %vm1293_vm12, %vm1294_vm11  ;;  %v3584_v9 = vpop.eup %3583 }
 0xa91   : > { %v1232_v47 = vadd.f32 %v3578_v37, %v1231_v43  ;;  %v1290_v56 = vsub.f32 1.0, %v1289_v44 }
 0xa93   : > { %v1236_v60 = vsel %vm1235_vm9, %v3578_v37, %v1232_v47  ;;  %v1291_v61 = vmul.f32 %v3580_v40, %v1290_v56 }
 0xa94   : > { %v1241_v63 = vsel %vm1238_vm10, %v1240_v57, %v1236_v60 }
 0xa95   : > { %v1244_v1 = vsel %vm4435_vm5, %v3582_v62, %v1241_v63  ;;  %v1292_v4 = vadd.f32 %v3580_v40, %v1291_v61 }
 0xa96   : > { %1247 = vrot.lane.b32.xlu1 %v1244_v1, %s5188_s0  ;;  %v1245_v23 = vmul.f32 %v1244_v1, %v4618_v22 }
 0xa97   : > { %v1296_v8 = vsel %vm1295_vm13, %v3580_v40, %v1292_v4 }
 0xa98   : > { %v1301_v10 = vsel %vm1298_vm14, %v1300_v6, %v1296_v8 }
 0xa99   : > { %v1304_v11 = vsel %vm4435_vm5, %v3584_v9, %v1301_v10 }
 0xa9a   : > { %1307 = vrot.lane.b32.xlu2 %v1304_v11, %s5188_s0  ;;  %v1305_v19 = vmul.f32 %v1304_v11, %v4614_v58 }
 0xaf4   : > { %v1308_v13 = vpop.permute.xlu2 %1307 }
 0xaf5   : > { %v1310_v14 = vmul.f32 %v1308_v13, %v1304_v11 }
 0xaf7   : > { %1312 = vrot.lane.b32.xlu1 %v1310_v14, %s5189_s2 }
 0xb08   : > { %v1248_v15 = vpop.permute.xlu1 %1247 }
 0xb09   : > { %v1250_v17 = vmul.f32 %v1248_v15, %v1244_v1 }
 0xb0b   : > { %1252 = vrot.lane.b32.xlu0 %v1250_v17, %s5189_s2 }
 0xb69   : > { %v1313_v20 = vpop.permute.xlu1 %1312 }
 0xb6a   : > { %v4650_v21 = vadd.f32 %v1313_v20, %v1305_v19 }
 0xb6c   : > { %3585 = vtanh.f32 %v4650_v21 }
 0xb72   : > { %v3586_v45 = vpop.eup %3585 }
 0xb73   : > { %1318 = vrot.lane.b32.xlu0 %v3586_v45, %s5188_s0 }
 0xb7d   : > { %v1253_v24 = vpop.permute.xlu0 %1252 }
 0xb7e   : > { %v4655_v12 = vadd.f32 %v1253_v24, %v1245_v23 }
 0xb80   : > { %3587 = vtanh.f32 %v4655_v12 }
 0xb86   : > { %v3588_v25 = vpop.eup %3587 }
 0xb87   : > { %1258 = vrot.lane.b32.xlu2 %v3588_v25, %s5188_s0 }
 0xbe1   : > { %v1259_v26 = vpop.permute.xlu2 %1258 }
 0xbe2   : > { %v1261_v58 = vmul.f32 %v1259_v26, %v1244_v1 }
 0xbe4   : > { %1323 = vrot.lane.b32.xlu1 %v1261_v58, %s5189_s2  ;;  %v4707_v58 = vld [vmem:[#allocation17 + $0x18] sm:$0xff] }
 0xbe5   : > { %v1319_v16 = vpop.permute.xlu0 %1318 }
 0xbe6   : > { %v1321_v27 = vmul.f32 %v1319_v16, %v1304_v11  ;;  %v4710_v16 = vld [vmem:[#allocation18 + $0x18] sm:$0xff] }
 0xbe8   : > { %1348 = vrot.lane.b32.xlu2 %v1321_v27, %s5189_s2  ;;  %v4713_v27 = vld [vmem:[#allocation17 + $0x10] sm:$0xff] }
 0xc42   : > { %v1349_v2 = vpop.permute.xlu2 %1348 }
 0xc43   : > { %3318 = vmatmul.msk.f32.vlgmr.msrb.gmra.mxu0 %vm618_vm1, %v1349_v2  ;;  %3320 = vmatmul.msk.f32.vlgmr.msra.gmra.mxu1 %vm618_vm1, %v1349_v2  ;;  %v4716_v2 = vld [vmem:[#allocation18 + $0x10] sm:$0xff] }
 0xc44   : > { %1811 = vmatpush.msra.mxu1 %v4449_v49  ;;  %1786 = vmatpush.msrb.mxu0 %v4447_v48  ;;  %v4675_v48 = vld [vmem:[#allocation15 + $0x10] sm:$0xff]  ;;  %v4678_v49 = vld [vmem:[#allocation15 + $0x8] sm:$0xff] }
 0xc46   : > { %1812 = vmatpush.msra.mxu1 %v4455_v51  ;;  %1787 = vmatpush.msrb.mxu0 %v4451_v50  ;;  %v4681_v50 = vld [vmem:[#allocation15] sm:$0xff]  ;;  %v1411_v51 = vld [vmem:[#allocation3 + $0x5] sm:$0x1] }
 0xc48   : > { %1813 = vmatpush.msra.mxu1 %v4459_v53  ;;  %1788 = vmatpush.msrb.mxu0 %v4457_v52 }
 0xc4a   : > { %1814 = vmatpush.msra.mxu1 %v4467_v55  ;;  %1789 = vmatpush.msrb.mxu0 %v4465_v54 }
 0xc56   : > { %v1324_v22 = vpop.permute.xlu1 %1323 }
 0xc57   : > { %3317 = vmatmul.msk.f32.vlgmr.msrb.gmra.mxu3 %vm618_vm1, %v1324_v22  ;;  %v4719_v22 = vld [vmem:[#allocation17 + $0x8] sm:$0xff] }
 0xc58   : > { %1722 = vmatpush.msrb.mxu3 %v4672_v3 }
 0xc5a   : > { %1723 = vmatpush.msrb.mxu3 %v4675_v48 }
 0xc5c   : > { %1724 = vmatpush.msrb.mxu3 %v4678_v49 }
 0xc5e   : > { %1725 = vmatpush.msrb.mxu3 %v4681_v50 }
 0xcc0   : > { %v1429_v52 = vpop.f32.mrf.mxu1  ;;  %v1369_v32 = vpop.f32.mrf.mxu0 }
 0xcc1   : > { %v1432_v53 = vadd.f32 %v1429_v52, %v1411_v51  ;;  %v4722_v51 = vld [vmem:[#allocation18 + $0x8] sm:$0xff]  ;;  %v4725_v52 = vld [vmem:[#allocation17] sm:$0xff] }
 0xcc3   : > { %v3321_v54 = vmul.f32 -1.442695, %v1432_v53 }
 0xcc5   : > { %3589 = vpow2.f32 %v3321_v54 }
 0xccb   : > { %v3590_v55 = vpop.eup %3589 }
 0xccc   : > { %v1436_v5 = vadd.f32 1.0, %v3590_v55  ;;  %v1560_v55 = vld [vmem:[#allocation3 + $0x6] sm:$0x1] }
 0xcce   : > { %3591 = vrcp.f32 %v1436_v5  ;;  %v1448_v30 = vand.u32 2147483648, %v1436_v5  ;;  %v1446_v18 = vand.u32 2147483647, %v1436_v5  ;;  %vm1442_vm2 = vweird.f32 %v1436_v5 }
 0xccf   : > { %3593 = vtanh.f32 %v1432_v53  ;;  %v4728_v53 = vld [vmem:[#allocation18] sm:$0xff] }
 0xcd0   : > { %v1449_v37 = vor.u32 1.1754944e-38, %v1448_v30  ;;  %vm1447_vm4 = vcmp.eq.f32.partialorder %v1446_v18, 8.507059e+37 }
 0xcd4   : > { %v3592_v7 = vpop.eup %3591 }
 0xcd5   : > { %v1438_v28 = vmul.f32 %v3592_v7, %v1436_v5  ;;  %vm1443_vm15 = vweird.f32 %v3592_v7  ;;  %v3594_v40 = vpop.eup %3593 }
 0xcd6   : > { %vm1444_vm3 = vmor %vm1442_vm2, %vm1443_vm15 }
 0xcd7   : > { %v1439_v29 = vsub.f32 1.0, %v1438_v28 }
 0xcd9   : > { %v1440_v31 = vmul.f32 %v3592_v7, %v1439_v29 }
 0xcda   : > { %v1344_v33 = vpop.f32.mrf.mxu3 }
 0xcdb   : > { %v1370_v34 = vadd.f32 %v1369_v32, %v1344_v33  ;;  %v1441_v36 = vadd.f32 %v3592_v7, %v1440_v31 }
 0xcdd   : > { %v1372_v38 = vadd.f32 %v1370_v34, %v4506_v0  ;;  %v1445_v39 = vsel %vm1444_vm3, %v3592_v7, %v1441_v36 }
 0xcde   : > { %v1450_v41 = vsel %vm1447_vm4, %v1449_v37, %v1445_v39 }
 0xcdf   : > { %v3319_v42 = vmul.f32 -1.442695, %v1372_v38  ;;  %v1453_v43 = vsel %vm4435_vm5, %v3594_v40, %v1450_v41 }
 0xce0   : > { %1456 = vrot.lane.b32.xlu1 %v1453_v43, %s5188_s0  ;;  %v1454_v13 = vmul.f32 %v1453_v43, %v4650_v21 }
 0xce1   : > { %3595 = vpow2.f32 %v3319_v42 }
 0xce7   : > { %v3596_v44 = vpop.eup %3595 }
 0xce8   : > { %v1376_v47 = vadd.f32 1.0, %v3596_v44 }
 0xcea   : > { %3597 = vrcp.f32 %v1376_v47  ;;  %v1388_v60 = vand.u32 2147483648, %v1376_v47  ;;  %v1386_v61 = vand.u32 2147483647, %v1376_v47  ;;  %vm1382_vm7 = vweird.f32 %v1376_v47 }
 0xceb   : > { %3599 = vtanh.f32 %v1372_v38 }
 0xcec   : > { %v1389_v62 = vor.u32 1.1754944e-38, %v1388_v60  ;;  %vm1387_vm9 = vcmp.eq.f32.partialorder %v1386_v61, 8.507059e+37 }
 0xcf0   : > { %v3598_v56 = vpop.eup %3597 }
 0xcf1   : > { %v1378_v57 = vmul.f32 %v3598_v56, %v1376_v47  ;;  %vm1383_vm6 = vweird.f32 %v3598_v56  ;;  %v3600_v1 = vpop.eup %3599 }
 0xcf2   : > { %vm1384_vm8 = vmor %vm1382_vm7, %vm1383_vm6 }
 0xcf3   : > { %v1379_v59 = vsub.f32 1.0, %v1378_v57 }
 0xcf5   : > { %v1380_v0 = vmul.f32 %v3598_v56, %v1379_v59 }
 0xcf7   : > { %v1381_v46 = vadd.f32 %v3598_v56, %v1380_v0 }
 0xcf9   : > { %v1385_v63 = vsel %vm1384_vm8, %v3598_v56, %v1381_v46  ;;  %v4742_v56 = vld [vmem:[%s5147_s9] sm:$0x1] }
 0xcfa   : > { %v1390_v4 = vsel %vm1387_vm9, %v1389_v62, %v1385_v63 }
 0xcfb   : > { %v1393_v6 = vsel %vm4435_vm5, %v3600_v1, %v1390_v4 }
 0xcfc   : > { %1396 = vrot.lane.b32.xlu0 %v1393_v6, %s5188_s0  ;;  %v1394_v17 = vmul.f32 %v1393_v6, %v4655_v12 }
 0xd52   : > { %v1457_v8 = vpop.permute.xlu1 %1456 }
 0xd53   : > { %v1459_v9 = vmul.f32 %v1457_v8, %v1453_v43 }
 0xd55   : > { %1461 = vrot.lane.b32.xlu0 %v1459_v9, %s5189_s2 }
 0xd6e   : > { %v1397_v10 = vpop.permute.xlu0 %1396 }
 0xd6f   : > { %v1399_v11 = vmul.f32 %v1397_v10, %v1393_v6 }
 0xd71   : > { %1401 = vrot.lane.b32.xlu2 %v1399_v11, %s5189_s2 }
 0xdc7   : > { %v1462_v14 = vpop.permute.xlu0 %1461 }
 0xdc8   : > { %v4694_v15 = vadd.f32 %v1462_v14, %v1454_v13 }
 0xdca   : > { %3601 = vtanh.f32 %v4694_v15 }
 0xdcb   : > { %v1402_v19 = vpop.permute.xlu2 %1401 }
 0xdcc   : > { %v4698_v20 = vadd.f32 %v1402_v19, %v1394_v17 }
 0xdce   : > { %3603 = vtanh.f32 %v4698_v20 }
 0xdd0   : > { %v3602_v45 = vpop.eup %3601 }
 0xdd1   : > { %1467 = vrot.lane.b32.xlu2 %v3602_v45, %s5188_s0 }
 0xdd4   : > { %v3604_v23 = vpop.eup %3603 }
 0xdd5   : > { %1407 = vrot.lane.b32.xlu1 %v3604_v23, %s5188_s0 }
 0xe2b   : > { %v1468_v24 = vpop.permute.xlu2 %1467 }
 0xe2c   : > { %v1470_v21 = vmul.f32 %v1468_v24, %v1453_v43 }
 0xe2e   : > { %1497 = vrot.lane.b32.xlu1 %v1470_v21, %s5189_s2 }
 0xe47   : > { %v1408_v25 = vpop.permute.xlu1 %1407 }
 0xe48   : > { %v1410_v26 = vmul.f32 %v1408_v25, %v1393_v6 }
 0xe4a   : > { %1472 = vrot.lane.b32.xlu0 %v1410_v26, %s5189_s2 }
 0xea0   : > { %v1498_v12 = vpop.permute.xlu1 %1497 }
 0xea1   : > { %3323 = vmatmul.msk.f32.vlgmr.msra.gmra.mxu3 %vm618_vm1, %v1498_v12  ;;  %3325 = vmatmul.msk.f32.vlgmr.msra.gmra.mxu0 %vm618_vm1, %v1498_v12 }
 0xea2   : > { %1960 = vmatpush.msra.mxu0 %v4707_v58  ;;  %1935 = vmatpush.msra.mxu3 %v4710_v16 }
 0xea4   : > { %1961 = vmatpush.msra.mxu0 %v4713_v27  ;;  %1936 = vmatpush.msra.mxu3 %v4716_v2 }
 0xea6   : > { %1962 = vmatpush.msra.mxu0 %v4719_v22  ;;  %1937 = vmatpush.msra.mxu3 %v4722_v51 }
 0xea8   : > { %1963 = vmatpush.msra.mxu0 %v4725_v52  ;;  %1938 = vmatpush.msra.mxu3 %v4728_v53 }
 0xebc   : > { %v1473_v54 = vpop.permute.xlu0 %1472 }
 0xebd   : > { %3322 = vmatmul.msk.f32.vlgmr.msra.gmra.mxu2 %vm618_vm1, %v1473_v54 }
 0xebe   : > { %1871 = vmatpush.msra.mxu2 %v4672_v3 }
 0xec0   : > { %1872 = vmatpush.msra.mxu2 %v4675_v48 }
 0xec2   : > { %1873 = vmatpush.msra.mxu2 %v4678_v49 }
 0xec4   : > { %1874 = vmatpush.msra.mxu2 %v4681_v50 }
 0xf1e   : > { %v1578_v5 = vpop.f32.mrf.mxu0 }
 0xf1f   : > { %v1581_v7 = vadd.f32 %v1578_v5, %v1560_v55 }
 0xf21   : > { %v3326_v28 = vmul.f32 -1.442695, %v1581_v7 }
 0xf23   : > { %3605 = vpow2.f32 %v3326_v28 }
 0xf24   : > { %v1518_v43 = vpop.f32.mrf.mxu3 }
 0xf29   : > { %v3606_v29 = vpop.eup %3605 }
 0xf2a   : > { %v1585_v30 = vadd.f32 1.0, %v3606_v29 }
 0xf2c   : > { %3607 = vrcp.f32 %v1585_v30  ;;  %v1597_v33 = vand.u32 2147483648, %v1585_v30  ;;  %v1595_v36 = vand.u32 2147483647, %v1585_v30  ;;  %vm1591_vm11 = vweird.f32 %v1585_v30 }
 0xf2d   : > { %3609 = vtanh.f32 %v1581_v7 }
 0xf2e   : > { %v1598_v38 = vor.u32 1.1754944e-38, %v1597_v33  ;;  %vm1596_vm13 = vcmp.eq.f32.partialorder %v1595_v36, 8.507059e+37 }
 0xf32   : > { %v3608_v31 = vpop.eup %3607 }
 0xf33   : > { %v1587_v18 = vmul.f32 %v3608_v31, %v1585_v30  ;;  %vm1592_vm10 = vweird.f32 %v3608_v31  ;;  %v3610_v40 = vpop.eup %3609  ;;  %v1709_v30 = vld [vmem:[#allocation3 + $0x7] sm:$0x1] }
 0xf34   : > { %vm1593_vm12 = vmor %vm1591_vm11, %vm1592_vm10 }
 0xf35   : > { %v1588_v32 = vsub.f32 1.0, %v1587_v18 }
 0xf37   : > { %v1589_v34 = vmul.f32 %v3608_v31, %v1588_v32 }
 0xf39   : > { %v1590_v37 = vadd.f32 %v3608_v31, %v1589_v34 }
 0xf3b   : > { %v1594_v39 = vsel %vm1593_vm12, %v3608_v31, %v1590_v37 }
 0xf3c   : > { %v1599_v41 = vsel %vm1596_vm13, %v1598_v38, %v1594_v39 }
 0xf3d   : > { %v1602_v42 = vsel %vm4435_vm5, %v3610_v40, %v1599_v41 }
 0xf3e   : > { %1605 = vrot.lane.b32.xlu2 %v1602_v42, %s5188_s0  ;;  %v1603_v23 = vmul.f32 %v1602_v42, %v4694_v15 }
 0xf40   : > { %v1493_v44 = vpop.f32.mrf.mxu2 }
 0xf41   : > { %v1519_v47 = vadd.f32 %v1518_v43, %v1493_v44 }
 0xf43   : > { %v1521_v57 = vadd.f32 %v4742_v56, %v1519_v47 }
 0xf45   : > { %v3324_v59 = vmul.f32 -1.442695, %v1521_v57 }
 0xf47   : > { %3611 = vpow2.f32 %v3324_v59 }
 0xf4d   : > { %v3612_v60 = vpop.eup %3611 }
 0xf4e   : > { %v1525_v0 = vadd.f32 1.0, %v3612_v60 }
 0xf50   : > { %3613 = vrcp.f32 %v1525_v0  ;;  %v1537_v63 = vand.u32 2147483648, %v1525_v0  ;;  %v1535_v4 = vand.u32 2147483647, %v1525_v0  ;;  %vm1531_vm15 = vweird.f32 %v1525_v0 }
 0xf51   : > { %3615 = vtanh.f32 %v1521_v57 }
 0xf52   : > { %v1538_v8 = vor.u32 1.1754944e-38, %v1537_v63  ;;  %vm1536_vm3 = vcmp.eq.f32.partialorder %v1535_v4, 8.507059e+37 }
 0xf56   : > { %v3614_v61 = vpop.eup %3613 }
 0xf57   : > { %v1527_v46 = vmul.f32 %v3614_v61, %v1525_v0  ;;  %vm1532_vm14 = vweird.f32 %v3614_v61  ;;  %v3616_v10 = vpop.eup %3615 }
 0xf58   : > { %vm1533_vm2 = vmor %vm1531_vm15, %vm1532_vm14 }
 0xf59   : > { %v1528_v62 = vsub.f32 1.0, %v1527_v46 }
 0xf5b   : > { %v1529_v1 = vmul.f32 %v3614_v61, %v1528_v62 }
 0xf5d   : > { %v1530_v6 = vadd.f32 %v3614_v61, %v1529_v1 }
 0xf5f   : > { %v1534_v9 = vsel %vm1533_vm2, %v3614_v61, %v1530_v6 }
 0xf60   : > { %v1539_v11 = vsel %vm1536_vm3, %v1538_v8, %v1534_v9 }
 0xf61   : > { %v1542_v13 = vsel %vm4435_vm5, %v3616_v10, %v1539_v11 }
 0xf62   : > { %1545 = vrot.lane.b32.xlu0 %v1542_v13, %s5188_s0  ;;  %v1543_v26 = vmul.f32 %v1542_v13, %v4698_v20 }
 0xf98   : > { %v1606_v14 = vpop.permute.xlu2 %1605 }
 0xf99   : > { %v1608_v17 = vmul.f32 %v1606_v14, %v1602_v42 }
 0xf9b   : > { %1610 = vrot.lane.b32.xlu1 %v1608_v17, %s5189_s2 }
 0xfd4   : > { %v1546_v19 = vpop.permute.xlu0 %1545 }
 0xfd5   : > { %v1548_v45 = vmul.f32 %v1546_v19, %v1542_v13 }
 0xfd7   : > { %1550 = vrot.lane.b32.xlu2 %v1548_v45, %s5189_s2 }
0x100d   : > { %v1611_v24 = vpop.permute.xlu1 %1610 }
0x100e   : > { %v4751_v21 = vadd.f32 %v1611_v24, %v1603_v23 }
0x1010   : > { %3617 = vtanh.f32 %v4751_v21 }
0x1016   : > { %v3618_v25 = vpop.eup %3617 }
0x1017   : > { %1616 = vrot.lane.b32.xlu0 %v3618_v25, %s5188_s0 }
0x1031   : > { %v1551_v12 = vpop.permute.xlu2 %1550 }
0x1032   : > { %v4756_v54 = vadd.f32 %v1551_v12, %v1543_v26 }
0x1034   : > { %3619 = vtanh.f32 %v4756_v54 }
0x103a   : > { %v3620_v55 = vpop.eup %3619 }
0x103b   : > { %1556 = vrot.lane.b32.xlu1 %v3620_v55, %s5188_s0 }
0x1089   : > { %v1617_v5 = vpop.permute.xlu0 %1616 }
0x108a   : > { %v1619_v15 = vmul.f32 %v1617_v5, %v1602_v42 }
0x108c   : > { %1646 = vrot.lane.b32.xlu2 %v1619_v15, %s5189_s2 }
0x10ad   : > { %v1557_v7 = vpop.permute.xlu1 %1556 }
0x10ae   : > { %v1559_v28 = vmul.f32 %v1557_v7, %v1542_v13 }
0x10b0   : > { %1621 = vrot.lane.b32.xlu0 %v1559_v28, %s5189_s2 }
0x10e6   : > { %v1647_v29 = vpop.permute.xlu2 %1646 }
0x10e7   : > { %3328 = vmatmul.msk.f32.vlgmr.msrb.gmra.mxu2 %vm618_vm1, %v1647_v29  ;;  %3330 = vmatmul.msk.f32.vlgmr.msrb.gmra.mxu3 %vm618_vm1, %v1647_v29 }
0x10e8   : > { %2111 = vmatpush.msrb.mxu3 %v4707_v58  ;;  %2086 = vmatpush.msrb.mxu2 %v4710_v16 }
0x10ea   : > { %2112 = vmatpush.msrb.mxu3 %v4713_v27  ;;  %2087 = vmatpush.msrb.mxu2 %v4716_v2 }
0x10ec   : > { %2113 = vmatpush.msrb.mxu3 %v4719_v22  ;;  %2088 = vmatpush.msrb.mxu2 %v4722_v51 }
0x10ee   : > { %2114 = vmatpush.msrb.mxu3 %v4725_v52  ;;  %2089 = vmatpush.msrb.mxu2 %v4728_v53 }
0x1122   : > { %v1622_v20 = vpop.permute.xlu0 %1621 }
0x1123   : > { %3327 = vmatmul.msk.f32.vlgmr.msrb.gmra.mxu1 %vm618_vm1, %v1622_v20 }
0x1124   : > { %2025 = vmatpush.msrb.mxu1 %v4672_v3 }
0x1126   : > { %2026 = vmatpush.msrb.mxu1 %v4675_v48 }
0x1128   : > { %2027 = vmatpush.msrb.mxu1 %v4678_v49 }
0x112a   : > { %2028 = vmatpush.msrb.mxu1 %v4681_v50 }
0x116a   : > { %v1727_v31 = vpop.f32.mrf.mxu3  ;;  %v1667_v60 = vpop.f32.mrf.mxu2 }
0x116b   : > { %v1730_v18 = vadd.f32 %v1727_v31, %v1709_v30 }
0x116d   : > { %v3331_v32 = vmul.f32 -1.442695, %v1730_v18 }
0x116f   : > { %3621 = vpow2.f32 %v3331_v32 }
0x1175   : > { %v3622_v33 = vpop.eup %3621 }
0x1176   : > { %v1734_v34 = vadd.f32 1.0, %v3622_v33 }
0x1178   : > { %3623 = vrcp.f32 %v1734_v34  ;;  %v1746_v39 = vand.u32 2147483648, %v1734_v34  ;;  %v1744_v41 = vand.u32 2147483647, %v1734_v34  ;;  %vm1740_vm6 = vweird.f32 %v1734_v34 }
0x1179   : > { %3625 = vtanh.f32 %v1730_v18 }
0x117a   : > { %v1747_v43 = vor.u32 1.1754944e-38, %v1746_v39  ;;  %vm1745_vm8 = vcmp.eq.f32.partialorder %v1744_v41, 8.507059e+37 }
0x117e   : > { %v3624_v36 = vpop.eup %3623 }
0x117f   : > { %v1736_v37 = vmul.f32 %v3624_v36, %v1734_v34  ;;  %vm1741_vm4 = vweird.f32 %v3624_v36  ;;  %v3626_v47 = vpop.eup %3625  ;;  %v1858_v34 = vld [vmem:[#allocation3 + $0x8] sm:$0x1] }
0x1180   : > { %vm1742_vm7 = vmor %vm1740_vm6, %vm1741_vm4 }
0x1181   : > { %v1737_v38 = vsub.f32 1.0, %v1736_v37 }
0x1183   : > { %v1738_v40 = vmul.f32 %v3624_v36, %v1737_v38 }
0x1185   : > { %v1739_v42 = vadd.f32 %v3624_v36, %v1738_v40 }
0x1187   : > { %v1743_v44 = vsel %vm1742_vm7, %v3624_v36, %v1739_v42 }
0x1188   : > { %v1748_v57 = vsel %vm1745_vm8, %v1747_v43, %v1743_v44 }
0x1189   : > { %v1751_v59 = vsel %vm4435_vm5, %v3626_v47, %v1748_v57 }
0x118a   : > { %1754 = vrot.lane.b32.xlu2 %v1751_v59, %s5188_s0  ;;  %v1752_v55 = vmul.f32 %v1751_v59, %v4751_v21 }
0x11a0   : > { %v1642_v0 = vpop.f32.mrf.mxu1 }
0x11a1   : > { %v1668_v61 = vadd.f32 %v1667_v60, %v1642_v0 }
0x11a3   : > { %v1670_v46 = vadd.f32 %v4742_v56, %v1668_v61 }
0x11a5   : > { %v3329_v62 = vmul.f32 -1.442695, %v1670_v46 }
0x11a7   : > { %3627 = vpow2.f32 %v3329_v62 }
0x11ad   : > { %v3628_v63 = vpop.eup %3627 }
0x11ae   : > { %v1674_v1 = vadd.f32 1.0, %v3628_v63 }
0x11b0   : > { %3629 = vrcp.f32 %v1674_v1  ;;  %v1686_v9 = vand.u32 2147483648, %v1674_v1  ;;  %v1684_v11 = vand.u32 2147483647, %v1674_v1  ;;  %vm1680_vm10 = vweird.f32 %v1674_v1 }
0x11b1   : > { %3631 = vtanh.f32 %v1670_v46 }
0x11b2   : > { %v1687_v14 = vor.u32 1.1754944e-38, %v1686_v9  ;;  %vm1685_vm12 = vcmp.eq.f32.partialorder %v1684_v11, 8.507059e+37 }
0x11b6   : > { %v3630_v4 = vpop.eup %3629 }
0x11b7   : > { %v1676_v6 = vmul.f32 %v3630_v4, %v1674_v1  ;;  %vm1681_vm9 = vweird.f32 %v3630_v4  ;;  %v3632_v19 = vpop.eup %3631 }
0x11b8   : > { %vm1682_vm11 = vmor %vm1680_vm10, %vm1681_vm9 }
0x11b9   : > { %v1677_v8 = vsub.f32 1.0, %v1676_v6 }
0x11bb   : > { %v1678_v10 = vmul.f32 %v3630_v4, %v1677_v8 }
0x11bd   : > { %v1679_v13 = vadd.f32 %v3630_v4, %v1678_v10 }
0x11bf   : > { %v1683_v17 = vsel %vm1682_vm11, %v3630_v4, %v1679_v13 }
0x11c0   : > { %v1688_v45 = vsel %vm1685_vm12, %v1687_v14, %v1683_v17 }
0x11c1   : > { %v1691_v23 = vsel %vm4435_vm5, %v3632_v19, %v1688_v45 }
0x11c2   : > { %1694 = vrot.lane.b32.xlu1 %v1691_v23, %s5188_s0  ;;  %v1692_v28 = vmul.f32 %v1691_v23, %v4756_v54 }
0x11e4   : > { %v1755_v24 = vpop.permute.xlu2 %1754 }
0x11e5   : > { %v1757_v25 = vmul.f32 %v1755_v24, %v1751_v59 }
0x11e7   : > { %1759 = vrot.lane.b32.xlu1 %v1757_v25, %s5189_s2 }
0x1234   : > { %v1695_v26 = vpop.permute.xlu1 %1694 }
0x1235   : > { %v1697_v12 = vmul.f32 %v1695_v26, %v1691_v23 }
0x1237   : > { %1699 = vrot.lane.b32.xlu0 %v1697_v12, %s5189_s2 }
0x1259   : > { %v1760_v5 = vpop.permute.xlu1 %1759 }
0x125a   : > { %v4787_v15 = vadd.f32 %v1760_v5, %v1752_v55 }
0x125c   : > { %3633 = vtanh.f32 %v4787_v15 }
0x1262   : > { %v3634_v7 = vpop.eup %3633 }
0x1263   : > { %1765 = vrot.lane.b32.xlu0 %v3634_v7, %s5188_s0 }
0x12a9   : > { %v1700_v29 = vpop.permute.xlu0 %1699 }
0x12aa   : > { %v4792_v20 = vadd.f32 %v1700_v29, %v1692_v28 }
0x12ac   : > { %3635 = vtanh.f32 %v4792_v20 }
0x12b2   : > { %v3636_v30 = vpop.eup %3635 }
0x12b3   : > { %1705 = vrot.lane.b32.xlu2 %v3636_v30, %s5188_s0 }
0x12d5   : > { %v1766_v31 = vpop.permute.xlu0 %1765 }
0x12d6   : > { %v1768_v21 = vmul.f32 %v1766_v31, %v1751_v59 }
0x12d8   : > { %1795 = vrot.lane.b32.xlu2 %v1768_v21, %s5189_s2 }
0x130d   : > { %v1706_v18 = vpop.permute.xlu2 %1705 }
0x130e   : > { %v1708_v32 = vmul.f32 %v1706_v18, %v1691_v23 }
0x1310   : > { %1770 = vrot.lane.b32.xlu1 %v1708_v32, %s5189_s2 }
0x1332   : > { %v1796_v33 = vpop.permute.xlu2 %1795 }
0x1333   : > { %3333 = vmatmul.msk.f32.vlgmr.msra.gmra.mxu1 %vm618_vm1, %v1796_v33  ;;  %3335 = vmatmul.msk.f32.vlgmr.msra.gmra.mxu2 %vm618_vm1, %v1796_v33 }
0x1334   : > { %2262 = vmatpush.msra.mxu2 %v4707_v58  ;;  %2237 = vmatpush.msra.mxu1 %v4710_v16 }
0x1336   : > { %2263 = vmatpush.msra.mxu2 %v4713_v27  ;;  %2238 = vmatpush.msra.mxu1 %v4716_v2 }
0x1338   : > { %2264 = vmatpush.msra.mxu2 %v4719_v22  ;;  %2239 = vmatpush.msra.mxu1 %v4722_v51 }
0x133a   : > { %2265 = vmatpush.msra.mxu2 %v4725_v52  ;;  %2240 = vmatpush.msra.mxu1 %v4728_v53 }
0x1382   : > { %v1771_v54 = vpop.permute.xlu1 %1770 }
0x1383   : > { %3332 = vmatmul.msk.f32.vlgmr.msrb.gmra.mxu0 %vm618_vm1, %v1771_v54 }
0x1384   : > { %2176 = vmatpush.msrb.mxu0 %v4672_v3 }
0x1386   : > { %2177 = vmatpush.msrb.mxu0 %v4675_v48 }
0x1388   : > { %2178 = vmatpush.msrb.mxu0 %v4678_v49 }
0x138a   : > { %2179 = vmatpush.msrb.mxu0 %v4681_v50 }
0x13b0   : > { %v1816_v63 = vpop.f32.mrf.mxu1 }
0x13b6   : > { %v1876_v36 = vpop.f32.mrf.mxu2 }
0x13b7   : > { %v1879_v37 = vadd.f32 %v1876_v36, %v1858_v34 }
0x13b9   : > { %v3336_v38 = vmul.f32 -1.442695, %v1879_v37 }
0x13bb   : > { %3637 = vpow2.f32 %v3336_v38 }
0x13c1   : > { %v3638_v39 = vpop.eup %3637 }
0x13c2   : > { %v1883_v40 = vadd.f32 1.0, %v3638_v39 }
0x13c4   : > { %3639 = vrcp.f32 %v1883_v40  ;;  %v1895_v44 = vand.u32 2147483648, %v1883_v40  ;;  %v1893_v57 = vand.u32 2147483647, %v1883_v40  ;;  %vm1889_vm14 = vweird.f32 %v1883_v40 }
0x13c5   : > { %3641 = vtanh.f32 %v1879_v37 }
0x13c6   : > { %v1896_v60 = vor.u32 1.1754944e-38, %v1895_v44  ;;  %vm1894_vm2 = vcmp.eq.f32.partialorder %v1893_v57, 8.507059e+37 }
0x13ca   : > { %v3640_v41 = vpop.eup %3639 }
0x13cb   : > { %v1885_v42 = vmul.f32 %v3640_v41, %v1883_v40  ;;  %vm1890_vm13 = vweird.f32 %v3640_v41  ;;  %v3642_v61 = vpop.eup %3641  ;;  %v2012_v40 = vld [vmem:[#allocation3 + $0x9] sm:$0x1] }
0x13cc   : > { %vm1891_vm15 = vmor %vm1889_vm14, %vm1890_vm13 }
0x13cd   : > { %v1886_v43 = vsub.f32 1.0, %v1885_v42 }
0x13cf   : > { %v1887_v47 = vmul.f32 %v3640_v41, %v1886_v43 }
0x13d1   : > { %v1888_v59 = vadd.f32 %v3640_v41, %v1887_v47 }
0x13d3   : > { %v1892_v0 = vsel %vm1891_vm15, %v3640_v41, %v1888_v59 }
0x13d4   : > { %v1897_v46 = vsel %vm1894_vm2, %v1896_v60, %v1892_v0 }
0x13d5   : > { %v1900_v62 = vsel %vm4435_vm5, %v3642_v61, %v1897_v46 }
0x13d6   : > { %1903 = vrot.lane.b32.xlu1 %v1900_v62, %s5188_s0  ;;  %v1901_v30 = vmul.f32 %v1900_v62, %v4787_v15 }
0x1400   : > { %v1791_v1 = vpop.f32.mrf.mxu0 }
0x1401   : > { %v1817_v4 = vadd.f32 %v1816_v63, %v1791_v1 }
0x1403   : > { %v1819_v6 = vadd.f32 %v4742_v56, %v1817_v4 }
0x1405   : > { %v3334_v8 = vmul.f32 -1.442695, %v1819_v6 }
0x1407   : > { %3643 = vpow2.f32 %v3334_v8 }
0x140d   : > { %v3644_v9 = vpop.eup %3643 }
0x140e   : > { %v1823_v10 = vadd.f32 1.0, %v3644_v9 }
0x1410   : > { %3645 = vrcp.f32 %v1823_v10  ;;  %v1835_v17 = vand.u32 2147483648, %v1823_v10  ;;  %v1833_v45 = vand.u32 2147483647, %v1823_v10  ;;  %vm1829_vm4 = vweird.f32 %v1823_v10 }
0x1411   : > { %3647 = vtanh.f32 %v1819_v6 }
0x1412   : > { %v1836_v24 = vor.u32 1.1754944e-38, %v1835_v17  ;;  %vm1834_vm7 = vcmp.eq.f32.partialorder %v1833_v45, 8.507059e+37 }
0x1416   : > { %v3646_v11 = vpop.eup %3645 }
0x1417   : > { %v1825_v13 = vmul.f32 %v3646_v11, %v1823_v10  ;;  %vm1830_vm3 = vweird.f32 %v3646_v11  ;;  %v3648_v26 = vpop.eup %3647 }
0x1418   : > { %vm1831_vm6 = vmor %vm1829_vm4, %vm1830_vm3 }
0x1419   : > { %v1826_v14 = vsub.f32 1.0, %v1825_v13 }
0x141b   : > { %v1827_v19 = vmul.f32 %v3646_v11, %v1826_v14 }
0x141d   : > { %v1828_v23 = vadd.f32 %v3646_v11, %v1827_v19 }
0x141f   : > { %v1832_v25 = vsel %vm1831_vm6, %v3646_v11, %v1828_v23 }
0x1420   : > { %v1837_v12 = vsel %vm1834_vm7, %v1836_v24, %v1832_v25 }
0x1421   : > { %v1840_v55 = vsel %vm4435_vm5, %v3648_v26, %v1837_v12 }
0x1422   : > { %1843 = vrot.lane.b32.xlu0 %v1840_v55, %s5188_s0  ;;  %v1841_v32 = vmul.f32 %v1840_v55, %v4792_v20 }
0x1448   : > { %v1904_v5 = vpop.permute.xlu1 %1903 }
0x1449   : > { %v1906_v7 = vmul.f32 %v1904_v5, %v1900_v62 }
0x144b   : > { %1908 = vrot.lane.b32.xlu0 %v1906_v7, %s5189_s2 }
0x1494   : > { %v1844_v28 = vpop.permute.xlu0 %1843 }
0x1495   : > { %v1846_v29 = vmul.f32 %v1844_v28, %v1840_v55 }
0x1497   : > { %1848 = vrot.lane.b32.xlu2 %v1846_v29, %s5189_s2 }
0x14bd   : > { %v1909_v31 = vpop.permute.xlu0 %1908 }
0x14be   : > { %v4823_v21 = vadd.f32 %v1909_v31, %v1901_v30 }
0x14c0   : > { %3649 = vtanh.f32 %v4823_v21 }
0x14c6   : > { %v3650_v18 = vpop.eup %3649 }
0x14c7   : > { %1914 = vrot.lane.b32.xlu2 %v3650_v18, %s5188_s0 }
0x14f1   : > { %v1849_v33 = vpop.permute.xlu2 %1848 }
0x14f2   : > { %v4828_v54 = vadd.f32 %v1849_v33, %v1841_v32 }
0x14f4   : > { %3651 = vtanh.f32 %v4828_v54 }
0x14fa   : > { %v3652_v34 = vpop.eup %3651 }
0x14fb   : > { %1854 = vrot.lane.b32.xlu1 %v3652_v34, %s5188_s0 }
0x1521   : > { %v1915_v36 = vpop.permute.xlu2 %1914 }
0x1522   : > { %v1917_v15 = vmul.f32 %v1915_v36, %v1900_v62 }
0x1524   : > { %1944 = vrot.lane.b32.xlu1 %v1917_v15, %s5189_s2 }
0x156d   : > { %v1855_v37 = vpop.permute.xlu1 %1854 }
0x156e   : > { %v1857_v38 = vmul.f32 %v1855_v37, %v1840_v55 }
0x1570   : > { %1919 = vrot.lane.b32.xlu0 %v1857_v38, %s5189_s2 }
0x1596   : > { %v1945_v39 = vpop.permute.xlu1 %1944 }
0x1597   : > { %3338 = vmatmul.msk.f32.vlgmr.msra.gmra.mxu0 %vm618_vm1, %v1945_v39  ;;  %3340 = vmatmul.msk.f32.vlgmr.msrb.gmra.mxu1 %vm618_vm1, %v1945_v39 }
0x1598   : > { %2413 = vmatpush.msrb.mxu1 %v4707_v58  ;;  %2388 = vmatpush.msra.mxu0 %v4710_v16 }
0x159a   : > { %2414 = vmatpush.msrb.mxu1 %v4713_v27  ;;  %2389 = vmatpush.msra.mxu0 %v4716_v2 }
0x159c   : > { %2415 = vmatpush.msrb.mxu1 %v4719_v22  ;;  %2390 = vmatpush.msra.mxu0 %v4722_v51 }
0x159e   : > { %2416 = vmatpush.msrb.mxu1 %v4725_v52  ;;  %2391 = vmatpush.msra.mxu0 %v4728_v53 }
0x15e2   : > { %v1920_v20 = vpop.permute.xlu0 %1919 }
0x15e3   : > { %3337 = vmatmul.msk.f32.vlgmr.msra.gmra.mxu3 %vm618_vm1, %v1920_v20 }
0x15e4   : > { %2327 = vmatpush.msra.mxu3 %v4672_v3 }
0x15e6   : > { %2328 = vmatpush.msra.mxu3 %v4675_v48 }
0x15e8   : > { %2329 = vmatpush.msra.mxu3 %v4678_v49 }
0x15ea   : > { %2330 = vmatpush.msra.mxu3 %v4681_v50 }
0x1614   : > { %v2030_v41 = vpop.f32.mrf.mxu1  ;;  %v1965_v9 = vpop.f32.mrf.mxu0 }
0x1615   : > { %v2033_v42 = vadd.f32 %v2030_v41, %v2012_v40 }
0x1617   : > { %v3341_v43 = vmul.f32 -1.442695, %v2033_v42 }
0x1619   : > { %3653 = vpow2.f32 %v3341_v43 }
0x161f   : > { %v3654_v44 = vpop.eup %3653 }
0x1620   : > { %v2037_v47 = vadd.f32 1.0, %v3654_v44 }
0x1622   : > { %3655 = vrcp.f32 %v2037_v47  ;;  %v2049_v0 = vand.u32 2147483648, %v2037_v47  ;;  %v2047_v46 = vand.u32 2147483647, %v2037_v47  ;;  %vm2043_vm9 = vweird.f32 %v2037_v47 }
0x1623   : > { %3657 = vtanh.f32 %v2033_v42 }
0x1624   : > { %v2050_v63 = vor.u32 1.1754944e-38, %v2049_v0  ;;  %vm2048_vm11 = vcmp.eq.f32.partialorder %v2047_v46, 8.507059e+37 }
0x1628   : > { %v3656_v57 = vpop.eup %3655 }
0x1629   : > { %v2039_v59 = vmul.f32 %v3656_v57, %v2037_v47  ;;  %vm2044_vm8 = vweird.f32 %v3656_v57  ;;  %v3658_v4 = vpop.eup %3657  ;;  %v2163_v47 = vld [vmem:[#allocation3 + $0xa] sm:$0x1] }
0x162a   : > { %vm2045_vm10 = vmor %vm2043_vm9, %vm2044_vm8 }
0x162b   : > { %v2040_v60 = vsub.f32 1.0, %v2039_v59 }
0x162d   : > { %v2041_v61 = vmul.f32 %v3656_v57, %v2040_v60 }
0x162f   : > { %v2042_v62 = vadd.f32 %v3656_v57, %v2041_v61 }
0x1631   : > { %v2046_v1 = vsel %vm2045_vm10, %v3656_v57, %v2042_v62 }
0x1632   : > { %v2051_v6 = vsel %vm2048_vm11, %v2050_v63, %v2046_v1 }
0x1633   : > { %v2054_v8 = vsel %vm4435_vm5, %v3658_v4, %v2051_v6 }
0x1634   : > { %2057 = vrot.lane.b32.xlu0 %v2054_v8, %s5188_s0  ;;  %v2055_v34 = vmul.f32 %v2054_v8, %v4823_v21 }
0x1666   : > { %v1940_v10 = vpop.f32.mrf.mxu3 }
0x1667   : > { %v1966_v11 = vadd.f32 %v1965_v9, %v1940_v10 }
0x1669   : > { %v1968_v13 = vadd.f32 %v4742_v56, %v1966_v11 }
0x166b   : > { %v3339_v14 = vmul.f32 -1.442695, %v1968_v13 }
0x166d   : > { %3659 = vpow2.f32 %v3339_v14 }
0x1673   : > { %v3660_v17 = vpop.eup %3659 }
0x1674   : > { %v1972_v19 = vadd.f32 1.0, %v3660_v17 }
0x1676   : > { %3661 = vrcp.f32 %v1972_v19  ;;  %v1984_v25 = vand.u32 2147483648, %v1972_v19  ;;  %v1982_v12 = vand.u32 2147483647, %v1972_v19  ;;  %vm1978_vm13 = vweird.f32 %v1972_v19 }
0x1677   : > { %3663 = vtanh.f32 %v1968_v13 }
0x1678   : > { %v1985_v5 = vor.u32 1.1754944e-38, %v1984_v25  ;;  %vm1983_vm15 = vcmp.eq.f32.partialorder %v1982_v12, 8.507059e+37 }
0x167c   : > { %v3662_v45 = vpop.eup %3661 }
0x167d   : > { %v1974_v23 = vmul.f32 %v3662_v45, %v1972_v19  ;;  %vm1979_vm12 = vweird.f32 %v3662_v45  ;;  %v3664_v28 = vpop.eup %3663 }
0x167e   : > { %vm1980_vm14 = vmor %vm1978_vm13, %vm1979_vm12 }
0x167f   : > { %v1975_v24 = vsub.f32 1.0, %v1974_v23 }
0x1681   : > { %v1976_v26 = vmul.f32 %v3662_v45, %v1975_v24 }
0x1683   : > { %v1977_v55 = vadd.f32 %v3662_v45, %v1976_v26 }
0x1685   : > { %v1981_v7 = vsel %vm1980_vm14, %v3662_v45, %v1977_v55 }
0x1686   : > { %v1986_v29 = vsel %vm1983_vm15, %v1985_v5, %v1981_v7 }
0x1687   : > { %v1989_v30 = vsel %vm4435_vm5, %v3664_v28, %v1986_v29 }
0x1688   : > { %1992 = vrot.lane.b32.xlu2 %v1989_v30, %s5188_s0  ;;  %v1990_v38 = vmul.f32 %v1989_v30, %v4828_v54 }
0x16a6   : > { %v2058_v31 = vpop.permute.xlu0 %2057 }
0x16a7   : > { %v2060_v18 = vmul.f32 %v2058_v31, %v2054_v8 }
0x16a9   : > { %2062 = vrot.lane.b32.xlu2 %v2060_v18, %s5189_s2 }
0x16e2   : > { %v1993_v32 = vpop.permute.xlu2 %1992 }
0x16e3   : > { %v1995_v33 = vmul.f32 %v1993_v32, %v1989_v30 }
0x16e5   : > { %1997 = vrot.lane.b32.xlu1 %v1995_v33, %s5189_s2 }
0x1703   : > { %v2063_v36 = vpop.permute.xlu2 %2062 }
0x1704   : > { %v4859_v15 = vadd.f32 %v2063_v36, %v2055_v34 }
0x1706   : > { %3665 = vtanh.f32 %v4859_v15 }
0x170c   : > { %v3666_v37 = vpop.eup %3665 }
0x170d   : > { %2068 = vrot.lane.b32.xlu1 %v3666_v37, %s5188_s0 }
0x1757   : > { %v1998_v39 = vpop.permute.xlu1 %1997 }
0x1758   : > { %v4864_v20 = vadd.f32 %v1998_v39, %v1990_v38 }
0x175a   : > { %3667 = vtanh.f32 %v4864_v20 }
0x1760   : > { %v3668_v40 = vpop.eup %3667 }
0x1761   : > { %2003 = vrot.lane.b32.xlu0 %v3668_v40, %s5188_s0 }
0x177f   : > { %v2069_v41 = vpop.permute.xlu1 %2068 }
0x1780   : > { %v2071_v21 = vmul.f32 %v2069_v41, %v2054_v8 }
0x1782   : > { %2095 = vrot.lane.b32.xlu0 %v2071_v21, %s5189_s2 }
0x17d3   : > { %v2004_v42 = vpop.permute.xlu0 %2003 }
0x17d4   : > { %v2006_v43 = vmul.f32 %v2004_v42, %v1989_v30 }
0x17d6   : > { %2008 = vrot.lane.b32.xlu2 %v2006_v43, %s5189_s2 }
0x17f4   : > { %v2096_v44 = vpop.permute.xlu0 %2095 }
0x17f5   : > { %3343 = vmatmul.msk.f32.vlgmr.msrb.gmra.mxu3 %vm618_vm1, %v2096_v44  ;;  %3345 = vmatmul.msk.f32.vlgmr.msrb.gmra.mxu0 %vm618_vm1, %v2096_v44 }
0x17f6   : > { %2564 = vmatpush.msrb.mxu0 %v4707_v58  ;;  %2539 = vmatpush.msrb.mxu3 %v4710_v16 }
0x17f8   : > { %2565 = vmatpush.msrb.mxu0 %v4713_v27  ;;  %2540 = vmatpush.msrb.mxu3 %v4716_v2 }
0x17fa   : > { %2566 = vmatpush.msrb.mxu0 %v4719_v22  ;;  %2541 = vmatpush.msrb.mxu3 %v4722_v51 }
0x17fc   : > { %2567 = vmatpush.msrb.mxu0 %v4725_v52  ;;  %2542 = vmatpush.msrb.mxu3 %v4728_v53 }
0x1830   : > { %v2009_v54 = vpop.permute.xlu2 %2008 }
0x1831   : > { %2011 = vst.msk [vmem:[#allocation4] sm:$0x1] %vm539_vm0, %v2009_v54  ;;  %3342 = vmatmul.msk.f32.vlgmr.msrb.gmra.mxu2 %vm618_vm1, %v2009_v54 }
0x1832   : > { %2478 = vmatpush.msrb.mxu2 %v4672_v3 }
0x1834   : > { %2479 = vmatpush.msrb.mxu2 %v4675_v48 }
0x1836   : > { %2480 = vmatpush.msrb.mxu2 %v4678_v49 }
0x1838   : > { %2481 = vmatpush.msrb.mxu2 %v4681_v50 }
0x1872   : > { %v2181_v57 = vpop.f32.mrf.mxu0 }
0x1873   : > { %v2184_v59 = vadd.f32 %v2181_v57, %v2163_v47 }
0x1875   : > { %v3346_v60 = vmul.f32 -1.442695, %v2184_v59 }
0x1877   : > { %3669 = vpow2.f32 %v3346_v60 }
0x1878   : > { %v2116_v10 = vpop.f32.mrf.mxu3 }
0x187d   : > { %v3670_v0 = vpop.eup %3669 }
0x187e   : > { %v2188_v61 = vadd.f32 1.0, %v3670_v0 }
0x1880   : > { %3671 = vrcp.f32 %v2188_v61  ;;  %v2200_v1 = vand.u32 2147483648, %v2188_v61  ;;  %v2198_v48 = vand.u32 2147483647, %v2188_v61  ;;  %vm2194_vm3 = vweird.f32 %v2188_v61 }
0x1881   : > { %3673 = vtanh.f32 %v2184_v59 }
0x1882   : > { %v2201_v49 = vor.u32 1.1754944e-38, %v2200_v1  ;;  %vm2199_vm6 = vcmp.eq.f32.partialorder %v2198_v48, 8.507059e+37 }
0x1886   : > { %v3672_v46 = vpop.eup %3671 }
0x1887   : > { %v2190_v62 = vmul.f32 %v3672_v46, %v2188_v61  ;;  %vm2195_vm2 = vweird.f32 %v3672_v46  ;;  %v3674_v6 = vpop.eup %3673 }
0x1888   : > { %vm2196_vm4 = vmor %vm2194_vm3, %vm2195_vm2 }
0x1889   : > { %v2191_v63 = vsub.f32 1.0, %v2190_v62 }
0x188b   : > { %v2192_v3 = vmul.f32 %v3672_v46, %v2191_v63 }
0x188d   : > { %v2193_v4 = vadd.f32 %v3672_v46, %v2192_v3 }
0x188f   : > { %v2197_v50 = vsel %vm2196_vm4, %v3672_v46, %v2193_v4 }
0x1890   : > { %v2202_v8 = vsel %vm2199_vm6, %v2201_v49, %v2197_v50 }
0x1891   : > { %v2205_v9 = vsel %vm4435_vm5, %v3674_v6, %v2202_v8 }
0x1892   : > { %2208 = vrot.lane.b32.xlu1 %v2205_v9, %s5188_s0  ;;  %v2206_v36 = vmul.f32 %v2205_v9, %v4859_v15 }
0x18b4   : > { %v2091_v11 = vpop.f32.mrf.mxu2 }
0x18b5   : > { %v2117_v13 = vadd.f32 %v2116_v10, %v2091_v11 }
0x18b7   : > { %v2119_v14 = vadd.f32 %v4742_v56, %v2117_v13 }
0x18b9   : > { %v3344_v17 = vmul.f32 -1.442695, %v2119_v14 }
0x18bb   : > { %3675 = vpow2.f32 %v3344_v17 }
0x18c1   : > { %v3676_v19 = vpop.eup %3675 }
0x18c2   : > { %v2123_v45 = vadd.f32 1.0, %v3676_v19 }
0x18c4   : > { %3677 = vrcp.f32 %v2123_v45  ;;  %v2135_v26 = vand.u32 2147483648, %v2123_v45  ;;  %v2133_v55 = vand.u32 2147483647, %v2123_v45  ;;  %vm2129_vm8 = vweird.f32 %v2123_v45 }
0x18c5   : > { %3679 = vtanh.f32 %v2119_v14 }
0x18c6   : > { %v2136_v7 = vor.u32 1.1754944e-38, %v2135_v26  ;;  %vm2134_vm10 = vcmp.eq.f32.partialorder %v2133_v55, 8.507059e+37 }
0x18ca   : > { %v3678_v23 = vpop.eup %3677 }
0x18cb   : > { %v2125_v24 = vmul.f32 %v3678_v23, %v2123_v45  ;;  %vm2130_vm7 = vweird.f32 %v3678_v23  ;;  %v3680_v29 = vpop.eup %3679 }
0x18cc   : > { %vm2131_vm9 = vmor %vm2129_vm8, %vm2130_vm7 }
0x18cd   : > { %v2126_v25 = vsub.f32 1.0, %v2125_v24 }
0x18cf   : > { %v2127_v12 = vmul.f32 %v3678_v23, %v2126_v25 }
0x18d1   : > { %v2128_v5 = vadd.f32 %v3678_v23, %v2127_v12 }
0x18d3   : > { %v2132_v28 = vsel %vm2131_vm9, %v3678_v23, %v2128_v5 }
0x18d4   : > { %v2137_v30 = vsel %vm2134_vm10, %v2136_v7, %v2132_v28 }
0x18d5   : > { %v2140_v31 = vsel %vm4435_vm5, %v3680_v29, %v2137_v30 }
0x18d6   : > { %2143 = vrot.lane.b32.xlu2 %v2140_v31, %s5188_s0  ;;  %v2141_v40 = vmul.f32 %v2140_v31, %v4864_v20 }
0x1904   : > { %v2209_v18 = vpop.permute.xlu1 %2208 }
0x1905   : > { %v2211_v32 = vmul.f32 %v2209_v18, %v2205_v9 }
0x1907   : > { %2213 = vrot.lane.b32.xlu0 %v2211_v32, %s5189_s2 }
0x1930   : > { %v2144_v33 = vpop.permute.xlu2 %2143 }
0x1931   : > { %v2146_v34 = vmul.f32 %v2144_v33, %v2140_v31 }
0x1933   : > { %2148 = vrot.lane.b32.xlu1 %v2146_v34, %s5189_s2 }
0x1979   : > { %v2214_v37 = vpop.permute.xlu0 %2213 }
0x197a   : > { %v4896_v38 = vadd.f32 %v2214_v37, %v2206_v36 }
0x197c   : > { %3681 = vtanh.f32 %v4896_v38 }
0x1982   : > { %v3682_v39 = vpop.eup %3681 }
0x1983   : > { %2219 = vrot.lane.b32.xlu2 %v3682_v39, %s5188_s0 }
0x19a5   : > { %v2149_v41 = vpop.permute.xlu1 %2148 }
0x19a6   : > { %v4901_v21 = vadd.f32 %v2149_v41, %v2141_v40 }
0x19a8   : > { %3683 = vtanh.f32 %v4901_v21 }
0x19ae   : > { %v3684_v42 = vpop.eup %3683 }
0x19af   : > { %2154 = vrot.lane.b32.xlu0 %v3684_v42, %s5188_s0 }
0x19dd   : > { %v2220_v43 = vpop.permute.xlu2 %2219 }
0x19de   : > { %v2222_v15 = vmul.f32 %v2220_v43, %v2205_v9 }
0x19e0   : > { %2246 = vrot.lane.b32.xlu1 %v2222_v15, %s5189_s2 }
0x1a21   : > { %v2155_v44 = vpop.permute.xlu0 %2154 }
0x1a22   : > { %v2157_v54 = vmul.f32 %v2155_v44, %v2140_v31  ;;  %v4957_v44 = vld [vmem:[#allocation18 + $0x18] sm:$0xff] }
0x1a24   : > { %2159 = vrot.lane.b32.xlu2 %v2157_v54, %s5189_s2  ;;  %v4960_v54 = vld [vmem:[#allocation17 + $0x10] sm:$0xff] }
0x1a52   : > { %v2247_v47 = vpop.permute.xlu1 %2246 }
0x1a53   : > { %3348 = vmatmul.msk.f32.vlgmr.msra.gmra.mxu2 %vm618_vm1, %v2247_v47  ;;  %3350 = vmatmul.msk.f32.vlgmr.msra.gmra.mxu3 %vm618_vm1, %v2247_v47  ;;  %v4963_v47 = vld [vmem:[#allocation18 + $0x10] sm:$0xff] }
0x1a54   : > { %2715 = vmatpush.msra.mxu3 %v4707_v58  ;;  %2690 = vmatpush.msra.mxu2 %v4710_v16  ;;  %v4919_v58 = vld [vmem:[#allocation15 + $0x18] sm:$0xff]  ;;  %v4922_v16 = vld [vmem:[#allocation15 + $0x10] sm:$0xff] }
0x1a56   : > { %2716 = vmatpush.msra.mxu3 %v4713_v27  ;;  %2691 = vmatpush.msra.mxu2 %v4716_v2  ;;  %v4925_v27 = vld [vmem:[#allocation15 + $0x8] sm:$0xff]  ;;  %v4928_v2 = vld [vmem:[#allocation15] sm:$0xff] }
0x1a58   : > { %2717 = vmatpush.msra.mxu3 %v4719_v22  ;;  %2692 = vmatpush.msra.mxu2 %v4722_v51  ;;  %v2314_v22 = vld [vmem:[#allocation3 + $0xb] sm:$0x1] }
0x1a5a   : > { %2718 = vmatpush.msra.mxu3 %v4725_v52  ;;  %2693 = vmatpush.msra.mxu2 %v4728_v53 }
0x1a7e   : > { %v2160_v20 = vpop.permute.xlu2 %2159 }
0x1a7f   : > { %2162 = vst.msk [vmem:[#allocation4 + $0x1] sm:$0x1] %vm539_vm0, %v2160_v20  ;;  %3347 = vmatmul.msk.f32.vlgmr.msra.gmra.mxu1 %vm618_vm1, %v2160_v20  ;;  %v4966_v20 = vld [vmem:[#allocation17 + $0x8] sm:$0xff] }
0x1a80   : > { %2629 = vmatpush.msra.mxu1 %v4919_v58 }
0x1a82   : > { %2630 = vmatpush.msra.mxu1 %v4922_v16 }
0x1a84   : > { %2631 = vmatpush.msra.mxu1 %v4925_v27 }
0x1a86   : > { %2632 = vmatpush.msra.mxu1 %v4928_v2 }
0x1ad6   : > { %v2332_v51 = vpop.f32.mrf.mxu3  ;;  %v2267_v6 = vpop.f32.mrf.mxu2 }
0x1ad7   : > { %v2335_v52 = vadd.f32 %v2332_v51, %v2314_v22  ;;  %v4969_v22 = vld [vmem:[#allocation18 + $0x8] sm:$0xff]  ;;  %v4972_v51 = vld [vmem:[#allocation17] sm:$0xff] }
0x1ad9   : > { %v3351_v53 = vmul.f32 -1.442695, %v2335_v52 }
0x1adb   : > { %3685 = vpow2.f32 %v3351_v53 }
0x1ae1   : > { %v3686_v57 = vpop.eup %3685 }
0x1ae2   : > { %v2339_v59 = vadd.f32 1.0, %v3686_v57  ;;  %v2465_v57 = vld [vmem:[#allocation3 + $0xc] sm:$0x1] }
0x1ae4   : > { %3687 = vrcp.f32 %v2339_v59  ;;  %v2351_v46 = vand.u32 2147483648, %v2339_v59  ;;  %v2349_v63 = vand.u32 2147483647, %v2339_v59  ;;  %vm2345_vm12 = vweird.f32 %v2339_v59 }
0x1ae5   : > { %3689 = vtanh.f32 %v2335_v52  ;;  %v4975_v52 = vld [vmem:[#allocation18] sm:$0xff] }
0x1ae6   : > { %v2352_v3 = vor.u32 1.1754944e-38, %v2351_v46  ;;  %vm2350_vm14 = vcmp.eq.f32.partialorder %v2349_v63, 8.507059e+37 }
0x1aea   : > { %v3688_v60 = vpop.eup %3687 }
0x1aeb   : > { %v2341_v0 = vmul.f32 %v3688_v60, %v2339_v59  ;;  %vm2346_vm11 = vweird.f32 %v3688_v60  ;;  %v3690_v4 = vpop.eup %3689 }
0x1aec   : > { %vm2347_vm13 = vmor %vm2345_vm12, %vm2346_vm11 }
0x1aed   : > { %v2342_v61 = vsub.f32 1.0, %v2341_v0 }
0x1aef   : > { %v2343_v62 = vmul.f32 %v3688_v60, %v2342_v61 }
0x1af1   : > { %v2344_v1 = vadd.f32 %v3688_v60, %v2343_v62 }
0x1af3   : > { %v2348_v48 = vsel %vm2347_vm13, %v3688_v60, %v2344_v1 }
0x1af4   : > { %v2353_v49 = vsel %vm2350_vm14, %v2352_v3, %v2348_v48 }
0x1af5   : > { %v2356_v50 = vsel %vm4435_vm5, %v3690_v4, %v2353_v49 }
0x1af6   : > { %2359 = vrot.lane.b32.xlu1 %v2356_v50, %s5188_s0  ;;  %v2357_v18 = vmul.f32 %v2356_v50, %v4896_v38 }
0x1afc   : > { %v2242_v8 = vpop.f32.mrf.mxu1 }
0x1afd   : > { %v2268_v9 = vadd.f32 %v2267_v6, %v2242_v8 }
0x1aff   : > { %v2270_v10 = vadd.f32 %v4742_v56, %v2268_v9 }
0x1b01   : > { %v3349_v11 = vmul.f32 -1.442695, %v2270_v10 }
0x1b03   : > { %3691 = vpow2.f32 %v3349_v11 }
0x1b09   : > { %v3692_v13 = vpop.eup %3691 }
0x1b0a   : > { %v2274_v14 = vadd.f32 1.0, %v3692_v13 }
0x1b0c   : > { %3693 = vrcp.f32 %v2274_v14  ;;  %v2286_v23 = vand.u32 2147483648, %v2274_v14  ;;  %v2284_v25 = vand.u32 2147483647, %v2274_v14  ;;  %vm2280_vm2 = vweird.f32 %v2274_v14 }
0x1b0d   : > { %3695 = vtanh.f32 %v2270_v10 }
0x1b0e   : > { %v2287_v12 = vor.u32 1.1754944e-38, %v2286_v23  ;;  %vm2285_vm4 = vcmp.eq.f32.partialorder %v2284_v25, 8.507059e+37 }
0x1b12   : > { %v3694_v17 = vpop.eup %3693 }
0x1b13   : > { %v2276_v19 = vmul.f32 %v3694_v17, %v2274_v14  ;;  %vm2281_vm15 = vweird.f32 %v3694_v17  ;;  %v3696_v56 = vpop.eup %3695 }
0x1b14   : > { %vm2282_vm3 = vmor %vm2280_vm2, %vm2281_vm15 }
0x1b15   : > { %v2277_v45 = vsub.f32 1.0, %v2276_v19 }
0x1b17   : > { %v2278_v24 = vmul.f32 %v3694_v17, %v2277_v45 }
0x1b19   : > { %v2279_v26 = vadd.f32 %v3694_v17, %v2278_v24 }
0x1b1b   : > { %v2283_v55 = vsel %vm2282_vm3, %v3694_v17, %v2279_v26  ;;  %v4990_v17 = vld [vmem:[%s5147_s9] sm:$0x1] }
0x1b1c   : > { %v2288_v5 = vsel %vm2285_vm4, %v2287_v12, %v2283_v55 }
0x1b1d   : > { %v2291_v7 = vsel %vm4435_vm5, %v3696_v56, %v2288_v5 }
0x1b1e   : > { %2294 = vrot.lane.b32.xlu0 %v2291_v7, %s5188_s0  ;;  %v2292_v36 = vmul.f32 %v2291_v7, %v4901_v21  ;;  %v4954_v21 = vld [vmem:[#allocation17 + $0x18] sm:$0xff] }
0x1b68   : > { %v2360_v28 = vpop.permute.xlu1 %2359 }
0x1b69   : > { %v2362_v29 = vmul.f32 %v2360_v28, %v2356_v50 }
0x1b6b   : > { %2364 = vrot.lane.b32.xlu0 %v2362_v29, %s5189_s2 }
0x1b90   : > { %v2295_v30 = vpop.permute.xlu0 %2294 }
0x1b91   : > { %v2297_v31 = vmul.f32 %v2295_v30, %v2291_v7 }
0x1b93   : > { %2299 = vrot.lane.b32.xlu2 %v2297_v31, %s5189_s2 }
0x1bdd   : > { %v2365_v32 = vpop.permute.xlu0 %2364 }
0x1bde   : > { %v4941_v33 = vadd.f32 %v2365_v32, %v2357_v18 }
0x1be0   : > { %3697 = vtanh.f32 %v4941_v33 }
0x1be6   : > { %v3698_v34 = vpop.eup %3697 }
0x1be7   : > { %2370 = vrot.lane.b32.xlu2 %v3698_v34, %s5188_s0 }
0x1bed   : > { %v2300_v37 = vpop.permute.xlu2 %2299 }
0x1bee   : > { %v4946_v39 = vadd.f32 %v2300_v37, %v2292_v36 }
0x1bf0   : > { %3699 = vtanh.f32 %v4946_v39 }
0x1bf6   : > { %v3700_v40 = vpop.eup %3699 }
0x1bf7   : > { %2305 = vrot.lane.b32.xlu1 %v3700_v40, %s5188_s0 }
0x1c41   : > { %v2371_v41 = vpop.permute.xlu2 %2370 }
0x1c42   : > { %v2373_v38 = vmul.f32 %v2371_v41, %v2356_v50 }
0x1c44   : > { %2397 = vrot.lane.b32.xlu1 %v2373_v38, %s5189_s2 }
0x1c69   : > { %v2306_v42 = vpop.permute.xlu1 %2305 }
0x1c6a   : > { %v2308_v43 = vmul.f32 %v2306_v42, %v2291_v7 }
0x1c6c   : > { %2310 = vrot.lane.b32.xlu0 %v2308_v43, %s5189_s2 }
0x1cb6   : > { %v2398_v15 = vpop.permute.xlu1 %2397 }
0x1cb7   : > { %3353 = vmatmul.msk.f32.vlgmr.msrb.gmra.mxu1 %vm618_vm1, %v2398_v15  ;;  %3355 = vmatmul.msk.f32.vlgmr.msrb.gmra.mxu2 %vm618_vm1, %v2398_v15 }
0x1cb8   : > { %2866 = vmatpush.msrb.mxu2 %v4954_v21  ;;  %2841 = vmatpush.msrb.mxu1 %v4957_v44 }
0x1cba   : > { %2867 = vmatpush.msrb.mxu2 %v4960_v54  ;;  %2842 = vmatpush.msrb.mxu1 %v4963_v47 }
0x1cbc   : > { %2868 = vmatpush.msrb.mxu2 %v4966_v20  ;;  %2843 = vmatpush.msrb.mxu1 %v4969_v22 }
0x1cbe   : > { %2869 = vmatpush.msrb.mxu2 %v4972_v51  ;;  %2844 = vmatpush.msrb.mxu1 %v4975_v52 }
0x1cde   : > { %v2311_v53 = vpop.permute.xlu0 %2310 }
0x1cdf   : > { %2313 = vst.msk [vmem:[#allocation4 + $0x2] sm:$0x1] %vm539_vm0, %v2311_v53  ;;  %3352 = vmatmul.msk.f32.vlgmr.msra.gmra.mxu0 %vm618_vm1, %v2311_v53 }
0x1ce0   : > { %2780 = vmatpush.msra.mxu0 %v4919_v58 }
0x1ce2   : > { %2781 = vmatpush.msra.mxu0 %v4922_v16 }
0x1ce4   : > { %2782 = vmatpush.msra.mxu0 %v4925_v27 }
0x1ce6   : > { %2783 = vmatpush.msra.mxu0 %v4928_v2 }
0x1d34   : > { %v2418_v11 = vpop.f32.mrf.mxu1 }
0x1d3a   : > { %v2483_v59 = vpop.f32.mrf.mxu2 }
0x1d3b   : > { %v2486_v60 = vadd.f32 %v2483_v59, %v2465_v57 }
0x1d3d   : > { %v3356_v0 = vmul.f32 -1.442695, %v2486_v60 }
0x1d3f   : > { %3701 = vpow2.f32 %v3356_v0 }
0x1d45   : > { %v3702_v61 = vpop.eup %3701 }
0x1d46   : > { %v2490_v46 = vadd.f32 1.0, %v3702_v61 }
0x1d48   : > { %3703 = vrcp.f32 %v2490_v46  ;;  %v2502_v3 = vand.u32 2147483648, %v2490_v46  ;;  %v2500_v4 = vand.u32 2147483647, %v2490_v46  ;;  %vm2496_vm7 = vweird.f32 %v2490_v46 }
0x1d49   : > { %3705 = vtanh.f32 %v2486_v60 }
0x1d4a   : > { %v2503_v50 = vor.u32 1.1754944e-38, %v2502_v3  ;;  %vm2501_vm9 = vcmp.eq.f32.partialorder %v2500_v4, 8.507059e+37 }
0x1d4e   : > { %v3704_v62 = vpop.eup %3703 }
0x1d4f   : > { %v2492_v63 = vmul.f32 %v3704_v62, %v2490_v46  ;;  %vm2497_vm6 = vweird.f32 %v3704_v62  ;;  %v3706_v8 = vpop.eup %3705 }
0x1d50   : > { %vm2498_vm8 = vmor %vm2496_vm7, %vm2497_vm6 }
0x1d51   : > { %v2493_v1 = vsub.f32 1.0, %v2492_v63 }
0x1d53   : > { %v2494_v48 = vmul.f32 %v3704_v62, %v2493_v1 }
0x1d55   : > { %v2495_v49 = vadd.f32 %v3704_v62, %v2494_v48 }
0x1d57   : > { %v2499_v6 = vsel %vm2498_vm8, %v3704_v62, %v2495_v49 }
0x1d58   : > { %v2504_v9 = vsel %vm2501_vm9, %v2503_v50, %v2499_v6 }
0x1d59   : > { %v2507_v10 = vsel %vm4435_vm5, %v3706_v8, %v2504_v9 }
0x1d5a   : > { %2510 = vrot.lane.b32.xlu0 %v2507_v10, %s5188_s0  ;;  %v2508_v40 = vmul.f32 %v2507_v10, %v4941_v33 }
0x1d5c   : > { %v2393_v13 = vpop.f32.mrf.mxu0 }
0x1d5d   : > { %v2419_v14 = vadd.f32 %v2418_v11, %v2393_v13 }
0x1d5f   : > { %v2421_v19 = vadd.f32 %v4990_v17, %v2419_v14 }
0x1d61   : > { %v3354_v45 = vmul.f32 -1.442695, %v2421_v19 }
0x1d63   : > { %3707 = vpow2.f32 %v3354_v45 }
0x1d69   : > { %v3708_v23 = vpop.eup %3707 }
0x1d6a   : > { %v2425_v24 = vadd.f32 1.0, %v3708_v23 }
0x1d6c   : > { %3709 = vrcp.f32 %v2425_v24  ;;  %v2437_v55 = vand.u32 2147483648, %v2425_v24  ;;  %v2435_v5 = vand.u32 2147483647, %v2425_v24  ;;  %vm2431_vm11 = vweird.f32 %v2425_v24 }
0x1d6d   : > { %3711 = vtanh.f32 %v2421_v19 }
0x1d6e   : > { %v2438_v28 = vor.u32 1.1754944e-38, %v2437_v55  ;;  %vm2436_vm13 = vcmp.eq.f32.partialorder %v2435_v5, 8.507059e+37 }
0x1d72   : > { %v3710_v25 = vpop.eup %3709 }
0x1d73   : > { %v2427_v26 = vmul.f32 %v3710_v25, %v2425_v24  ;;  %vm2432_vm10 = vweird.f32 %v3710_v25  ;;  %v3712_v30 = vpop.eup %3711 }
0x1d74   : > { %vm2433_vm12 = vmor %vm2431_vm11, %vm2432_vm10 }
0x1d75   : > { %v2428_v12 = vsub.f32 1.0, %v2427_v26 }
0x1d77   : > { %v2429_v56 = vmul.f32 %v3710_v25, %v2428_v12 }
0x1d79   : > { %v2430_v7 = vadd.f32 %v3710_v25, %v2429_v56 }
0x1d7b   : > { %v2434_v29 = vsel %vm2433_vm12, %v3710_v25, %v2430_v7 }
0x1d7c   : > { %v2439_v31 = vsel %vm2436_vm13, %v2438_v28, %v2434_v29 }
0x1d7d   : > { %v2442_v18 = vsel %vm4435_vm5, %v3712_v30, %v2439_v31 }
0x1d7e   : > { %2445 = vrot.lane.b32.xlu2 %v2442_v18, %s5188_s0  ;;  %v2443_v43 = vmul.f32 %v2442_v18, %v4946_v39 }
0x1dcc   : > { %v2511_v32 = vpop.permute.xlu0 %2510 }
0x1dcd   : > { %v2513_v34 = vmul.f32 %v2511_v32, %v2507_v10 }
0x1dcf   : > { %2515 = vrot.lane.b32.xlu2 %v2513_v34, %s5189_s2 }
0x1dd8   : > { %v2446_v36 = vpop.permute.xlu2 %2445 }
0x1dd9   : > { %v2448_v37 = vmul.f32 %v2446_v36, %v2442_v18 }
0x1ddb   : > { %2450 = vrot.lane.b32.xlu1 %v2448_v37, %s5189_s2 }
0x1e29   : > { %v2516_v41 = vpop.permute.xlu2 %2515 }
0x1e2a   : > { %v4999_v38 = vadd.f32 %v2516_v41, %v2508_v40 }
0x1e2c   : > { %3713 = vtanh.f32 %v4999_v38 }
0x1e32   : > { %v3714_v42 = vpop.eup %3713 }
0x1e33   : > { %2521 = vrot.lane.b32.xlu1 %v3714_v42, %s5188_s0 }
0x1e4d   : > { %v2451_v15 = vpop.permute.xlu1 %2450 }
0x1e4e   : > { %v5004_v53 = vadd.f32 %v2451_v15, %v2443_v43 }
0x1e50   : > { %3715 = vtanh.f32 %v5004_v53 }
0x1e56   : > { %v3716_v57 = vpop.eup %3715 }
0x1e57   : > { %2456 = vrot.lane.b32.xlu0 %v3716_v57, %s5188_s0  ;;  %v2767_v57 = vld [vmem:[#allocation3 + $0xe] sm:$0x1] }
0x1ea5   : > { %v2522_v59 = vpop.permute.xlu1 %2521 }
0x1ea6   : > { %v2524_v33 = vmul.f32 %v2522_v59, %v2507_v10 }
0x1ea8   : > { %2548 = vrot.lane.b32.xlu0 %v2524_v33, %s5189_s2 }
0x1ec9   : > { %v2457_v60 = vpop.permute.xlu0 %2456 }
0x1eca   : > { %v2459_v0 = vmul.f32 %v2457_v60, %v2442_v18 }
0x1ecc   : > { %2461 = vrot.lane.b32.xlu2 %v2459_v0, %s5189_s2 }
0x1f1a   : > { %v2549_v61 = vpop.permute.xlu0 %2548 }
0x1f1b   : > { %3358 = vmatmul.msk.f32.vlgmr.msrb.gmra.mxu0 %vm618_vm1, %v2549_v61  ;;  %3360 = vmatmul.msk.f32.vlgmr.msra.gmra.mxu1 %vm618_vm1, %v2549_v61 }
0x1f1c   : > { %3017 = vmatpush.msra.mxu1 %v4954_v21  ;;  %2992 = vmatpush.msrb.mxu0 %v4957_v44  ;;  %v2616_v21 = vld [vmem:[#allocation3 + $0xd] sm:$0x1] }
0x1f1e   : > { %3018 = vmatpush.msra.mxu1 %v4960_v54  ;;  %2993 = vmatpush.msrb.mxu0 %v4963_v47 }
0x1f20   : > { %3019 = vmatpush.msra.mxu1 %v4966_v20  ;;  %2994 = vmatpush.msrb.mxu0 %v4969_v22 }
0x1f22   : > { %3020 = vmatpush.msra.mxu1 %v4972_v51  ;;  %2995 = vmatpush.msrb.mxu0 %v4975_v52 }
0x1f26   : > { %v2462_v39 = vpop.permute.xlu2 %2461 }
0x1f27   : > { %2464 = vst.msk [vmem:[#allocation4 + $0x3] sm:$0x1] %vm539_vm0, %v2462_v39  ;;  %3357 = vmatmul.msk.f32.vlgmr.msrb.gmra.mxu3 %vm618_vm1, %v2462_v39 }
0x1f28   : > { %2931 = vmatpush.msrb.mxu3 %v4919_v58 }
0x1f2a   : > { %2932 = vmatpush.msrb.mxu3 %v4922_v16 }
0x1f2c   : > { %2933 = vmatpush.msrb.mxu3 %v4925_v27 }
0x1f2e   : > { %2934 = vmatpush.msrb.mxu3 %v4928_v2 }
0x1f98   : > { %v2634_v44 = vpop.f32.mrf.mxu1  ;;  %v2569_v51 = vpop.f32.mrf.mxu0 }
0x1f99   : > { %v2637_v54 = vadd.f32 %v2634_v44, %v2616_v21 }
0x1f9b   : > { %v3361_v47 = vmul.f32 -1.442695, %v2637_v54 }
0x1f9d   : > { %3717 = vpow2.f32 %v3361_v47 }
0x1fa3   : > { %v3718_v20 = vpop.eup %3717 }
0x1fa4   : > { %v2641_v22 = vadd.f32 1.0, %v3718_v20 }
0x1fa6   : > { %3719 = vrcp.f32 %v2641_v22  ;;  %v2653_v27 = vand.u32 2147483648, %v2641_v22  ;;  %v2651_v3 = vand.u32 2147483647, %v2641_v22  ;;  %vm2647_vm15 = vweird.f32 %v2641_v22 }
0x1fa7   : > { %3721 = vtanh.f32 %v2637_v54 }
0x1fa8   : > { %v2654_v4 = vor.u32 1.1754944e-38, %v2653_v27  ;;  %vm2652_vm3 = vcmp.eq.f32.partialorder %v2651_v3, 8.507059e+37 }
0x1faa   : > { %v2544_v52 = vpop.f32.mrf.mxu3 }
0x1fab   : > { %v2570_v46 = vadd.f32 %v2569_v51, %v2544_v52 }
0x1fac   : > { %v3720_v62 = vpop.eup %3719 }
0x1fad   : > { %v2572_v58 = vadd.f32 %v4990_v17, %v2570_v46  ;;  %v2643_v63 = vmul.f32 %v3720_v62, %v2641_v22  ;;  %vm2648_vm14 = vweird.f32 %v3720_v62  ;;  %v3722_v50 = vpop.eup %3721 }
0x1fae   : > { %vm2649_vm2 = vmor %vm2647_vm15, %vm2648_vm14 }
0x1faf   : > { %v3359_v16 = vmul.f32 -1.442695, %v2572_v58  ;;  %v2644_v1 = vsub.f32 1.0, %v2643_v63 }
0x1fb1   : > { %3723 = vpow2.f32 %v3359_v16  ;;  %v2645_v2 = vmul.f32 %v3720_v62, %v2644_v1 }
0x1fb3   : > { %v2646_v48 = vadd.f32 %v3720_v62, %v2645_v2 }
0x1fb5   : > { %v2650_v49 = vsel %vm2649_vm2, %v3720_v62, %v2646_v48 }
0x1fb6   : > { %v2655_v6 = vsel %vm2652_vm3, %v2654_v4, %v2650_v49 }
0x1fb7   : > { %v3724_v8 = vpop.eup %3723  ;;  %v2658_v9 = vsel %vm4435_vm5, %v3722_v50, %v2655_v6 }
0x1fb8   : > { %v2576_v10 = vadd.f32 1.0, %v3724_v8  ;;  %2661 = vrot.lane.b32.xlu2 %v2658_v9, %s5188_s0  ;;  %v2659_v30 = vmul.f32 %v2658_v9, %v4999_v38 }
0x1fba   : > { %3725 = vrcp.f32 %v2576_v10  ;;  %v2588_v19 = vand.u32 2147483648, %v2576_v10  ;;  %v2586_v23 = vand.u32 2147483647, %v2576_v10  ;;  %vm2582_vm6 = vweird.f32 %v2576_v10 }
0x1fbb   : > { %3727 = vtanh.f32 %v2572_v58 }
0x1fbc   : > { %v2589_v25 = vor.u32 1.1754944e-38, %v2588_v19  ;;  %vm2587_vm8 = vcmp.eq.f32.partialorder %v2586_v23, 8.507059e+37 }
0x1fc0   : > { %v3726_v11 = vpop.eup %3725 }
0x1fc1   : > { %v2578_v13 = vmul.f32 %v3726_v11, %v2576_v10  ;;  %vm2583_vm4 = vweird.f32 %v3726_v11  ;;  %v3728_v12 = vpop.eup %3727 }
0x1fc2   : > { %vm2584_vm7 = vmor %vm2582_vm6, %vm2583_vm4 }
0x1fc3   : > { %v2579_v14 = vsub.f32 1.0, %v2578_v13 }
0x1fc5   : > { %v2580_v45 = vmul.f32 %v3726_v11, %v2579_v14 }
0x1fc7   : > { %v2581_v24 = vadd.f32 %v3726_v11, %v2580_v45 }
0x1fc9   : > { %v2585_v26 = vsel %vm2584_vm7, %v3726_v11, %v2581_v24 }
0x1fca   : > { %v2590_v55 = vsel %vm2587_vm8, %v2589_v25, %v2585_v26 }
0x1fcb   : > { %v2593_v56 = vsel %vm4435_vm5, %v3728_v12, %v2590_v55 }
0x1fcc   : > { %2596 = vrot.lane.b32.xlu1 %v2593_v56, %s5188_s0  ;;  %v2594_v34 = vmul.f32 %v2593_v56, %v5004_v53 }
0x2012   : > { %v2662_v5 = vpop.permute.xlu2 %2661 }
0x2013   : > { %v2664_v7 = vmul.f32 %v2662_v5, %v2658_v9 }
0x2015   : > { %2666 = vrot.lane.b32.xlu1 %v2664_v7, %s5189_s2 }
0x203e   : > { %v2597_v28 = vpop.permute.xlu1 %2596 }
0x203f   : > { %v2599_v29 = vmul.f32 %v2597_v28, %v2593_v56 }
0x2041   : > { %2601 = vrot.lane.b32.xlu0 %v2599_v29, %s5189_s2 }
0x2087   : > { %v2667_v31 = vpop.permute.xlu1 %2666 }
0x2088   : > { %v5036_v18 = vadd.f32 %v2667_v31, %v2659_v30 }
0x208a   : > { %3729 = vtanh.f32 %v5036_v18 }
0x2090   : > { %v3730_v32 = vpop.eup %3729 }
0x2091   : > { %2672 = vrot.lane.b32.xlu0 %v3730_v32, %s5188_s0 }
0x20b3   : > { %v2602_v36 = vpop.permute.xlu0 %2601 }
0x20b4   : > { %v5041_v37 = vadd.f32 %v2602_v36, %v2594_v34 }
0x20b6   : > { %3731 = vtanh.f32 %v5041_v37 }
0x20bc   : > { %v3732_v40 = vpop.eup %3731 }
0x20bd   : > { %2607 = vrot.lane.b32.xlu2 %v3732_v40, %s5188_s0  ;;  %v2918_v40 = vld [vmem:[#allocation3 + $0xf] sm:$0x1] }
0x2103   : > { %v2673_v41 = vpop.permute.xlu0 %2672 }
0x2104   : > { %v2675_v38 = vmul.f32 %v2673_v41, %v2658_v9 }
0x2106   : > { %2699 = vrot.lane.b32.xlu2 %v2675_v38, %s5189_s2 }
0x2117   : > { %v2608_v42 = vpop.permute.xlu2 %2607 }
0x2118   : > { %v2610_v43 = vmul.f32 %v2608_v42, %v2593_v56 }
0x211a   : > { %2612 = vrot.lane.b32.xlu1 %v2610_v43, %s5189_s2 }
0x2160   : > { %v2700_v15 = vpop.permute.xlu2 %2699 }
0x2161   : > { %3363 = vmatmul.msk.f32.vlgmr.msra.gmra.mxu3 %vm618_vm1, %v2700_v15  ;;  %3365 = vmatmul.msk.f32.vlgmr.msra.gmra.mxu0 %vm618_vm1, %v2700_v15 }
0x218c   : > { %v2613_v53 = vpop.permute.xlu1 %2612 }
0x218d   : > { %2615 = vst.msk [vmem:[#allocation4 + $0x4] sm:$0x1] %vm539_vm0, %v2613_v53  ;;  %3362 = vmatmul.msk.f32.vlgmr.msra.gmra.mxu2 %vm618_vm1, %v2613_v53 }
0x218e   : > { %3093 = vmatpush.msra.mxu2 %v3073_v35 }
0x21de   : > { %v2785_v59 = vpop.f32.mrf.mxu0 }
0x21df   : > { %v2788_v33 = vadd.f32 %v2785_v59, %v2767_v57 }
0x21e1   : > { %v3366_v60 = vmul.f32 -1.442695, %v2788_v33 }
0x21e3   : > { %3733 = vpow2.f32 %v3366_v60 }
0x21e4   : > { %v2720_v63 = vpop.f32.mrf.mxu3 }
0x21e9   : > { %v3734_v0 = vpop.eup %3733 }
0x21ea   : > { %v2792_v61 = vadd.f32 1.0, %v3734_v0 }
0x21ec   : > { %3735 = vrcp.f32 %v2792_v61  ;;  %v2804_v54 = vand.u32 2147483648, %v2792_v61  ;;  %v2802_v20 = vand.u32 2147483647, %v2792_v61  ;;  %vm2798_vm10 = vweird.f32 %v2792_v61 }
0x21ed   : > { %3737 = vtanh.f32 %v2788_v33 }
0x21ee   : > { %v2805_v51 = vor.u32 1.1754944e-38, %v2804_v54  ;;  %vm2803_vm12 = vcmp.eq.f32.partialorder %v2802_v20, 8.507059e+37 }
0x21f2   : > { %v3736_v39 = vpop.eup %3735 }
0x21f3   : > { %v2794_v21 = vmul.f32 %v3736_v39, %v2792_v61  ;;  %vm2799_vm9 = vweird.f32 %v3736_v39  ;;  %v3738_v46 = vpop.eup %3737 }
0x21f4   : > { %vm2800_vm11 = vmor %vm2798_vm10, %vm2799_vm9 }
0x21f5   : > { %v2795_v44 = vsub.f32 1.0, %v2794_v21 }
0x21f7   : > { %v2796_v47 = vmul.f32 %v3736_v39, %v2795_v44 }
0x21f9   : > { %v2797_v22 = vadd.f32 %v3736_v39, %v2796_v47 }
0x21fb   : > { %v2801_v52 = vsel %vm2800_vm11, %v3736_v39, %v2797_v22 }
0x21fc   : > { %v2806_v62 = vsel %vm2803_vm12, %v2805_v51, %v2801_v52 }
0x21fd   : > { %v2809_v58 = vsel %vm4435_vm5, %v3738_v46, %v2806_v62 }
0x21fe   : > { %2812 = vrot.lane.b32.xlu0 %v2809_v58, %s5188_s0  ;;  %v2810_v12 = vmul.f32 %v2809_v58, %v5036_v18 }
0x2210   : > { %v2695_v16 = vpop.f32.mrf.mxu2 }
0x2211   : > { %v2721_v1 = vadd.f32 %v2720_v63, %v2695_v16 }
0x2213   : > { %v2723_v27 = vadd.f32 %v4990_v17, %v2721_v1 }
0x2215   : > { %v3364_v2 = vmul.f32 -1.442695, %v2723_v27 }
0x2217   : > { %3739 = vpow2.f32 %v3364_v2 }
0x221d   : > { %v3740_v3 = vpop.eup %3739 }
0x221e   : > { %v2727_v48 = vadd.f32 1.0, %v3740_v3 }
0x2220   : > { %3741 = vrcp.f32 %v2727_v48  ;;  %v2739_v6 = vand.u32 2147483648, %v2727_v48  ;;  %v2737_v9 = vand.u32 2147483647, %v2727_v48  ;;  %vm2733_vm14 = vweird.f32 %v2727_v48 }
0x2221   : > { %3743 = vtanh.f32 %v2723_v27 }
0x2222   : > { %v2740_v11 = vor.u32 1.1754944e-38, %v2739_v6  ;;  %vm2738_vm2 = vcmp.eq.f32.partialorder %v2737_v9, 8.507059e+37 }
0x2226   : > { %v3742_v4 = vpop.eup %3741 }
0x2227   : > { %v2729_v49 = vmul.f32 %v3742_v4, %v2727_v48  ;;  %vm2734_vm13 = vweird.f32 %v3742_v4  ;;  %v3744_v14 = vpop.eup %3743 }
0x2228   : > { %vm2735_vm15 = vmor %vm2733_vm14, %vm2734_vm13 }
0x2229   : > { %v2730_v50 = vsub.f32 1.0, %v2729_v49 }
0x222b   : > { %v2731_v8 = vmul.f32 %v3742_v4, %v2730_v50 }
0x222d   : > { %v2732_v10 = vadd.f32 %v3742_v4, %v2731_v8 }
0x222f   : > { %v2736_v13 = vsel %vm2735_vm15, %v3742_v4, %v2732_v10 }
0x2230   : > { %v2741_v19 = vsel %vm2738_vm2, %v2740_v11, %v2736_v13 }
0x2231   : > { %v2744_v45 = vsel %vm4435_vm5, %v3744_v14, %v2741_v19 }
0x2232   : > { %2747 = vrot.lane.b32.xlu1 %v2744_v45, %s5188_s0  ;;  %v2745_v7 = vmul.f32 %v2744_v45, %v5041_v37 }
0x2270   : > { %v2813_v23 = vpop.permute.xlu0 %2812 }
0x2271   : > { %v2815_v24 = vmul.f32 %v2813_v23, %v2809_v58 }
0x2273   : > { %2817 = vrot.lane.b32.xlu2 %v2815_v24, %s5189_s2 }
0x22a4   : > { %v2748_v25 = vpop.permute.xlu1 %2747 }
0x22a5   : > { %v2750_v26 = vmul.f32 %v2748_v25, %v2744_v45 }
0x22a7   : > { %2752 = vrot.lane.b32.xlu0 %v2750_v26, %s5189_s2 }
0x22cd   : > { %v2818_v55 = vpop.permute.xlu2 %2817 }
0x22ce   : > { %v5061_v56 = vadd.f32 %v2818_v55, %v2810_v12 }
0x22d0   : > { %3745 = vtanh.f32 %v5061_v56 }
0x22d6   : > { %v3746_v5 = vpop.eup %3745 }
0x22d7   : > { %2823 = vrot.lane.b32.xlu1 %v3746_v5, %s5188_s0 }
0x2319   : > { %v2753_v28 = vpop.permute.xlu0 %2752 }
0x231a   : > { %v5066_v29 = vadd.f32 %v2753_v28, %v2745_v7 }
0x231c   : > { %3747 = vtanh.f32 %v5066_v29 }
0x2322   : > { %v3748_v30 = vpop.eup %3747 }
0x2323   : > { %2758 = vrot.lane.b32.xlu2 %v3748_v30, %s5188_s0 }
0x2349   : > { %v2824_v31 = vpop.permute.xlu1 %2823 }
0x234a   : > { %v2826_v18 = vmul.f32 %v2824_v31, %v2809_v58 }
0x234c   : > { %2850 = vrot.lane.b32.xlu0 %v2826_v18, %s5189_s2 }
0x237d   : > { %v2759_v32 = vpop.permute.xlu2 %2758 }
0x237e   : > { %v2761_v34 = vmul.f32 %v2759_v32, %v2744_v45 }
0x2380   : > { %2763 = vrot.lane.b32.xlu1 %v2761_v34, %s5189_s2 }
0x23be   : > { %v2851_v36 = vpop.permute.xlu0 %2850 }
0x23bf   : > { %3368 = vmatmul.msk.f32.vlgmr.msrb.gmra.mxu2 %vm618_vm1, %v2851_v36  ;;  %3370 = vmatmul.msk.f32.vlgmr.msrb.gmra.mxu3 %vm618_vm1, %v2851_v36 }
0x23f2   : > { %v2764_v37 = vpop.permute.xlu1 %2763 }
0x23f3   : > { %2766 = vst.msk [vmem:[#allocation4 + $0x5] sm:$0x1] %vm539_vm0, %v2764_v37  ;;  %3367 = vmatmul.msk.f32.vlgmr.msrb.gmra.mxu1 %vm618_vm1, %v2764_v37 }
0x2442   : > { %v2936_v41 = vpop.f32.mrf.mxu3  ;;  %v2871_v20 = vpop.f32.mrf.mxu2 }
0x2443   : > { %v2939_v38 = vadd.f32 %v2936_v41, %v2918_v40 }
0x2445   : > { %v3371_v42 = vmul.f32 -1.442695, %v2939_v38 }
0x2447   : > { %3749 = vpow2.f32 %v3371_v42 }
0x244d   : > { %v3750_v43 = vpop.eup %3749 }
0x244e   : > { %v2943_v15 = vadd.f32 1.0, %v3750_v43 }
0x2450   : > { %3751 = vrcp.f32 %v2943_v15  ;;  %v2955_v33 = vand.u32 2147483648, %v2943_v15  ;;  %v2953_v0 = vand.u32 2147483647, %v2943_v15  ;;  %vm2949_vm4 = vweird.f32 %v2943_v15 }
0x2451   : > { %3753 = vtanh.f32 %v2939_v38 }
0x2452   : > { %v2956_v39 = vor.u32 1.1754944e-38, %v2955_v33  ;;  %vm2954_vm7 = vcmp.eq.f32.partialorder %v2953_v0, 8.507059e+37 }
0x2456   : > { %v3752_v53 = vpop.eup %3751 }
0x2457   : > { %v2945_v57 = vmul.f32 %v3752_v53, %v2943_v15  ;;  %vm2950_vm3 = vweird.f32 %v3752_v53  ;;  %v3754_v44 = vpop.eup %3753 }
0x2458   : > { %vm2951_vm6 = vmor %vm2949_vm4, %vm2950_vm3 }
0x2459   : > { %v2946_v59 = vsub.f32 1.0, %v2945_v57 }
0x245b   : > { %v2947_v60 = vmul.f32 %v3752_v53, %v2946_v59 }
0x245d   : > { %v2948_v61 = vadd.f32 %v3752_v53, %v2947_v60 }
0x245f   : > { %v2952_v21 = vsel %vm2951_vm6, %v3752_v53, %v2948_v61 }
0x2460   : > { %v2957_v54 = vsel %vm2954_vm7, %v2956_v39, %v2952_v21 }
0x2461   : > { %v2960_v47 = vsel %vm4435_vm5, %v3754_v44, %v2957_v54 }
0x2462   : > { %2963 = vrot.lane.b32.xlu0 %v2960_v47, %s5188_s0  ;;  %v2961_v14 = vmul.f32 %v2960_v47, %v5061_v56 }
0x2470   : > { %v2846_v22 = vpop.f32.mrf.mxu1 }
0x2471   : > { %v2872_v51 = vadd.f32 %v2871_v20, %v2846_v22  ;;  %v3072_v22 = vld [vmem:[#allocation20 + $0x10] sm:$0xff] }
0x2472   : > { %3094 = vmatpush.msra.mxu2 %v3072_v22 }
0x2473   : > { %v2874_v52 = vadd.f32 %v4990_v17, %v2872_v51  ;;  %v3071_v51 = vld [vmem:[#allocation20 + $0x8] sm:$0xff] }
0x2474   : > { %3095 = vmatpush.msra.mxu2 %v3071_v51 }
0x2475   : > { %v3369_v46 = vmul.f32 -1.442695, %v2874_v52 }
0x2477   : > { %3755 = vpow2.f32 %v3369_v46 }
0x247d   : > { %v3756_v62 = vpop.eup %3755 }
0x247e   : > { %v2878_v58 = vadd.f32 1.0, %v3756_v62 }
0x2480   : > { %3757 = vrcp.f32 %v2878_v58  ;;  %v2890_v27 = vand.u32 2147483648, %v2878_v58  ;;  %v2888_v3 = vand.u32 2147483647, %v2878_v58  ;;  %vm2884_vm9 = vweird.f32 %v2878_v58 }
0x2481   : > { %3759 = vtanh.f32 %v2874_v52  ;;  %v3070_v52 = vld [vmem:[#allocation20] sm:$0xff] }
0x2482   : > { %v2891_v4 = vor.u32 1.1754944e-38, %v2890_v27  ;;  %vm2889_vm11 = vcmp.eq.f32.partialorder %v2888_v3, 8.507059e+37  ;;  %3096 = vmatpush.msra.mxu2 %v3070_v52 }
0x2486   : > { %v3758_v63 = vpop.eup %3757 }
0x2487   : > { %v2880_v16 = vmul.f32 %v3758_v63, %v2878_v58  ;;  %vm2885_vm8 = vweird.f32 %v3758_v63  ;;  %v3760_v50 = vpop.eup %3759  ;;  %v3516_v58 = vld [vmem:[%s5149_s11] ss:$0 sm:$0xff] }
0x2488   : > { %vm2886_vm10 = vmor %vm2884_vm9, %vm2885_vm8 }
0x2489   : > { %v2881_v1 = vsub.f32 1.0, %v2880_v16 }
0x248b   : > { %v2882_v2 = vmul.f32 %v3758_v63, %v2881_v1 }
0x248d   : > { %v2883_v48 = vadd.f32 %v3758_v63, %v2882_v2 }
0x248f   : > { %v2887_v49 = vsel %vm2886_vm10, %v3758_v63, %v2883_v48 }
0x2490   : > { %v2892_v6 = vsel %vm2889_vm11, %v2891_v4, %v2887_v49 }
0x2491   : > { %v2895_v8 = vsel %vm4435_vm5, %v3760_v50, %v2892_v6 }
0x2492   : > { %2898 = vrot.lane.b32.xlu2 %v2895_v8, %s5188_s0  ;;  %v2896_v24 = vmul.f32 %v2895_v8, %v5066_v29 }
0x24d4   : > { %v2964_v9 = vpop.permute.xlu0 %2963 }
0x24d5   : > { %v2966_v10 = vmul.f32 %v2964_v9, %v2960_v47 }
0x24d7   : > { %2968 = vrot.lane.b32.xlu2 %v2966_v10, %s5189_s2 }
0x24ec   : > { %v2899_v11 = vpop.permute.xlu2 %2898 }
0x24ed   : > { %v2901_v13 = vmul.f32 %v2899_v11, %v2895_v8 }
0x24ef   : > { %2903 = vrot.lane.b32.xlu1 %v2901_v13, %s5189_s2 }
0x2531   : > { %v2969_v19 = vpop.permute.xlu2 %2968 }
0x2532   : > { %v2971_v45 = vadd.f32 %v2969_v19, %v2961_v14 }
0x2534   : > { %3761 = vtanh.f32 %v2971_v45 }
0x253a   : > { %v3762_v23 = vpop.eup %3761 }
0x253b   : > { %2974 = vrot.lane.b32.xlu1 %v3762_v23, %s5188_s0 }
0x2561   : > { %v2904_v25 = vpop.permute.xlu1 %2903 }
0x2562   : > { %v2906_v26 = vadd.f32 %v2904_v25, %v2896_v24 }
0x2564   : > { %3763 = vtanh.f32 %v2906_v26 }
0x256a   : > { %v3764_v12 = vpop.eup %3763 }
0x256b   : > { %2909 = vrot.lane.b32.xlu0 %v3764_v12, %s5188_s0 }
0x25ad   : > { %v2975_v55 = vpop.permute.xlu1 %2974 }
0x25ae   : > { %v2977_v5 = vmul.f32 %v2975_v55, %v2960_v47 }
0x25b0   : > { %3001 = vrot.lane.b32.xlu0 %v2977_v5, %s5189_s2 }
0x25dd   : > { %v2910_v7 = vpop.permute.xlu0 %2909 }
0x25de   : > { %v2912_v56 = vmul.f32 %v2910_v7, %v2895_v8 }
0x25e0   : > { %2914 = vrot.lane.b32.xlu2 %v2912_v56, %s5189_s2 }
0x2622   : > { %v3002_v28 = vpop.permute.xlu0 %3001 }
0x2623   : > { %3373 = vmatmul.msk.f32.vlgmr.msra.gmra.mxu1 %vm618_vm1, %v3002_v28 }
0x263a   : > { %v2915_v30 = vpop.permute.xlu2 %2914 }
0x263b   : > { %2917 = vst.msk [vmem:[#allocation4 + $0x6] sm:$0x1] %vm539_vm0, %v2915_v30  ;;  %3372 = vmatmul.msk.f32.vlgmr.msrb.gmra.mxu0 %vm618_vm1, %v2915_v30 }
0x26a0   : > { %v3022_v29 = vpop.f32.mrf.mxu1 }
0x26b8   : > { %v2997_v31 = vpop.f32.mrf.mxu0 }
0x26b9   : > { %v3023_v18 = vadd.f32 %v3022_v29, %v2997_v31 }
0x26bb   : > { %v3025_v32 = vadd.f32 %v4990_v17, %v3023_v18 }
0x26bd   : > { %v3374_v34 = vmul.f32 -1.442695, %v3025_v32 }
0x26bf   : > { %3765 = vpow2.f32 %v3374_v34 }
0x26c5   : > { %v3766_v36 = vpop.eup %3765 }
0x26c6   : > { %v3029_v37 = vadd.f32 1.0, %v3766_v36 }
0x26c8   : > { %3767 = vrcp.f32 %v3029_v37  ;;  %v3041_v42 = vand.u32 2147483648, %v3029_v37  ;;  %v3039_v15 = vand.u32 2147483647, %v3029_v37  ;;  %vm3035_vm13 = vweird.f32 %v3029_v37 }
0x26c9   : > { %3769 = vtanh.f32 %v3025_v32 }
0x26ca   : > { %v3042_v57 = vor.u32 1.1754944e-38, %v3041_v42  ;;  %vm3040_vm15 = vcmp.eq.f32.partialorder %v3039_v15, 8.507059e+37 }
0x26ce   : > { %v3768_v40 = vpop.eup %3767 }
0x26cf   : > { %v3031_v41 = vmul.f32 %v3768_v40, %v3029_v37  ;;  %vm3036_vm12 = vweird.f32 %v3768_v40  ;;  %v3770_v17 = vpop.eup %3769 }
0x26d0   : > { %vm3037_vm14 = vmor %vm3035_vm13, %vm3036_vm12 }
0x26d1   : > { %v3032_v38 = vsub.f32 1.0, %v3031_v41 }
0x26d3   : > { %v3033_v43 = vmul.f32 %v3768_v40, %v3032_v38 }
0x26d5   : > { %v3034_v53 = vadd.f32 %v3768_v40, %v3033_v43 }
0x26d7   : > { %v3038_v59 = vsel %vm3037_vm14, %v3768_v40, %v3034_v53 }
0x26d8   : > { %v3043_v33 = vsel %vm3040_vm15, %v3042_v57, %v3038_v59 }
0x26d9   : > { %v3046_v60 = vsel %vm4435_vm5, %v3770_v17, %v3043_v33 }
0x26da   : > { %3049 = vrot.lane.b32.xlu1 %v3046_v60, %s5188_s0  ;;  %v3047_v39 = vmul.f32 %v3046_v60, %v2906_v26 }
0x274c   : > { %v3050_v0 = vpop.permute.xlu1 %3049 }
0x274d   : > { %v3052_v61 = vmul.f32 %v3050_v0, %v3046_v60 }
0x274f   : > { %3054 = vrot.lane.b32.xlu2 %v3052_v61, %s5189_s2 }
0x27a9   : > { %v3055_v21 = vpop.permute.xlu2 %3054 }
0x27aa   : > { %v3057_v44 = vadd.f32 %v3055_v21, %v3047_v39 }
0x27ac   : > { %3771 = vtanh.f32 %v3057_v44 }
0x27b2   : > { %v3772_v54 = vpop.eup %3771 }
0x27b3   : > { %3060 = vrot.lane.b32.xlu0 %v3772_v54, %s5188_s0 }
0x2825   : > { %v3061_v47 = vpop.permute.xlu0 %3060 }
0x2826   : > { %v3063_v20 = vmul.f32 %v3061_v47, %v3046_v60 }
0x2828   : > { %3065 = vrot.lane.b32.xlu1 %v3063_v20, %s5189_s2 }
0x289a   : > { %v3066_v46 = vpop.permute.xlu1 %3065 }
0x289b   : > { %3068 = vst.msk [vmem:[#allocation4 + $0x7] sm:$0x1] %vm539_vm0, %v3066_v46 }
0x28a2   : > { %v3069_v62 = vld [vmem:[#allocation4] sm:$0xff] }
0x28a3   : > { %3375 = vmatmul.msk.f32.vlgmr.msra.gmra.mxu2 %vm618_vm1, %v3069_v62 }
0x2926   : > { %v3098_v63 = vpop.f32.mrf.mxu2 }
0x2927   : > { %v3099_v16 = vadd.f32 %v3516_v58, %v3098_v63 }
0x2929   : > { %3101 = vst [vmem:[%s534_s17] sm:$0xff] %v3099_v16 }
0x292a   : > { %4066 = shalt.err (!%p4063_p7)
}
0x292b   : > { %3416 = dma.vmem_to_hbm [thread:$0]  (%p4244_p5), %s3116_s3, 128, %s3118_s26, %s3103_s15  }
0x292c PF: > { %s5190_s21 = sld [smem:[#allocation29_spill]]  ;;  %p3468_p8 = scmp.ge.s32.totalorder %s4125_s24, 2 }
0x292e   : > { %p3447_p9 = pnand %p3468_p8, %p4248_p6 }
0x2930   : > { %p3448_p10 = pneg %p3447_p9 }
0x2932   : > { %s3129_s18 = sand.u32 1, %s5190_s21  }
0x2933   : > { %s3130_s20 = scalar_lea.sflag [#allocation7], %s3129_s18 }
0x2934   : > { %4108 = dma.done.wait (%p3448_p10), %s3130_s20, 128  }
0x2935   : > { %4110 = vsyncadd (%p3448_p10), %s3130_s20, 4294967168  ;;  %s5192_s24 = sld [smem:[#allocation31_spill]]  ;;  %s5195_s21 = smov %s4117_s22 }
0x2936   : > { %s5193_s27 = sld [smem:[#allocation30_spill]] }
0x2937   : > { %s5194_s23 = sld [smem:[#allocation32_spill]] }
0x293b   : > { %p28_p11 = scmp.ge.s32.totalorder %s5192_s24, 4  }
0x293c   : > { %s5196_s22 = smov %s5193_s27 }
0x293d   :  { %30 = sbr.rel (!%p28_p11) target bundleno = 15 (0xf), region = 154 }
0x2942   :  { %3136 = vsyncpa [#allocation6], 1 }
0x2943   :  { %3138 = vsyncpa [#allocation6 + $0x1], 1 }
0x2944   :  { %3139 = vsyncpa [#allocation13], 1 }
0x2945   :  { %3140 = vsyncpa [#allocation16], 1 }
0x2946   :  { %3141 = vsyncpa [#allocation19], 1 }
0x2947   :  { %3142 = vsyncpa [#allocation7], 1 }
0x2948   :  { %3144 = vsyncpa [#allocation7 + $0x1], 1 }
0x2949   :  { %3145 = vsyncpa [#allocation8], 1 }
0x294a   :  { %3147 = vsyncpa [#allocation8 + $0x1], 1 }
0x294b   :  { %3148 = vsyncpa [#allocation10], 1 }

</bundles_post_ra>
